<compile_context>
chip_gen: v7x
topology: tpu7x:2x2x1
jax: 0.10.0
libtpu: 0.0.40
codegen_flags: <defaults>
</compile_context>

<pallas_src>
import functools

import jax
import jax.numpy as jnp
from jax.experimental import pallas as pl
from jax.experimental.pallas import tpu as pltpu

BN_EPS = 1e-5
LRELU_SLOPE = 0.2
FC_OUT_LANES = 128          # lane-dense FC output row; sliced to 1 outside
TARGET_ROWS = 512           # ~rows of matmul M per grid step
MAX_BATCH_TILE = 8          # cap images per grid step (bounds unrolled trace)


def _round_up(x, m):
    return -(-x // m) * m


def _pick_batch_tile(b, rows_per_img):
    """Images per grid step: divides B, ~TARGET_ROWS rows, >=2 steps if B>=2."""
    bt = max(1, min(MAX_BATCH_TILE, b, TARGET_ROWS // max(rows_per_img, 1)))
    if b >= 2:
        bt = max(1, min(bt, b // 2))        # keep >= 2 grid steps (v7x megacore)
    while b % bt:
        bt -= 1
    return bt


# ---------------------------------------------------------------------------
# Pallas kernels
# ---------------------------------------------------------------------------
def _make_conv_kernel(bt, l_rows, cout, taps):
    """3x3 stride-2 conv on parity-split input + per-tile BN partial sums."""

    def kernel(x_ref, w_ref, rmask_ref, y_ref, ssum_ref, ssq_ref):
        rmask = rmask_ref[...]                                   # (L, 1) f32
        ssum = jnp.zeros((1, cout), jnp.float32)
        ssq = jnp.zeros((1, cout), jnp.float32)
        for img in range(bt):
            acc = jnp.zeros((l_rows, cout), jnp.float32)
            for t, (hp, wp, s) in enumerate(taps):
                lhs = x_ref[img, hp, wp, s:s + l_rows, :]        # (L, Cin) bf16
                acc = acc + jnp.dot(lhs, w_ref[t],
                                    preferred_element_type=jnp.float32)
            y_ref[img] = acc.astype(y_ref.dtype)                 # bf16 y store
            accm = acc * rmask                                   # drop filler rows
            ssum = ssum + jnp.sum(accm, axis=0, keepdims=True)
            ssq = ssq + jnp.sum(accm * acc, axis=0, keepdims=True)
        ssum_ref[0] = ssum
        ssq_ref[0] = ssq

    return kernel


def conv_layer(x_r, w, oh, ow, bt):
    """Conv2d(k3,s2,p1, no bias) on a parity-split padded input.

    x_r : (B, 2, 2, S, Cin) bf16,  w : (9, Cin, Cout) bf16.
    Returns y (B, L, Cout) bf16 with L = oh*(ow+1) (column `ow` of every output
    row is a throwaway filler column), plus per-tile sum / sum-of-squares.
    """
    b, _, _, s_rows, cin = x_r.shape
    cout = w.shape[2]
    l_rows = oh * (ow + 1)
    nt = b // bt
    taps = []
    for ki in range(3):
        for kj in range(3):
            hp, hq0 = ki % 2, ki // 2
            wp, wq0 = kj % 2, kj // 2
            taps.append((hp, wp, hq0 * (ow + 1) + wq0))
    rmask = (jnp.arange(l_rows) % (ow + 1) < ow).astype(jnp.float32)
    rmask = rmask.reshape(l_rows, 1)

    return pl.pallas_call(
        _make_conv_kernel(bt, l_rows, cout, taps),
        out_shape=(jax.ShapeDtypeStruct((b, l_rows, cout), jnp.bfloat16),
                   jax.ShapeDtypeStruct((nt, 1, cout), jnp.float32),
                   jax.ShapeDtypeStruct((nt, 1, cout), jnp.float32)),
        grid=(nt,),
        in_specs=[pl.BlockSpec((bt, 2, 2, s_rows, cin),
                               lambda i: (i, 0, 0, 0, 0)),
                  pl.BlockSpec((9, cin, cout), lambda i: (0, 0, 0)),
                  pl.BlockSpec((l_rows, 1), lambda i: (0, 0))],
        out_specs=(pl.BlockSpec((bt, l_rows, cout), lambda i: (i, 0, 0)),
                   pl.BlockSpec((1, 1, cout), lambda i: (i, 0, 0)),
                   pl.BlockSpec((1, 1, cout), lambda i: (i, 0, 0))),
        compiler_params=pltpu.CompilerParams(
            dimension_semantics=("parallel",)),
    )(x_r, w, rmask)


def _make_fc_kernel(bt):
    """Layer-3 BN affine + LeakyReLU fused with the Linear(4096,1) reduce."""

    def kernel(y_ref, sc_ref, sh_ref, w_ref, o_ref):
        sc = sc_ref[...]                                         # (1, C) f32
        sh = sh_ref[...]
        wv = w_ref[...]                                          # (L3, C) f32
        for img in range(bt):
            a = y_ref[img].astype(jnp.float32) * sc + sh
            a = jnp.where(a > 0.0, a, LRELU_SLOPE * a)
            v = jnp.sum(a * wv)                                  # filler rows: w==0
            o_ref[img] = jnp.zeros((1, FC_OUT_LANES), jnp.float32) + v

    return kernel


def fc_layer(y3, scale, shift, w_fc, bt):
    b, l3, c = y3.shape
    nt = b // bt
    return pl.pallas_call(
        _make_fc_kernel(bt),
        out_shape=jax.ShapeDtypeStruct((b, 1, FC_OUT_LANES), jnp.float32),
        grid=(nt,),
        in_specs=[pl.BlockSpec((bt, l3, c), lambda i: (i, 0, 0)),
                  pl.BlockSpec((1, c), lambda i: (0, 0)),
                  pl.BlockSpec((1, c), lambda i: (0, 0)),
                  pl.BlockSpec((l3, c), lambda i: (0, 0))],
        out_specs=pl.BlockSpec((bt, 1, FC_OUT_LANES), lambda i: (i, 0, 0)),
        compiler_params=pltpu.CompilerParams(
            dimension_semantics=("parallel",)),
    )(y3, scale.reshape(1, c), shift.reshape(1, c), w_fc)


# ---------------------------------------------------------------------------
# Plain-XLA glue: BN finalize, affine+LReLU folded into the pad/parity-split
# restructure that feeds the next conv (one ~activation-sized pass, no 9x).
# TODO(synk): pull the pad/parity restructure into the conv kernel itself via
# halo'd row-tile BlockSpecs to remove this last 1x layout pass.
# ---------------------------------------------------------------------------
def _restructure_for_conv(act):
    """act: (B,H,W,C) conv input (zero spatial padding semantics) ->
    parity-split (B, 2, 2, S, C) with S = roundup((oh+1)*(ow+1)+1, 8)."""
    b, h, w, c = act.shape
    oh, ow = (h + 1) // 2, (w + 1) // 2
    hp, wp = 2 * (oh + 1), 2 * (ow + 1)
    xp = jnp.pad(act, ((0, 0), (1, hp - 1 - h), (1, wp - 1 - w), (0, 0)))
    xr = xp.reshape(b, oh + 1, 2, ow + 1, 2, c)
    xr = jnp.transpose(xr, (0, 2, 4, 1, 3, 5))           # (B,2,2,oh+1,ow+1,C)
    xr = xr.reshape(b, 2, 2, (oh + 1) * (ow + 1), c)
    s_rows = _round_up((oh + 1) * (ow + 1) + 1, 8)        # tail pad: tap slices
    xr = jnp.pad(xr, ((0, 0), (0, 0), (0, 0),
                      (0, s_rows - (oh + 1) * (ow + 1)), (0, 0)))
    return xr, oh, ow


def _bn_scale_shift(ssum, ssq, gamma, beta, count):
    """Training-mode BatchNorm finalize (biased variance, eps=1e-5)."""
    c = ssum.shape[-1]
    s1 = jnp.sum(ssum, axis=(0, 1))
    s2 = jnp.sum(ssq, axis=(0, 1))
    mean = s1 / count
    var = jnp.maximum(s2 / count - mean * mean, 0.0)
    inv = jax.lax.rsqrt(var + BN_EPS)
    scale = gamma.reshape(c) * inv
    shift = beta.reshape(c) - mean * scale
    return scale, shift


def _apply_bn_lrelu(y_rows, scale, shift, oh, ow):
    """(B, oh*(ow+1), C) bf16 pre-BN -> (B, oh, ow, C) bf16 activation."""
    b, _, c = y_rows.shape
    y = y_rows.reshape(b, oh, ow + 1, c)[:, :, :ow, :].astype(jnp.float32)
    a = y * scale + shift
    a = jnp.where(a > 0.0, a, LRELU_SLOPE * a)
    return a.astype(jnp.bfloat16)


# ---------------------------------------------------------------------------
# Parameters (deterministic, synthetic)
# ---------------------------------------------------------------------------
def init_params(key, img_shape, num_classes):
    c_img, h, w = img_shape
    keys = jax.random.split(key, 12)

    def nrm(k, shape, scale=0.05):
        return scale * jax.random.normal(k, shape, dtype=jnp.float32)

    def conv_w(k, cin, cout, cin_pad=None):
        # PyTorch Conv2d weight (Cout, Cin, 3, 3) -> (9, Cin_pad, Cout) bf16,
        # tap index t = kh*3 + kw; zero rows for padded input channels.
        cin_pad = cin if cin_pad is None else cin_pad
        wt = nrm(k, (cout, cin, 3, 3))
        wm = jnp.transpose(wt, (2, 3, 1, 0)).reshape(9, cin, cout)
        if cin_pad != cin:
            wm = jnp.pad(wm, ((0, 0), (0, cin_pad - cin), (0, 0)))
        return wm.astype(jnp.bfloat16)

    params = {}
    params["emb"] = nrm(keys[0], (num_classes, h * w), 1.0)
    # Conv biases intentionally omitted (cancelled by training-mode BatchNorm).
    params["c1_w"] = conv_w(keys[1], c_img + 1, 64, cin_pad=8)
    params["bn1_g"] = 1.0 + nrm(keys[2], (64,), 0.1)
    params["bn1_b"] = nrm(keys[3], (64,), 0.1)
    params["c2_w"] = conv_w(keys[4], 64, 128)
    params["bn2_g"] = 1.0 + nrm(keys[5], (128,), 0.1)
    params["bn2_b"] = nrm(keys[6], (128,), 0.1)
    params["c3_w"] = conv_w(keys[7], 128, 256)
    params["bn3_g"] = 1.0 + nrm(keys[8], (256,), 0.1)
    params["bn3_b"] = nrm(keys[9], (256,), 0.1)

    # fc: Linear(256*oh3*ow3, 1).  PyTorch weight is laid out for an NCHW
    # flatten; rearrange it to the conv-3 y layout (rows m = i*(ow3+1)+j with a
    # zeroed filler column) so the FC kernel is a plain VPU multiply+reduce.
    oh3 = (((h + 1) // 2 + 1) // 2 + 1) // 2
    ow3 = (((w + 1) // 2 + 1) // 2 + 1) // 2
    k_fc = 256 * oh3 * ow3                              # 4096 for 28x28
    w_pt = nrm(keys[10], (1, k_fc))
    w_hw_c = jnp.transpose(w_pt.reshape(256, oh3, ow3), (1, 2, 0))
    w_hw_c = jnp.pad(w_hw_c, ((0, 0), (0, 1), (0, 0)))  # filler column -> 0
    params["fc_w"] = w_hw_c.reshape(oh3 * (ow3 + 1), 256).astype(jnp.float32)
    params["fc_b"] = nrm(keys[11], (1,))
    return params


# ---------------------------------------------------------------------------
# Forward pass
# ---------------------------------------------------------------------------
def discriminator_forward(img, label, params, img_shape):
    c_img, h, w = img_shape
    b = img.shape[0]

    # Label-embedding gather + channel concat (pure layout glue in XLA).
    emb = params["emb"][label].reshape(b, h, w, 1)
    x = jnp.transpose(img, (0, 2, 3, 1))                        # NCHW -> NHWC
    d_in = jnp.concatenate([x, emb], axis=-1)                   # (B,H,W,2)
    cin1 = params["c1_w"].shape[1]
    d_in = jnp.pad(d_in, ((0, 0), (0, 0), (0, 0),
                          (0, cin1 - (c_img + 1)))).astype(jnp.bfloat16)

    # Layer 1: conv + BN stats (affine/LReLU folded into layer-2 restructure).
    xr1, oh1, ow1 = _restructure_for_conv(d_in)
    bt1 = _pick_batch_tile(b, oh1 * (ow1 + 1))
    y1, s1, q1 = conv_layer(xr1, params["c1_w"], oh1, ow1, bt1)
    sc1, sh1 = _bn_scale_shift(s1, q1, params["bn1_g"], params["bn1_b"],
                               b * oh1 * ow1)
    a1 = _apply_bn_lrelu(y1, sc1, sh1, oh1, ow1)                # (B,14,14,64)

    # Layer 2.
    xr2, oh2, ow2 = _restructure_for_conv(a1)
    bt2 = _pick_batch_tile(b, oh2 * (ow2 + 1))
    y2, s2, q2 = conv_layer(xr2, params["c2_w"], oh2, ow2, bt2)
    sc2, sh2 = _bn_scale_shift(s2, q2, params["bn2_g"], params["bn2_b"],
                               b * oh2 * ow2)
    a2 = _apply_bn_lrelu(y2, sc2, sh2, oh2, ow2)                # (B,7,7,128)

    # Layer 3: conv + stats; its BN/LReLU is fused into the FC kernel.
    xr3, oh3, ow3 = _restructure_for_conv(a2)
    bt3 = _pick_batch_tile(b, oh3 * (ow3 + 1))
    y3, s3, q3 = conv_layer(xr3, params["c3_w"], oh3, ow3, bt3) # (B,20,256)
    sc3, sh3 = _bn_scale_shift(s3, q3, params["bn3_g"], params["bn3_b"],
                               b * oh3 * ow3)

    # FC (Linear(4096,1)) fused with layer-3 BN affine + LeakyReLU.
    bt_fc = _pick_batch_tile(b, oh3 * (ow3 + 1))
    out = fc_layer(y3, sc3, sh3, params["fc_w"], bt_fc)         # (B,1,128)
    return out[:, 0, :1] + params["fc_b"]                       # validity (B,1)


if __name__ == "__main__":
    # Shapes implied by the module: Linear(4096, 1) fixes img_shape=(1, 28, 28).
    img_shape = (1, 28, 28)
    num_classes = 10
    batch = 2

    key = jax.random.PRNGKey(0)
    k_param, k_img, k_lab = jax.random.split(key, 3)
    params = init_params(k_param, img_shape, num_classes)
    img = jax.random.uniform(k_img, (batch,) + img_shape, dtype=jnp.float32)
    label = jax.random.randint(k_lab, (batch,), 0, num_classes)

    fwd = jax.jit(functools.partial(discriminator_forward, img_shape=img_shape))
    validity = fwd(img, label, params)
    jax.block_until_ready(validity)

    assert validity.shape == (batch, 1), validity.shape
    assert bool(jnp.all(jnp.isfinite(validity)))
    print("KERNEL_OK")
</pallas_src>

<mosaic_0001>
module attributes {stable_mosaic.version = 11 : i64} {
  func.func @kernel(%arg0: i32, %arg1: memref<1x2x2x232x8xbf16, #tpu.memory_space<vmem>>, %arg2: memref<9x8x64xbf16, #tpu.memory_space<vmem>>, %arg3: memref<210x1xf32, #tpu.memory_space<vmem>>, %arg4: memref<1x210x64xbf16, #tpu.memory_space<vmem>>, %arg5: memref<1x1x64xf32, #tpu.memory_space<vmem>>, %arg6: memref<1x1x64xf32, #tpu.memory_space<vmem>>) attributes {dimension_semantics = [#tpu.dimension_semantics<parallel>], iteration_bounds = array<i64: 2>, scalar_prefetch = 0 : i64, scratch_operands = 0 : i64, tpu.core_type = #tpu.core_type<tc>, window_params = [{transform_indices = @transform_0, window_bounds = array<i64: 1, 2, 2, 232, 8>}, {pipeline_mode = #tpu.pipeline_mode<synchronous>, transform_indices = @transform_1, window_bounds = array<i64: 9, 8, 64>}, {pipeline_mode = #tpu.pipeline_mode<synchronous>, transform_indices = @transform_2, window_bounds = array<i64: 210, 1>}, {transform_indices = @transform_3, window_bounds = array<i64: 1, 210, 64>}, {transform_indices = @transform_4, window_bounds = array<i64: 1, 1, 64>}, {transform_indices = @transform_5, window_bounds = array<i64: 1, 1, 64>}]} {
    %c0 = arith.constant 0 : index
    %c0_0 = arith.constant 0 : index
    %0 = vector.load %arg3[%c0, %c0_0] : memref<210x1xf32, #tpu.memory_space<vmem>>, vector<210x1xf32>
    %cst = arith.constant 0.000000e+00 : f32
    %1 = vector.broadcast %cst : f32 to vector<1x64xf32>
    %cst_1 = arith.constant 0.000000e+00 : f32
    %2 = vector.broadcast %cst_1 : f32 to vector<1x64xf32>
    %cst_2 = arith.constant 0.000000e+00 : f32
    %3 = vector.broadcast %cst_2 : f32 to vector<210x64xf32>
    %c0_3 = arith.constant 0 : index
    %c0_4 = arith.constant 0 : index
    %c0_5 = arith.constant 0 : index
    %c0_6 = arith.constant 0 : index
    %c0_7 = arith.constant 0 : index
    %4 = vector.load %arg1[%c0_3, %c0_4, %c0_5, %c0_6, %c0_7] : memref<1x2x2x232x8xbf16, #tpu.memory_space<vmem>>, vector<1x1x1x210x8xbf16>
    %5 = vector.shape_cast %4 : vector<1x1x1x210x8xbf16> to vector<210x8xbf16>
    %c0_8 = arith.constant 0 : index
    %c0_9 = arith.constant 0 : index
    %c0_10 = arith.constant 0 : index
    %6 = vector.load %arg2[%c0_8, %c0_9, %c0_10] : memref<9x8x64xbf16, #tpu.memory_space<vmem>>, vector<1x8x64xbf16>
    %7 = vector.shape_cast %6 : vector<1x8x64xbf16> to vector<8x64xbf16>
    %cst_11 = arith.constant dense<0.000000e+00> : vector<210x64xf32>
    %8 = tpu.matmul %5, %7, %cst_11 {dimension_numbers = #tpu.dot_dimension_numbers<[1], [0], [0], [1], [0, 0, 1, 1], [], []>} : vector<210x8xbf16>, vector<8x64xbf16>, vector<210x64xf32> -> vector<210x64xf32>
    %9 = arith.addf %3, %8 : vector<210x64xf32>
    %c0_12 = arith.constant 0 : index
    %c0_13 = arith.constant 0 : index
    %c1 = arith.constant 1 : index
    %c0_14 = arith.constant 0 : index
    %c0_15 = arith.constant 0 : index
    %10 = vector.load %arg1[%c0_12, %c0_13, %c1, %c0_14, %c0_15] : memref<1x2x2x232x8xbf16, #tpu.memory_space<vmem>>, vector<1x1x1x210x8xbf16>
    %11 = vector.shape_cast %10 : vector<1x1x1x210x8xbf16> to vector<210x8xbf16>
    %c1_16 = arith.constant 1 : index
    %c0_17 = arith.constant 0 : index
    %c0_18 = arith.constant 0 : index
    %12 = vector.load %arg2[%c1_16, %c0_17, %c0_18] : memref<9x8x64xbf16, #tpu.memory_space<vmem>>, vector<1x8x64xbf16>
    %13 = vector.shape_cast %12 : vector<1x8x64xbf16> to vector<8x64xbf16>
    %cst_19 = arith.constant dense<0.000000e+00> : vector<210x64xf32>
    %14 = tpu.matmul %11, %13, %cst_19 {dimension_numbers = #tpu.dot_dimension_numbers<[1], [0], [0], [1], [0, 0, 1, 1], [], []>} : vector<210x8xbf16>, vector<8x64xbf16>, vector<210x64xf32> -> vector<210x64xf32>
    %15 = arith.addf %9, %14 : vector<210x64xf32>
    %c0_20 = arith.constant 0 : index
    %c0_21 = arith.constant 0 : index
    %c0_22 = arith.constant 0 : index
    %c1_23 = arith.constant 1 : index
    %c0_24 = arith.constant 0 : index
    %16 = vector.load %arg1[%c0_20, %c0_21, %c0_22, %c1_23, %c0_24] : memref<1x2x2x232x8xbf16, #tpu.memory_space<vmem>>, vector<1x1x1x210x8xbf16>
    %17 = vector.shape_cast %16 : vector<1x1x1x210x8xbf16> to vector<210x8xbf16>
    %c2 = arith.constant 2 : index
    %c0_25 = arith.constant 0 : index
    %c0_26 = arith.constant 0 : index
    %18 = vector.load %arg2[%c2, %c0_25, %c0_26] : memref<9x8x64xbf16, #tpu.memory_space<vmem>>, vector<1x8x64xbf16>
    %19 = vector.shape_cast %18 : vector<1x8x64xbf16> to vector<8x64xbf16>
    %cst_27 = arith.constant dense<0.000000e+00> : vector<210x64xf32>
    %20 = tpu.matmul %17, %19, %cst_27 {dimension_numbers = #tpu.dot_dimension_numbers<[1], [0], [0], [1], [0, 0, 1, 1], [], []>} : vector<210x8xbf16>, vector<8x64xbf16>, vector<210x64xf32> -> vector<210x64xf32>
    %21 = arith.addf %15, %20 : vector<210x64xf32>
    %c0_28 = arith.constant 0 : index
    %c1_29 = arith.constant 1 : index
    %c0_30 = arith.constant 0 : index
    %c0_31 = arith.constant 0 : index
    %c0_32 = arith.constant 0 : index
    %22 = vector.load %arg1[%c0_28, %c1_29, %c0_30, %c0_31, %c0_32] : memref<1x2x2x232x8xbf16, #tpu.memory_space<vmem>>, vector<1x1x1x210x8xbf16>
    %23 = vector.shape_cast %22 : vector<1x1x1x210x8xbf16> to vector<210x8xbf16>
    %c3 = arith.constant 3 : index
    %c0_33 = arith.constant 0 : index
    %c0_34 = arith.constant 0 : index
    %24 = vector.load %arg2[%c3, %c0_33, %c0_34] : memref<9x8x64xbf16, #tpu.memory_space<vmem>>, vector<1x8x64xbf16>
    %25 = vector.shape_cast %24 : vector<1x8x64xbf16> to vector<8x64xbf16>
    %cst_35 = arith.constant dense<0.000000e+00> : vector<210x64xf32>
    %26 = tpu.matmul %23, %25, %cst_35 {dimension_numbers = #tpu.dot_dimension_numbers<[1], [0], [0], [1], [0, 0, 1, 1], [], []>} : vector<210x8xbf16>, vector<8x64xbf16>, vector<210x64xf32> -> vector<210x64xf32>
    %27 = arith.addf %21, %26 : vector<210x64xf32>
    %c0_36 = arith.constant 0 : index
    %c1_37 = arith.constant 1 : index
    %c1_38 = arith.constant 1 : index
    %c0_39 = arith.constant 0 : index
    %c0_40 = arith.constant 0 : index
    %28 = vector.load %arg1[%c0_36, %c1_37, %c1_38, %c0_39, %c0_40] : memref<1x2x2x232x8xbf16, #tpu.memory_space<vmem>>, vector<1x1x1x210x8xbf16>
    %29 = vector.shape_cast %28 : vector<1x1x1x210x8xbf16> to vector<210x8xbf16>
    %c4 = arith.constant 4 : index
    %c0_41 = arith.constant 0 : index
    %c0_42 = arith.constant 0 : index
    %30 = vector.load %arg2[%c4, %c0_41, %c0_42] : memref<9x8x64xbf16, #tpu.memory_space<vmem>>, vector<1x8x64xbf16>
    %31 = vector.shape_cast %30 : vector<1x8x64xbf16> to vector<8x64xbf16>
    %cst_43 = arith.constant dense<0.000000e+00> : vector<210x64xf32>
    %32 = tpu.matmul %29, %31, %cst_43 {dimension_numbers = #tpu.dot_dimension_numbers<[1], [0], [0], [1], [0, 0, 1, 1], [], []>} : vector<210x8xbf16>, vector<8x64xbf16>, vector<210x64xf32> -> vector<210x64xf32>
    %33 = arith.addf %27, %32 : vector<210x64xf32>
    %c0_44 = arith.constant 0 : index
    %c1_45 = arith.constant 1 : index
    %c0_46 = arith.constant 0 : index
    %c1_47 = arith.constant 1 : index
    %c0_48 = arith.constant 0 : index
    %34 = vector.load %arg1[%c0_44, %c1_45, %c0_46, %c1_47, %c0_48] : memref<1x2x2x232x8xbf16, #tpu.memory_space<vmem>>, vector<1x1x1x210x8xbf16>
    %35 = vector.shape_cast %34 : vector<1x1x1x210x8xbf16> to vector<210x8xbf16>
    %c5 = arith.constant 5 : index
    %c0_49 = arith.constant 0 : index
    %c0_50 = arith.constant 0 : index
    %36 = vector.load %arg2[%c5, %c0_49, %c0_50] : memref<9x8x64xbf16, #tpu.memory_space<vmem>>, vector<1x8x64xbf16>
    %37 = vector.shape_cast %36 : vector<1x8x64xbf16> to vector<8x64xbf16>
    %cst_51 = arith.constant dense<0.000000e+00> : vector<210x64xf32>
    %38 = tpu.matmul %35, %37, %cst_51 {dimension_numbers = #tpu.dot_dimension_numbers<[1], [0], [0], [1], [0, 0, 1, 1], [], []>} : vector<210x8xbf16>, vector<8x64xbf16>, vector<210x64xf32> -> vector<210x64xf32>
    %39 = arith.addf %33, %38 : vector<210x64xf32>
    %c0_52 = arith.constant 0 : index
    %c0_53 = arith.constant 0 : index
    %c0_54 = arith.constant 0 : index
    %c15 = arith.constant 15 : index
    %c0_55 = arith.constant 0 : index
    %40 = vector.load %arg1[%c0_52, %c0_53, %c0_54, %c15, %c0_55] : memref<1x2x2x232x8xbf16, #tpu.memory_space<vmem>>, vector<1x1x1x210x8xbf16>
    %41 = vector.shape_cast %40 : vector<1x1x1x210x8xbf16> to vector<210x8xbf16>
    %c6 = arith.constant 6 : index
    %c0_56 = arith.constant 0 : index
    %c0_57 = arith.constant 0 : index
    %42 = vector.load %arg2[%c6, %c0_56, %c0_57] : memref<9x8x64xbf16, #tpu.memory_space<vmem>>, vector<1x8x64xbf16>
    %43 = vector.shape_cast %42 : vector<1x8x64xbf16> to vector<8x64xbf16>
    %cst_58 = arith.constant dense<0.000000e+00> : vector<210x64xf32>
    %44 = tpu.matmul %41, %43, %cst_58 {dimension_numbers = #tpu.dot_dimension_numbers<[1], [0], [0], [1], [0, 0, 1, 1], [], []>} : vector<210x8xbf16>, vector<8x64xbf16>, vector<210x64xf32> -> vector<210x64xf32>
    %45 = arith.addf %39, %44 : vector<210x64xf32>
    %c0_59 = arith.constant 0 : index
    %c0_60 = arith.constant 0 : index
    %c1_61 = arith.constant 1 : index
    %c15_62 = arith.constant 15 : index
    %c0_63 = arith.constant 0 : index
    %46 = vector.load %arg1[%c0_59, %c0_60, %c1_61, %c15_62, %c0_63] : memref<1x2x2x232x8xbf16, #tpu.memory_space<vmem>>, vector<1x1x1x210x8xbf16>
    %47 = vector.shape_cast %46 : vector<1x1x1x210x8xbf16> to vector<210x8xbf16>
    %c7 = arith.constant 7 : index
    %c0_64 = arith.constant 0 : index
    %c0_65 = arith.constant 0 : index
    %48 = vector.load %arg2[%c7, %c0_64, %c0_65] : memref<9x8x64xbf16, #tpu.memory_space<vmem>>, vector<1x8x64xbf16>
    %49 = vector.shape_cast %48 : vector<1x8x64xbf16> to vector<8x64xbf16>
    %cst_66 = arith.constant dense<0.000000e+00> : vector<210x64xf32>
    %50 = tpu.matmul %47, %49, %cst_66 {dimension_numbers = #tpu.dot_dimension_numbers<[1], [0], [0], [1], [0, 0, 1, 1], [], []>} : vector<210x8xbf16>, vector<8x64xbf16>, vector<210x64xf32> -> vector<210x64xf32>
    %51 = arith.addf %45, %50 : vector<210x64xf32>
    %c0_67 = arith.constant 0 : index
    %c0_68 = arith.constant 0 : index
    %c0_69 = arith.constant 0 : index
    %c16 = arith.constant 16 : index
    %c0_70 = arith.constant 0 : index
    %52 = vector.load %arg1[%c0_67, %c0_68, %c0_69, %c16, %c0_70] : memref<1x2x2x232x8xbf16, #tpu.memory_space<vmem>>, vector<1x1x1x210x8xbf16>
    %53 = vector.shape_cast %52 : vector<1x1x1x210x8xbf16> to vector<210x8xbf16>
    %c8 = arith.constant 8 : index
    %c0_71 = arith.constant 0 : index
    %c0_72 = arith.constant 0 : index
    %54 = vector.load %arg2[%c8, %c0_71, %c0_72] : memref<9x8x64xbf16, #tpu.memory_space<vmem>>, vector<1x8x64xbf16>
    %55 = vector.shape_cast %54 : vector<1x8x64xbf16> to vector<8x64xbf16>
    %cst_73 = arith.constant dense<0.000000e+00> : vector<210x64xf32>
    %56 = tpu.matmul %53, %55, %cst_73 {dimension_numbers = #tpu.dot_dimension_numbers<[1], [0], [0], [1], [0, 0, 1, 1], [], []>} : vector<210x8xbf16>, vector<8x64xbf16>, vector<210x64xf32> -> vector<210x64xf32>
    %57 = arith.addf %51, %56 : vector<210x64xf32>
    %58 = arith.truncf %57 : vector<210x64xf32> to vector<210x64xbf16>
    %c0_74 = arith.constant 0 : index
    %c0_75 = arith.constant 0 : index
    %c0_76 = arith.constant 0 : index
    %59 = vector.load %arg4[%c0_74, %c0_75, %c0_76] : memref<1x210x64xbf16, #tpu.memory_space<vmem>>, vector<1x210x64xbf16>
    %60 = vector.shape_cast %59 : vector<1x210x64xbf16> to vector<210x64xbf16>
    %61 = vector.shape_cast %58 : vector<210x64xbf16> to vector<1x210x64xbf16>
    tpu.vector_store %arg4[%c0_74, %c0_75, %c0_76], %61 {strides = array<i32>} : memref<1x210x64xbf16, #tpu.memory_space<vmem>>, vector<1x210x64xbf16>,
    %62 = vector.broadcast %0 : vector<210x1xf32> to vector<210x64xf32>
    %63 = arith.mulf %57, %62 : vector<210x64xf32>
    %cst_77 = arith.constant dense<0.000000e+00> : vector<64xf32>
    %64 = vector.multi_reduction <add>, %63, %cst_77 [0] : vector<210x64xf32> to vector<64xf32>
    %65 = vector.shape_cast %64 : vector<64xf32> to vector<1x64xf32>
    %66 = arith.addf %1, %65 : vector<1x64xf32>
    %67 = arith.mulf %63, %57 : vector<210x64xf32>
    %cst_78 = arith.constant dense<0.000000e+00> : vector<64xf32>
    %68 = vector.multi_reduction <add>, %67, %cst_78 [0] : vector<210x64xf32> to vector<64xf32>
    %69 = vector.shape_cast %68 : vector<64xf32> to vector<1x64xf32>
    %70 = arith.addf %2, %69 : vector<1x64xf32>
    %c0_79 = arith.constant 0 : index
    %c0_80 = arith.constant 0 : index
    %c0_81 = arith.constant 0 : index
    %71 = vector.load %arg5[%c0_79, %c0_80, %c0_81] : memref<1x1x64xf32, #tpu.memory_space<vmem>>, vector<1x1x64xf32>
    %72 = vector.shape_cast %71 : vector<1x1x64xf32> to vector<1x64xf32>
    %73 = vector.shape_cast %66 : vector<1x64xf32> to vector<1x1x64xf32>
    tpu.vector_store %arg5[%c0_79, %c0_80, %c0_81], %73 {strides = array<i32>} : memref<1x1x64xf32, #tpu.memory_space<vmem>>, vector<1x1x64xf32>,
    %c0_82 = arith.constant 0 : index
    %c0_83 = arith.constant 0 : index
    %c0_84 = arith.constant 0 : index
    %74 = vector.load %arg6[%c0_82, %c0_83, %c0_84] : memref<1x1x64xf32, #tpu.memory_space<vmem>>, vector<1x1x64xf32>
    %75 = vector.shape_cast %74 : vector<1x1x64xf32> to vector<1x64xf32>
    %76 = vector.shape_cast %70 : vector<1x64xf32> to vector<1x1x64xf32>
    tpu.vector_store %arg6[%c0_82, %c0_83, %c0_84], %76 {strides = array<i32>} : memref<1x1x64xf32, #tpu.memory_space<vmem>>, vector<1x1x64xf32>,
    return
  }
  func.func @transform_0(%arg0: i32) -> (i32, i32, i32, i32, i32) {
    %c0_i32 = arith.constant 0 : i32
    %c0_i32_0 = arith.constant 0 : i32
    %c0_i32_1 = arith.constant 0 : i32
    %c0_i32_2 = arith.constant 0 : i32
    %c0_i32_3 = arith.constant 0 : i32
    return %arg0, %c0_i32, %c0_i32_0, %c0_i32_1, %c0_i32_2 : i32, i32, i32, i32, i32
  }
  func.func @transform_1(%arg0: i32) -> (i32, i32, i32) {
    %c0_i32 = arith.constant 0 : i32
    %c0_i32_0 = arith.constant 0 : i32
    %c0_i32_1 = arith.constant 0 : i32
    %c0_i32_2 = arith.constant 0 : i32
    return %c0_i32, %c0_i32_0, %c0_i32_1 : i32, i32, i32
  }
  func.func @transform_2(%arg0: i32) -> (i32, i32) {
    %c0_i32 = arith.constant 0 : i32
    %c0_i32_0 = arith.constant 0 : i32
    %c0_i32_1 = arith.constant 0 : i32
    return %c0_i32, %c0_i32_0 : i32, i32
  }
  func.func @transform_3(%arg0: i32) -> (i32, i32, i32) {
    %c0_i32 = arith.constant 0 : i32
    %c0_i32_0 = arith.constant 0 : i32
    %c0_i32_1 = arith.constant 0 : i32
    return %arg0, %c0_i32, %c0_i32_0 : i32, i32, i32
  }
  func.func @transform_4(%arg0: i32) -> (i32, i32, i32) {
    %c0_i32 = arith.constant 0 : i32
    %c0_i32_0 = arith.constant 0 : i32
    %c0_i32_1 = arith.constant 0 : i32
    return %arg0, %c0_i32, %c0_i32_0 : i32, i32, i32
  }
  func.func @transform_5(%arg0: i32) -> (i32, i32, i32) {
    %c0_i32 = arith.constant 0 : i32
    %c0_i32_0 = arith.constant 0 : i32
    %c0_i32_1 = arith.constant 0 : i32
    return %arg0, %c0_i32, %c0_i32_0 : i32, i32, i32
  }
}

module attributes {stable_mosaic.version = 11 : i64} {
  func.func @kernel(%arg0: i32, %arg1: memref<1x2x2x72x64xbf16, #tpu.memory_space<vmem>>, %arg2: memref<9x64x128xbf16, #tpu.memory_space<vmem>>, %arg3: memref<56x1xf32, #tpu.memory_space<vmem>>, %arg4: memref<1x56x128xbf16, #tpu.memory_space<vmem>>, %arg5: memref<1x1x128xf32, #tpu.memory_space<vmem>>, %arg6: memref<1x1x128xf32, #tpu.memory_space<vmem>>) attributes {dimension_semantics = [#tpu.dimension_semantics<parallel>], iteration_bounds = array<i64: 2>, scalar_prefetch = 0 : i64, scratch_operands = 0 : i64, tpu.core_type = #tpu.core_type<tc>, window_params = [{transform_indices = @transform_0, window_bounds = array<i64: 1, 2, 2, 72, 64>}, {pipeline_mode = #tpu.pipeline_mode<synchronous>, transform_indices = @transform_1, window_bounds = array<i64: 9, 64, 128>}, {pipeline_mode = #tpu.pipeline_mode<synchronous>, transform_indices = @transform_2, window_bounds = array<i64: 56, 1>}, {transform_indices = @transform_3, window_bounds = array<i64: 1, 56, 128>}, {transform_indices = @transform_4, window_bounds = array<i64: 1, 1, 128>}, {transform_indices = @transform_5, window_bounds = array<i64: 1, 1, 128>}]} {
    %c0 = arith.constant 0 : index
    %c0_0 = arith.constant 0 : index
    %0 = vector.load %arg3[%c0, %c0_0] : memref<56x1xf32, #tpu.memory_space<vmem>>, vector<56x1xf32>
    %cst = arith.constant 0.000000e+00 : f32
    %1 = vector.broadcast %cst : f32 to vector<1x128xf32>
    %cst_1 = arith.constant 0.000000e+00 : f32
    %2 = vector.broadcast %cst_1 : f32 to vector<1x128xf32>
    %cst_2 = arith.constant 0.000000e+00 : f32
    %3 = vector.broadcast %cst_2 : f32 to vector<56x128xf32>
    %c0_3 = arith.constant 0 : index
    %c0_4 = arith.constant 0 : index
    %c0_5 = arith.constant 0 : index
    %c0_6 = arith.constant 0 : index
    %c0_7 = arith.constant 0 : index
    %4 = vector.load %arg1[%c0_3, %c0_4, %c0_5, %c0_6, %c0_7] : memref<1x2x2x72x64xbf16, #tpu.memory_space<vmem>>, vector<1x1x1x56x64xbf16>
    %5 = vector.shape_cast %4 : vector<1x1x1x56x64xbf16> to vector<56x64xbf16>
    %c0_8 = arith.constant 0 : index
    %c0_9 = arith.constant 0 : index
    %c0_10 = arith.constant 0 : index
    %6 = vector.load %arg2[%c0_8, %c0_9, %c0_10] : memref<9x64x128xbf16, #tpu.memory_space<vmem>>, vector<1x64x128xbf16>
    %7 = vector.shape_cast %6 : vector<1x64x128xbf16> to vector<64x128xbf16>
    %cst_11 = arith.constant dense<0.000000e+00> : vector<56x128xf32>
    %8 = tpu.matmul %5, %7, %cst_11 {dimension_numbers = #tpu.dot_dimension_numbers<[1], [0], [0], [1], [0, 0, 1, 1], [], []>} : vector<56x64xbf16>, vector<64x128xbf16>, vector<56x128xf32> -> vector<56x128xf32>
    %9 = arith.addf %3, %8 : vector<56x128xf32>
    %c0_12 = arith.constant 0 : index
    %c0_13 = arith.constant 0 : index
    %c1 = arith.constant 1 : index
    %c0_14 = arith.constant 0 : index
    %c0_15 = arith.constant 0 : index
    %10 = vector.load %arg1[%c0_12, %c0_13, %c1, %c0_14, %c0_15] : memref<1x2x2x72x64xbf16, #tpu.memory_space<vmem>>, vector<1x1x1x56x64xbf16>
    %11 = vector.shape_cast %10 : vector<1x1x1x56x64xbf16> to vector<56x64xbf16>
    %c1_16 = arith.constant 1 : index
    %c0_17 = arith.constant 0 : index
    %c0_18 = arith.constant 0 : index
    %12 = vector.load %arg2[%c1_16, %c0_17, %c0_18] : memref<9x64x128xbf16, #tpu.memory_space<vmem>>, vector<1x64x128xbf16>
    %13 = vector.shape_cast %12 : vector<1x64x128xbf16> to vector<64x128xbf16>
    %cst_19 = arith.constant dense<0.000000e+00> : vector<56x128xf32>
    %14 = tpu.matmul %11, %13, %cst_19 {dimension_numbers = #tpu.dot_dimension_numbers<[1], [0], [0], [1], [0, 0, 1, 1], [], []>} : vector<56x64xbf16>, vector<64x128xbf16>, vector<56x128xf32> -> vector<56x128xf32>
    %15 = arith.addf %9, %14 : vector<56x128xf32>
    %c0_20 = arith.constant 0 : index
    %c0_21 = arith.constant 0 : index
    %c0_22 = arith.constant 0 : index
    %c1_23 = arith.constant 1 : index
    %c0_24 = arith.constant 0 : index
    %16 = vector.load %arg1[%c0_20, %c0_21, %c0_22, %c1_23, %c0_24] : memref<1x2x2x72x64xbf16, #tpu.memory_space<vmem>>, vector<1x1x1x56x64xbf16>
    %17 = vector.shape_cast %16 : vector<1x1x1x56x64xbf16> to vector<56x64xbf16>
    %c2 = arith.constant 2 : index
    %c0_25 = arith.constant 0 : index
    %c0_26 = arith.constant 0 : index
    %18 = vector.load %arg2[%c2, %c0_25, %c0_26] : memref<9x64x128xbf16, #tpu.memory_space<vmem>>, vector<1x64x128xbf16>
    %19 = vector.shape_cast %18 : vector<1x64x128xbf16> to vector<64x128xbf16>
    %cst_27 = arith.constant dense<0.000000e+00> : vector<56x128xf32>
    %20 = tpu.matmul %17, %19, %cst_27 {dimension_numbers = #tpu.dot_dimension_numbers<[1], [0], [0], [1], [0, 0, 1, 1], [], []>} : vector<56x64xbf16>, vector<64x128xbf16>, vector<56x128xf32> -> vector<56x128xf32>
    %21 = arith.addf %15, %20 : vector<56x128xf32>
    %c0_28 = arith.constant 0 : index
    %c1_29 = arith.constant 1 : index
    %c0_30 = arith.constant 0 : index
    %c0_31 = arith.constant 0 : index
    %c0_32 = arith.constant 0 : index
    %22 = vector.load %arg1[%c0_28, %c1_29, %c0_30, %c0_31, %c0_32] : memref<1x2x2x72x64xbf16, #tpu.memory_space<vmem>>, vector<1x1x1x56x64xbf16>
    %23 = vector.shape_cast %22 : vector<1x1x1x56x64xbf16> to vector<56x64xbf16>
    %c3 = arith.constant 3 : index
    %c0_33 = arith.constant 0 : index
    %c0_34 = arith.constant 0 : index
    %24 = vector.load %arg2[%c3, %c0_33, %c0_34] : memref<9x64x128xbf16, #tpu.memory_space<vmem>>, vector<1x64x128xbf16>
    %25 = vector.shape_cast %24 : vector<1x64x128xbf16> to vector<64x128xbf16>
    %cst_35 = arith.constant dense<0.000000e+00> : vector<56x128xf32>
    %26 = tpu.matmul %23, %25, %cst_35 {dimension_numbers = #tpu.dot_dimension_numbers<[1], [0], [0], [1], [0, 0, 1, 1], [], []>} : vector<56x64xbf16>, vector<64x128xbf16>, vector<56x128xf32> -> vector<56x128xf32>
    %27 = arith.addf %21, %26 : vector<56x128xf32>
    %c0_36 = arith.constant 0 : index
    %c1_37 = arith.constant 1 : index
    %c1_38 = arith.constant 1 : index
    %c0_39 = arith.constant 0 : index
    %c0_40 = arith.constant 0 : index
    %28 = vector.load %arg1[%c0_36, %c1_37, %c1_38, %c0_39, %c0_40] : memref<1x2x2x72x64xbf16, #tpu.memory_space<vmem>>, vector<1x1x1x56x64xbf16>
    %29 = vector.shape_cast %28 : vector<1x1x1x56x64xbf16> to vector<56x64xbf16>
    %c4 = arith.constant 4 : index
    %c0_41 = arith.constant 0 : index
    %c0_42 = arith.constant 0 : index
    %30 = vector.load %arg2[%c4, %c0_41, %c0_42] : memref<9x64x128xbf16, #tpu.memory_space<vmem>>, vector<1x64x128xbf16>
    %31 = vector.shape_cast %30 : vector<1x64x128xbf16> to vector<64x128xbf16>
    %cst_43 = arith.constant dense<0.000000e+00> : vector<56x128xf32>
    %32 = tpu.matmul %29, %31, %cst_43 {dimension_numbers = #tpu.dot_dimension_numbers<[1], [0], [0], [1], [0, 0, 1, 1], [], []>} : vector<56x64xbf16>, vector<64x128xbf16>, vector<56x128xf32> -> vector<56x128xf32>
    %33 = arith.addf %27, %32 : vector<56x128xf32>
    %c0_44 = arith.constant 0 : index
    %c1_45 = arith.constant 1 : index
    %c0_46 = arith.constant 0 : index
    %c1_47 = arith.constant 1 : index
    %c0_48 = arith.constant 0 : index
    %34 = vector.load %arg1[%c0_44, %c1_45, %c0_46, %c1_47, %c0_48] : memref<1x2x2x72x64xbf16, #tpu.memory_space<vmem>>, vector<1x1x1x56x64xbf16>
    %35 = vector.shape_cast %34 : vector<1x1x1x56x64xbf16> to vector<56x64xbf16>
    %c5 = arith.constant 5 : index
    %c0_49 = arith.constant 0 : index
    %c0_50 = arith.constant 0 : index
    %36 = vector.load %arg2[%c5, %c0_49, %c0_50] : memref<9x64x128xbf16, #tpu.memory_space<vmem>>, vector<1x64x128xbf16>
    %37 = vector.shape_cast %36 : vector<1x64x128xbf16> to vector<64x128xbf16>
    %cst_51 = arith.constant dense<0.000000e+00> : vector<56x128xf32>
    %38 = tpu.matmul %35, %37, %cst_51 {dimension_numbers = #tpu.dot_dimension_numbers<[1], [0], [0], [1], [0, 0, 1, 1], [], []>} : vector<56x64xbf16>, vector<64x128xbf16>, vector<56x128xf32> -> vector<56x128xf32>
    %39 = arith.addf %33, %38 : vector<56x128xf32>
    %c0_52 = arith.constant 0 : index
    %c0_53 = arith.constant 0 : index
    %c0_54 = arith.constant 0 : index
    %c8 = arith.constant 8 : index
    %c0_55 = arith.constant 0 : index
    %40 = vector.load %arg1[%c0_52, %c0_53, %c0_54, %c8, %c0_55] : memref<1x2x2x72x64xbf16, #tpu.memory_space<vmem>>, vector<1x1x1x56x64xbf16>
    %41 = vector.shape_cast %40 : vector<1x1x1x56x64xbf16> to vector<56x64xbf16>
    %c6 = arith.constant 6 : index
    %c0_56 = arith.constant 0 : index
    %c0_57 = arith.constant 0 : index
    %42 = vector.load %arg2[%c6, %c0_56, %c0_57] : memref<9x64x128xbf16, #tpu.memory_space<vmem>>, vector<1x64x128xbf16>
    %43 = vector.shape_cast %42 : vector<1x64x128xbf16> to vector<64x128xbf16>
    %cst_58 = arith.constant dense<0.000000e+00> : vector<56x128xf32>
    %44 = tpu.matmul %41, %43, %cst_58 {dimension_numbers = #tpu.dot_dimension_numbers<[1], [0], [0], [1], [0, 0, 1, 1], [], []>} : vector<56x64xbf16>, vector<64x128xbf16>, vector<56x128xf32> -> vector<56x128xf32>
    %45 = arith.addf %39, %44 : vector<56x128xf32>
    %c0_59 = arith.constant 0 : index
    %c0_60 = arith.constant 0 : index
    %c1_61 = arith.constant 1 : index
    %c8_62 = arith.constant 8 : index
    %c0_63 = arith.constant 0 : index
    %46 = vector.load %arg1[%c0_59, %c0_60, %c1_61, %c8_62, %c0_63] : memref<1x2x2x72x64xbf16, #tpu.memory_space<vmem>>, vector<1x1x1x56x64xbf16>
    %47 = vector.shape_cast %46 : vector<1x1x1x56x64xbf16> to vector<56x64xbf16>
    %c7 = arith.constant 7 : index
    %c0_64 = arith.constant 0 : index
    %c0_65 = arith.constant 0 : index
    %48 = vector.load %arg2[%c7, %c0_64, %c0_65] : memref<9x64x128xbf16, #tpu.memory_space<vmem>>, vector<1x64x128xbf16>
    %49 = vector.shape_cast %48 : vector<1x64x128xbf16> to vector<64x128xbf16>
    %cst_66 = arith.constant dense<0.000000e+00> : vector<56x128xf32>
    %50 = tpu.matmul %47, %49, %cst_66 {dimension_numbers = #tpu.dot_dimension_numbers<[1], [0], [0], [1], [0, 0, 1, 1], [], []>} : vector<56x64xbf16>, vector<64x128xbf16>, vector<56x128xf32> -> vector<56x128xf32>
    %51 = arith.addf %45, %50 : vector<56x128xf32>
    %c0_67 = arith.constant 0 : index
    %c0_68 = arith.constant 0 : index
    %c0_69 = arith.constant 0 : index
    %c9 = arith.constant 9 : index
    %c0_70 = arith.constant 0 : index
    %52 = vector.load %arg1[%c0_67, %c0_68, %c0_69, %c9, %c0_70] : memref<1x2x2x72x64xbf16, #tpu.memory_space<vmem>>, vector<1x1x1x56x64xbf16>
    %53 = vector.shape_cast %52 : vector<1x1x1x56x64xbf16> to vector<56x64xbf16>
    %c8_71 = arith.constant 8 : index
    %c0_72 = arith.constant 0 : index
    %c0_73 = arith.constant 0 : index
    %54 = vector.load %arg2[%c8_71, %c0_72, %c0_73] : memref<9x64x128xbf16, #tpu.memory_space<vmem>>, vector<1x64x128xbf16>
    %55 = vector.shape_cast %54 : vector<1x64x128xbf16> to vector<64x128xbf16>
    %cst_74 = arith.constant dense<0.000000e+00> : vector<56x128xf32>
    %56 = tpu.matmul %53, %55, %cst_74 {dimension_numbers = #tpu.dot_dimension_numbers<[1], [0], [0], [1], [0, 0, 1, 1], [], []>} : vector<56x64xbf16>, vector<64x128xbf16>, vector<56x128xf32> -> vector<56x128xf32>
    %57 = arith.addf %51, %56 : vector<56x128xf32>
    %58 = arith.truncf %57 : vector<56x128xf32> to vector<56x128xbf16>
    %c0_75 = arith.constant 0 : index
    %c0_76 = arith.constant 0 : index
    %c0_77 = arith.constant 0 : index
    %59 = vector.load %arg4[%c0_75, %c0_76, %c0_77] : memref<1x56x128xbf16, #tpu.memory_space<vmem>>, vector<1x56x128xbf16>
    %60 = vector.shape_cast %59 : vector<1x56x128xbf16> to vector<56x128xbf16>
    %61 = vector.shape_cast %58 : vector<56x128xbf16> to vector<1x56x128xbf16>
    tpu.vector_store %arg4[%c0_75, %c0_76, %c0_77], %61 {strides = array<i32>} : memref<1x56x128xbf16, #tpu.memory_space<vmem>>, vector<1x56x128xbf16>,
    %62 = vector.broadcast %0 : vector<56x1xf32> to vector<56x128xf32>
    %63 = arith.mulf %57, %62 : vector<56x128xf32>
    %cst_78 = arith.constant dense<0.000000e+00> : vector<128xf32>
    %64 = vector.multi_reduction <add>, %63, %cst_78 [0] : vector<56x128xf32> to vector<128xf32>
    %65 = vector.shape_cast %64 : vector<128xf32> to vector<1x128xf32>
    %66 = arith.addf %1, %65 : vector<1x128xf32>
    %67 = arith.mulf %63, %57 : vector<56x128xf32>
    %cst_79 = arith.constant dense<0.000000e+00> : vector<128xf32>
    %68 = vector.multi_reduction <add>, %67, %cst_79 [0] : vector<56x128xf32> to vector<128xf32>
    %69 = vector.shape_cast %68 : vector<128xf32> to vector<1x128xf32>
    %70 = arith.addf %2, %69 : vector<1x128xf32>
    %c0_80 = arith.constant 0 : index
    %c0_81 = arith.constant 0 : index
    %c0_82 = arith.constant 0 : index
    %71 = vector.load %arg5[%c0_80, %c0_81, %c0_82] : memref<1x1x128xf32, #tpu.memory_space<vmem>>, vector<1x1x128xf32>
    %72 = vector.shape_cast %71 : vector<1x1x128xf32> to vector<1x128xf32>
    %73 = vector.shape_cast %66 : vector<1x128xf32> to vector<1x1x128xf32>
    tpu.vector_store %arg5[%c0_80, %c0_81, %c0_82], %73 {strides = array<i32>} : memref<1x1x128xf32, #tpu.memory_space<vmem>>, vector<1x1x128xf32>,
    %c0_83 = arith.constant 0 : index
    %c0_84 = arith.constant 0 : index
    %c0_85 = arith.constant 0 : index
    %74 = vector.load %arg6[%c0_83, %c0_84, %c0_85] : memref<1x1x128xf32, #tpu.memory_space<vmem>>, vector<1x1x128xf32>
    %75 = vector.shape_cast %74 : vector<1x1x128xf32> to vector<1x128xf32>
    %76 = vector.shape_cast %70 : vector<1x128xf32> to vector<1x1x128xf32>
    tpu.vector_store %arg6[%c0_83, %c0_84, %c0_85], %76 {strides = array<i32>} : memref<1x1x128xf32, #tpu.memory_space<vmem>>, vector<1x1x128xf32>,
    return
  }
  func.func @transform_0(%arg0: i32) -> (i32, i32, i32, i32, i32) {
    %c0_i32 = arith.constant 0 : i32
    %c0_i32_0 = arith.constant 0 : i32
    %c0_i32_1 = arith.constant 0 : i32
    %c0_i32_2 = arith.constant 0 : i32
    %c0_i32_3 = arith.constant 0 : i32
    return %arg0, %c0_i32, %c0_i32_0, %c0_i32_1, %c0_i32_2 : i32, i32, i32, i32, i32
  }
  func.func @transform_1(%arg0: i32) -> (i32, i32, i32) {
    %c0_i32 = arith.constant 0 : i32
    %c0_i32_0 = arith.constant 0 : i32
    %c0_i32_1 = arith.constant 0 : i32
    %c0_i32_2 = arith.constant 0 : i32
    return %c0_i32, %c0_i32_0, %c0_i32_1 : i32, i32, i32
  }
  func.func @transform_2(%arg0: i32) -> (i32, i32) {
    %c0_i32 = arith.constant 0 : i32
    %c0_i32_0 = arith.constant 0 : i32
    %c0_i32_1 = arith.constant 0 : i32
    return %c0_i32, %c0_i32_0 : i32, i32
  }
  func.func @transform_3(%arg0: i32) -> (i32, i32, i32) {
    %c0_i32 = arith.constant 0 : i32
    %c0_i32_0 = arith.constant 0 : i32
    %c0_i32_1 = arith.constant 0 : i32
    return %arg0, %c0_i32, %c0_i32_0 : i32, i32, i32
  }
  func.func @transform_4(%arg0: i32) -> (i32, i32, i32) {
    %c0_i32 = arith.constant 0 : i32
    %c0_i32_0 = arith.constant 0 : i32
    %c0_i32_1 = arith.constant 0 : i32
    return %arg0, %c0_i32, %c0_i32_0 : i32, i32, i32
  }
  func.func @transform_5(%arg0: i32) -> (i32, i32, i32) {
    %c0_i32 = arith.constant 0 : i32
    %c0_i32_0 = arith.constant 0 : i32
    %c0_i32_1 = arith.constant 0 : i32
    return %arg0, %c0_i32, %c0_i32_0 : i32, i32, i32
  }
}

module attributes {stable_mosaic.version = 11 : i64} {
  func.func @kernel(%arg0: i32, %arg1: memref<1x2x2x32x128xbf16, #tpu.memory_space<vmem>>, %arg2: memref<9x128x256xbf16, #tpu.memory_space<vmem>>, %arg3: memref<20x1xf32, #tpu.memory_space<vmem>>, %arg4: memref<1x20x256xbf16, #tpu.memory_space<vmem>>, %arg5: memref<1x1x256xf32, #tpu.memory_space<vmem>>, %arg6: memref<1x1x256xf32, #tpu.memory_space<vmem>>) attributes {dimension_semantics = [#tpu.dimension_semantics<parallel>], iteration_bounds = array<i64: 2>, scalar_prefetch = 0 : i64, scratch_operands = 0 : i64, tpu.core_type = #tpu.core_type<tc>, window_params = [{transform_indices = @transform_0, window_bounds = array<i64: 1, 2, 2, 32, 128>}, {pipeline_mode = #tpu.pipeline_mode<synchronous>, transform_indices = @transform_1, window_bounds = array<i64: 9, 128, 256>}, {pipeline_mode = #tpu.pipeline_mode<synchronous>, transform_indices = @transform_2, window_bounds = array<i64: 20, 1>}, {transform_indices = @transform_3, window_bounds = array<i64: 1, 20, 256>}, {transform_indices = @transform_4, window_bounds = array<i64: 1, 1, 256>}, {transform_indices = @transform_5, window_bounds = array<i64: 1, 1, 256>}]} {
    %c0 = arith.constant 0 : index
    %c0_0 = arith.constant 0 : index
    %0 = vector.load %arg3[%c0, %c0_0] : memref<20x1xf32, #tpu.memory_space<vmem>>, vector<20x1xf32>
    %cst = arith.constant 0.000000e+00 : f32
    %1 = vector.broadcast %cst : f32 to vector<1x256xf32>
    %cst_1 = arith.constant 0.000000e+00 : f32
    %2 = vector.broadcast %cst_1 : f32 to vector<1x256xf32>
    %cst_2 = arith.constant 0.000000e+00 : f32
    %3 = vector.broadcast %cst_2 : f32 to vector<20x256xf32>
    %c0_3 = arith.constant 0 : index
    %c0_4 = arith.constant 0 : index
    %c0_5 = arith.constant 0 : index
    %c0_6 = arith.constant 0 : index
    %c0_7 = arith.constant 0 : index
    %4 = vector.load %arg1[%c0_3, %c0_4, %c0_5, %c0_6, %c0_7] : memref<1x2x2x32x128xbf16, #tpu.memory_space<vmem>>, vector<1x1x1x20x128xbf16>
    %5 = vector.shape_cast %4 : vector<1x1x1x20x128xbf16> to vector<20x128xbf16>
    %c0_8 = arith.constant 0 : index
    %c0_9 = arith.constant 0 : index
    %c0_10 = arith.constant 0 : index
    %6 = vector.load %arg2[%c0_8, %c0_9, %c0_10] : memref<9x128x256xbf16, #tpu.memory_space<vmem>>, vector<1x128x256xbf16>
    %7 = vector.shape_cast %6 : vector<1x128x256xbf16> to vector<128x256xbf16>
    %cst_11 = arith.constant dense<0.000000e+00> : vector<20x256xf32>
    %8 = tpu.matmul %5, %7, %cst_11 {dimension_numbers = #tpu.dot_dimension_numbers<[1], [0], [0], [1], [0, 0, 1, 1], [], []>} : vector<20x128xbf16>, vector<128x256xbf16>, vector<20x256xf32> -> vector<20x256xf32>
    %9 = arith.addf %3, %8 : vector<20x256xf32>
    %c0_12 = arith.constant 0 : index
    %c0_13 = arith.constant 0 : index
    %c1 = arith.constant 1 : index
    %c0_14 = arith.constant 0 : index
    %c0_15 = arith.constant 0 : index
    %10 = vector.load %arg1[%c0_12, %c0_13, %c1, %c0_14, %c0_15] : memref<1x2x2x32x128xbf16, #tpu.memory_space<vmem>>, vector<1x1x1x20x128xbf16>
    %11 = vector.shape_cast %10 : vector<1x1x1x20x128xbf16> to vector<20x128xbf16>
    %c1_16 = arith.constant 1 : index
    %c0_17 = arith.constant 0 : index
    %c0_18 = arith.constant 0 : index
    %12 = vector.load %arg2[%c1_16, %c0_17, %c0_18] : memref<9x128x256xbf16, #tpu.memory_space<vmem>>, vector<1x128x256xbf16>
    %13 = vector.shape_cast %12 : vector<1x128x256xbf16> to vector<128x256xbf16>
    %cst_19 = arith.constant dense<0.000000e+00> : vector<20x256xf32>
    %14 = tpu.matmul %11, %13, %cst_19 {dimension_numbers = #tpu.dot_dimension_numbers<[1], [0], [0], [1], [0, 0, 1, 1], [], []>} : vector<20x128xbf16>, vector<128x256xbf16>, vector<20x256xf32> -> vector<20x256xf32>
    %15 = arith.addf %9, %14 : vector<20x256xf32>
    %c0_20 = arith.constant 0 : index
    %c0_21 = arith.constant 0 : index
    %c0_22 = arith.constant 0 : index
    %c1_23 = arith.constant 1 : index
    %c0_24 = arith.constant 0 : index
    %16 = vector.load %arg1[%c0_20, %c0_21, %c0_22, %c1_23, %c0_24] : memref<1x2x2x32x128xbf16, #tpu.memory_space<vmem>>, vector<1x1x1x20x128xbf16>
    %17 = vector.shape_cast %16 : vector<1x1x1x20x128xbf16> to vector<20x128xbf16>
    %c2 = arith.constant 2 : index
    %c0_25 = arith.constant 0 : index
    %c0_26 = arith.constant 0 : index
    %18 = vector.load %arg2[%c2, %c0_25, %c0_26] : memref<9x128x256xbf16, #tpu.memory_space<vmem>>, vector<1x128x256xbf16>
    %19 = vector.shape_cast %18 : vector<1x128x256xbf16> to vector<128x256xbf16>
    %cst_27 = arith.constant dense<0.000000e+00> : vector<20x256xf32>
    %20 = tpu.matmul %17, %19, %cst_27 {dimension_numbers = #tpu.dot_dimension_numbers<[1], [0], [0], [1], [0, 0, 1, 1], [], []>} : vector<20x128xbf16>, vector<128x256xbf16>, vector<20x256xf32> -> vector<20x256xf32>
    %21 = arith.addf %15, %20 : vector<20x256xf32>
    %c0_28 = arith.constant 0 : index
    %c1_29 = arith.constant 1 : index
    %c0_30 = arith.constant 0 : index
    %c0_31 = arith.constant 0 : index
    %c0_32 = arith.constant 0 : index
    %22 = vector.load %arg1[%c0_28, %c1_29, %c0_30, %c0_31, %c0_32] : memref<1x2x2x32x128xbf16, #tpu.memory_space<vmem>>, vector<1x1x1x20x128xbf16>
    %23 = vector.shape_cast %22 : vector<1x1x1x20x128xbf16> to vector<20x128xbf16>
    %c3 = arith.constant 3 : index
    %c0_33 = arith.constant 0 : index
    %c0_34 = arith.constant 0 : index
    %24 = vector.load %arg2[%c3, %c0_33, %c0_34] : memref<9x128x256xbf16, #tpu.memory_space<vmem>>, vector<1x128x256xbf16>
    %25 = vector.shape_cast %24 : vector<1x128x256xbf16> to vector<128x256xbf16>
    %cst_35 = arith.constant dense<0.000000e+00> : vector<20x256xf32>
    %26 = tpu.matmul %23, %25, %cst_35 {dimension_numbers = #tpu.dot_dimension_numbers<[1], [0], [0], [1], [0, 0, 1, 1], [], []>} : vector<20x128xbf16>, vector<128x256xbf16>, vector<20x256xf32> -> vector<20x256xf32>
    %27 = arith.addf %21, %26 : vector<20x256xf32>
    %c0_36 = arith.constant 0 : index
    %c1_37 = arith.constant 1 : index
    %c1_38 = arith.constant 1 : index
    %c0_39 = arith.constant 0 : index
    %c0_40 = arith.constant 0 : index
    %28 = vector.load %arg1[%c0_36, %c1_37, %c1_38, %c0_39, %c0_40] : memref<1x2x2x32x128xbf16, #tpu.memory_space<vmem>>, vector<1x1x1x20x128xbf16>
    %29 = vector.shape_cast %28 : vector<1x1x1x20x128xbf16> to vector<20x128xbf16>
    %c4 = arith.constant 4 : index
    %c0_41 = arith.constant 0 : index
    %c0_42 = arith.constant 0 : index
    %30 = vector.load %arg2[%c4, %c0_41, %c0_42] : memref<9x128x256xbf16, #tpu.memory_space<vmem>>, vector<1x128x256xbf16>
    %31 = vector.shape_cast %30 : vector<1x128x256xbf16> to vector<128x256xbf16>
    %cst_43 = arith.constant dense<0.000000e+00> : vector<20x256xf32>
    %32 = tpu.matmul %29, %31, %cst_43 {dimension_numbers = #tpu.dot_dimension_numbers<[1], [0], [0], [1], [0, 0, 1, 1], [], []>} : vector<20x128xbf16>, vector<128x256xbf16>, vector<20x256xf32> -> vector<20x256xf32>
    %33 = arith.addf %27, %32 : vector<20x256xf32>
    %c0_44 = arith.constant 0 : index
    %c1_45 = arith.constant 1 : index
    %c0_46 = arith.constant 0 : index
    %c1_47 = arith.constant 1 : index
    %c0_48 = arith.constant 0 : index
    %34 = vector.load %arg1[%c0_44, %c1_45, %c0_46, %c1_47, %c0_48] : memref<1x2x2x32x128xbf16, #tpu.memory_space<vmem>>, vector<1x1x1x20x128xbf16>
    %35 = vector.shape_cast %34 : vector<1x1x1x20x128xbf16> to vector<20x128xbf16>
    %c5 = arith.constant 5 : index
    %c0_49 = arith.constant 0 : index
    %c0_50 = arith.constant 0 : index
    %36 = vector.load %arg2[%c5, %c0_49, %c0_50] : memref<9x128x256xbf16, #tpu.memory_space<vmem>>, vector<1x128x256xbf16>
    %37 = vector.shape_cast %36 : vector<1x128x256xbf16> to vector<128x256xbf16>
    %cst_51 = arith.constant dense<0.000000e+00> : vector<20x256xf32>
    %38 = tpu.matmul %35, %37, %cst_51 {dimension_numbers = #tpu.dot_dimension_numbers<[1], [0], [0], [1], [0, 0, 1, 1], [], []>} : vector<20x128xbf16>, vector<128x256xbf16>, vector<20x256xf32> -> vector<20x256xf32>
    %39 = arith.addf %33, %38 : vector<20x256xf32>
    %c0_52 = arith.constant 0 : index
    %c0_53 = arith.constant 0 : index
    %c0_54 = arith.constant 0 : index
    %c5_55 = arith.constant 5 : index
    %c0_56 = arith.constant 0 : index
    %40 = vector.load %arg1[%c0_52, %c0_53, %c0_54, %c5_55, %c0_56] : memref<1x2x2x32x128xbf16, #tpu.memory_space<vmem>>, vector<1x1x1x20x128xbf16>
    %41 = vector.shape_cast %40 : vector<1x1x1x20x128xbf16> to vector<20x128xbf16>
    %c6 = arith.constant 6 : index
    %c0_57 = arith.constant 0 : index
    %c0_58 = arith.constant 0 : index
    %42 = vector.load %arg2[%c6, %c0_57, %c0_58] : memref<9x128x256xbf16, #tpu.memory_space<vmem>>, vector<1x128x256xbf16>
    %43 = vector.shape_cast %42 : vector<1x128x256xbf16> to vector<128x256xbf16>
    %cst_59 = arith.constant dense<0.000000e+00> : vector<20x256xf32>
    %44 = tpu.matmul %41, %43, %cst_59 {dimension_numbers = #tpu.dot_dimension_numbers<[1], [0], [0], [1], [0, 0, 1, 1], [], []>} : vector<20x128xbf16>, vector<128x256xbf16>, vector<20x256xf32> -> vector<20x256xf32>
    %45 = arith.addf %39, %44 : vector<20x256xf32>
    %c0_60 = arith.constant 0 : index
    %c0_61 = arith.constant 0 : index
    %c1_62 = arith.constant 1 : index
    %c5_63 = arith.constant 5 : index
    %c0_64 = arith.constant 0 : index
    %46 = vector.load %arg1[%c0_60, %c0_61, %c1_62, %c5_63, %c0_64] : memref<1x2x2x32x128xbf16, #tpu.memory_space<vmem>>, vector<1x1x1x20x128xbf16>
    %47 = vector.shape_cast %46 : vector<1x1x1x20x128xbf16> to vector<20x128xbf16>
    %c7 = arith.constant 7 : index
    %c0_65 = arith.constant 0 : index
    %c0_66 = arith.constant 0 : index
    %48 = vector.load %arg2[%c7, %c0_65, %c0_66] : memref<9x128x256xbf16, #tpu.memory_space<vmem>>, vector<1x128x256xbf16>
    %49 = vector.shape_cast %48 : vector<1x128x256xbf16> to vector<128x256xbf16>
    %cst_67 = arith.constant dense<0.000000e+00> : vector<20x256xf32>
    %50 = tpu.matmul %47, %49, %cst_67 {dimension_numbers = #tpu.dot_dimension_numbers<[1], [0], [0], [1], [0, 0, 1, 1], [], []>} : vector<20x128xbf16>, vector<128x256xbf16>, vector<20x256xf32> -> vector<20x256xf32>
    %51 = arith.addf %45, %50 : vector<20x256xf32>
    %c0_68 = arith.constant 0 : index
    %c0_69 = arith.constant 0 : index
    %c0_70 = arith.constant 0 : index
    %c6_71 = arith.constant 6 : index
    %c0_72 = arith.constant 0 : index
    %52 = vector.load %arg1[%c0_68, %c0_69, %c0_70, %c6_71, %c0_72] : memref<1x2x2x32x128xbf16, #tpu.memory_space<vmem>>, vector<1x1x1x20x128xbf16>
    %53 = vector.shape_cast %52 : vector<1x1x1x20x128xbf16> to vector<20x128xbf16>
    %c8 = arith.constant 8 : index
    %c0_73 = arith.constant 0 : index
    %c0_74 = arith.constant 0 : index
    %54 = vector.load %arg2[%c8, %c0_73, %c0_74] : memref<9x128x256xbf16, #tpu.memory_space<vmem>>, vector<1x128x256xbf16>
    %55 = vector.shape_cast %54 : vector<1x128x256xbf16> to vector<128x256xbf16>
    %cst_75 = arith.constant dense<0.000000e+00> : vector<20x256xf32>
    %56 = tpu.matmul %53, %55, %cst_75 {dimension_numbers = #tpu.dot_dimension_numbers<[1], [0], [0], [1], [0, 0, 1, 1], [], []>} : vector<20x128xbf16>, vector<128x256xbf16>, vector<20x256xf32> -> vector<20x256xf32>
    %57 = arith.addf %51, %56 : vector<20x256xf32>
    %58 = arith.truncf %57 : vector<20x256xf32> to vector<20x256xbf16>
    %c0_76 = arith.constant 0 : index
    %c0_77 = arith.constant 0 : index
    %c0_78 = arith.constant 0 : index
    %59 = vector.load %arg4[%c0_76, %c0_77, %c0_78] : memref<1x20x256xbf16, #tpu.memory_space<vmem>>, vector<1x20x256xbf16>
    %60 = vector.shape_cast %59 : vector<1x20x256xbf16> to vector<20x256xbf16>
    %61 = vector.shape_cast %58 : vector<20x256xbf16> to vector<1x20x256xbf16>
    tpu.vector_store %arg4[%c0_76, %c0_77, %c0_78], %61 {strides = array<i32>} : memref<1x20x256xbf16, #tpu.memory_space<vmem>>, vector<1x20x256xbf16>,
    %62 = vector.broadcast %0 : vector<20x1xf32> to vector<20x256xf32>
    %63 = arith.mulf %57, %62 : vector<20x256xf32>
    %cst_79 = arith.constant dense<0.000000e+00> : vector<256xf32>
    %64 = vector.multi_reduction <add>, %63, %cst_79 [0] : vector<20x256xf32> to vector<256xf32>
    %65 = vector.shape_cast %64 : vector<256xf32> to vector<1x256xf32>
    %66 = arith.addf %1, %65 : vector<1x256xf32>
    %67 = arith.mulf %63, %57 : vector<20x256xf32>
    %cst_80 = arith.constant dense<0.000000e+00> : vector<256xf32>
    %68 = vector.multi_reduction <add>, %67, %cst_80 [0] : vector<20x256xf32> to vector<256xf32>
    %69 = vector.shape_cast %68 : vector<256xf32> to vector<1x256xf32>
    %70 = arith.addf %2, %69 : vector<1x256xf32>
    %c0_81 = arith.constant 0 : index
    %c0_82 = arith.constant 0 : index
    %c0_83 = arith.constant 0 : index
    %71 = vector.load %arg5[%c0_81, %c0_82, %c0_83] : memref<1x1x256xf32, #tpu.memory_space<vmem>>, vector<1x1x256xf32>
    %72 = vector.shape_cast %71 : vector<1x1x256xf32> to vector<1x256xf32>
    %73 = vector.shape_cast %66 : vector<1x256xf32> to vector<1x1x256xf32>
    tpu.vector_store %arg5[%c0_81, %c0_82, %c0_83], %73 {strides = array<i32>} : memref<1x1x256xf32, #tpu.memory_space<vmem>>, vector<1x1x256xf32>,
    %c0_84 = arith.constant 0 : index
    %c0_85 = arith.constant 0 : index
    %c0_86 = arith.constant 0 : index
    %74 = vector.load %arg6[%c0_84, %c0_85, %c0_86] : memref<1x1x256xf32, #tpu.memory_space<vmem>>, vector<1x1x256xf32>
    %75 = vector.shape_cast %74 : vector<1x1x256xf32> to vector<1x256xf32>
    %76 = vector.shape_cast %70 : vector<1x256xf32> to vector<1x1x256xf32>
    tpu.vector_store %arg6[%c0_84, %c0_85, %c0_86], %76 {strides = array<i32>} : memref<1x1x256xf32, #tpu.memory_space<vmem>>, vector<1x1x256xf32>,
    return
  }
  func.func @transform_0(%arg0: i32) -> (i32, i32, i32, i32, i32) {
    %c0_i32 = arith.constant 0 : i32
    %c0_i32_0 = arith.constant 0 : i32
    %c0_i32_1 = arith.constant 0 : i32
    %c0_i32_2 = arith.constant 0 : i32
    %c0_i32_3 = arith.constant 0 : i32
    return %arg0, %c0_i32, %c0_i32_0, %c0_i32_1, %c0_i32_2 : i32, i32, i32, i32, i32
  }
  func.func @transform_1(%arg0: i32) -> (i32, i32, i32) {
    %c0_i32 = arith.constant 0 : i32
    %c0_i32_0 = arith.constant 0 : i32
    %c0_i32_1 = arith.constant 0 : i32
    %c0_i32_2 = arith.constant 0 : i32
    return %c0_i32, %c0_i32_0, %c0_i32_1 : i32, i32, i32
  }
  func.func @transform_2(%arg0: i32) -> (i32, i32) {
    %c0_i32 = arith.constant 0 : i32
    %c0_i32_0 = arith.constant 0 : i32
    %c0_i32_1 = arith.constant 0 : i32
    return %c0_i32, %c0_i32_0 : i32, i32
  }
  func.func @transform_3(%arg0: i32) -> (i32, i32, i32) {
    %c0_i32 = arith.constant 0 : i32
    %c0_i32_0 = arith.constant 0 : i32
    %c0_i32_1 = arith.constant 0 : i32
    return %arg0, %c0_i32, %c0_i32_0 : i32, i32, i32
  }
  func.func @transform_4(%arg0: i32) -> (i32, i32, i32) {
    %c0_i32 = arith.constant 0 : i32
    %c0_i32_0 = arith.constant 0 : i32
    %c0_i32_1 = arith.constant 0 : i32
    return %arg0, %c0_i32, %c0_i32_0 : i32, i32, i32
  }
  func.func @transform_5(%arg0: i32) -> (i32, i32, i32) {
    %c0_i32 = arith.constant 0 : i32
    %c0_i32_0 = arith.constant 0 : i32
    %c0_i32_1 = arith.constant 0 : i32
    return %arg0, %c0_i32, %c0_i32_0 : i32, i32, i32
  }
}

module attributes {stable_mosaic.version = 11 : i64} {
  func.func @kernel(%arg0: i32, %arg1: memref<1x20x256xbf16, #tpu.memory_space<vmem>>, %arg2: memref<1x256xf32, #tpu.memory_space<vmem>>, %arg3: memref<1x256xf32, #tpu.memory_space<vmem>>, %arg4: memref<20x256xf32, #tpu.memory_space<vmem>>, %arg5: memref<1x1x128xf32, #tpu.memory_space<vmem>>) attributes {dimension_semantics = [#tpu.dimension_semantics<parallel>], iteration_bounds = array<i64: 2>, scalar_prefetch = 0 : i64, scratch_operands = 0 : i64, tpu.core_type = #tpu.core_type<tc>, window_params = [{transform_indices = @transform_0, window_bounds = array<i64: 1, 20, 256>}, {pipeline_mode = #tpu.pipeline_mode<synchronous>, transform_indices = @transform_1, window_bounds = array<i64: 1, 256>}, {pipeline_mode = #tpu.pipeline_mode<synchronous>, transform_indices = @transform_2, window_bounds = array<i64: 1, 256>}, {pipeline_mode = #tpu.pipeline_mode<synchronous>, transform_indices = @transform_3, window_bounds = array<i64: 20, 256>}, {transform_indices = @transform_4, window_bounds = array<i64: 1, 1, 128>}]} {
    %c0 = arith.constant 0 : index
    %c0_0 = arith.constant 0 : index
    %0 = vector.load %arg2[%c0, %c0_0] : memref<1x256xf32, #tpu.memory_space<vmem>>, vector<1x256xf32>
    %c0_1 = arith.constant 0 : index
    %c0_2 = arith.constant 0 : index
    %1 = vector.load %arg3[%c0_1, %c0_2] : memref<1x256xf32, #tpu.memory_space<vmem>>, vector<1x256xf32>
    %c0_3 = arith.constant 0 : index
    %c0_4 = arith.constant 0 : index
    %2 = vector.load %arg4[%c0_3, %c0_4] : memref<20x256xf32, #tpu.memory_space<vmem>>, vector<20x256xf32>
    %c0_5 = arith.constant 0 : index
    %c0_6 = arith.constant 0 : index
    %c0_7 = arith.constant 0 : index
    %3 = vector.load %arg1[%c0_5, %c0_6, %c0_7] : memref<1x20x256xbf16, #tpu.memory_space<vmem>>, vector<1x20x256xbf16>
    %4 = vector.shape_cast %3 : vector<1x20x256xbf16> to vector<20x256xbf16>
    %5 = arith.extf %4 : vector<20x256xbf16> to vector<20x256xf32>
    %6 = vector.broadcast %0 : vector<1x256xf32> to vector<20x256xf32>
    %7 = arith.mulf %5, %6 : vector<20x256xf32>
    %8 = vector.broadcast %1 : vector<1x256xf32> to vector<20x256xf32>
    %9 = arith.addf %7, %8 : vector<20x256xf32>
    %cst = arith.constant 0.000000e+00 : f32
    %10 = vector.broadcast %cst : f32 to vector<20x256xf32>
    %11 = arith.cmpf ogt, %9, %10 : vector<20x256xf32>
    %cst_8 = arith.constant 2.000000e-01 : f32
    %12 = vector.broadcast %cst_8 : f32 to vector<20x256xf32>
    %13 = arith.mulf %12, %9 : vector<20x256xf32>
    %14 = arith.select %11, %9, %13 : vector<20x256xi1>, vector<20x256xf32>
    %15 = arith.mulf %14, %2 : vector<20x256xf32>
    %16 = vector.shape_cast %15 : vector<20x256xf32> to vector<1x20x256xf32>
    %cst_9 = arith.constant dense<0.000000e+00> : vector<1xf32>
    %17 = vector.multi_reduction <add>, %16, %cst_9 [1, 2] : vector<1x20x256xf32> to vector<1xf32>
    %18 = vector.shape_cast %17 : vector<1xf32> to vector<1x1x1xf32>
    %19 = vector.extract %18[0, 0, 0] : f32 from vector<1x1x1xf32>
    %cst_10 = arith.constant 0.000000e+00 : f32
    %20 = vector.broadcast %cst_10 : f32 to vector<1x128xf32>
    %21 = vector.broadcast %19 : f32 to vector<1x128xf32>
    %22 = arith.addf %20, %21 : vector<1x128xf32>
    %c0_11 = arith.constant 0 : index
    %c0_12 = arith.constant 0 : index
    %c0_13 = arith.constant 0 : index
    %23 = vector.load %arg5[%c0_11, %c0_12, %c0_13] : memref<1x1x128xf32, #tpu.memory_space<vmem>>, vector<1x1x128xf32>
    %24 = vector.shape_cast %23 : vector<1x1x128xf32> to vector<1x128xf32>
    %25 = vector.shape_cast %22 : vector<1x128xf32> to vector<1x1x128xf32>
    tpu.vector_store %arg5[%c0_11, %c0_12, %c0_13], %25 {strides = array<i32>} : memref<1x1x128xf32, #tpu.memory_space<vmem>>, vector<1x1x128xf32>,
    return
  }
  func.func @transform_0(%arg0: i32) -> (i32, i32, i32) {
    %c0_i32 = arith.constant 0 : i32
    %c0_i32_0 = arith.constant 0 : i32
    %c0_i32_1 = arith.constant 0 : i32
    return %arg0, %c0_i32, %c0_i32_0 : i32, i32, i32
  }
  func.func @transform_1(%arg0: i32) -> (i32, i32) {
    %c0_i32 = arith.constant 0 : i32
    %c0_i32_0 = arith.constant 0 : i32
    %c0_i32_1 = arith.constant 0 : i32
    return %c0_i32, %c0_i32_0 : i32, i32
  }
  func.func @transform_2(%arg0: i32) -> (i32, i32) {
    %c0_i32 = arith.constant 0 : i32
    %c0_i32_0 = arith.constant 0 : i32
    %c0_i32_1 = arith.constant 0 : i32
    return %c0_i32, %c0_i32_0 : i32, i32
  }
  func.func @transform_3(%arg0: i32) -> (i32, i32) {
    %c0_i32 = arith.constant 0 : i32
    %c0_i32_0 = arith.constant 0 : i32
    %c0_i32_1 = arith.constant 0 : i32
    return %c0_i32, %c0_i32_0 : i32, i32
  }
  func.func @transform_4(%arg0: i32) -> (i32, i32, i32) {
    %c0_i32 = arith.constant 0 : i32
    %c0_i32_0 = arith.constant 0 : i32
    %c0_i32_1 = arith.constant 0 : i32
    return %arg0, %c0_i32, %c0_i32_0 : i32, i32, i32
  }
}

</mosaic_0001>

<bundles_post_ra>
// kernel: discriminator_forward.5
= control target key start
LH: loop header
LB: loop body
LE: loop exit
PB: predicated region body
PF: predicated region fallthrough
CT: control target
= control target key end

     0   :  { %s2469_s18 = smov 0   ;;  %s2711_s0 = inlined_call_operand.vmem [shape: bf16[2,2,2,72,64], index: 0, kind: input, shape index: {}]   ;;  %s2712_s1 = inlined_call_operand.vmem [shape: bf16[9,64,128], index: 1, kind: input, shape index: {}]   ;;  %s2713_s2 = inlined_call_operand.vmem [shape: f32[56,1], index: 2, kind: input, shape index: {}]   ;;  %s2714_s3 = inlined_call_operand.vmem [shape: bf16[2,56,128], index: 3, kind: output, shape index: {0}]   ;;  %s2715_s4 = inlined_call_operand.vmem [shape: f32[2,1,128], index: 4, kind: output, shape index: {1}]   ;;  %s2716_s5 = inlined_call_operand.vmem [shape: f32[2,1,128], index: 5, kind: output, shape index: {2}]  }
   0x1 LB: > { %s1811_s19 = sadd.s32 4294967295, %s2436_s18   ;;  %p1815_p0 = scmp.ge.s32.totalorder %s2436_s18, 1  ;;  %s2436_s18 = sphi %s2469_s18, %s16_s18  }
   0x2   : > { %p192_p1 = scmp.lt.s32.totalorder %s2436_s18, 3 }
   0x4   : > { %p193_p2 = pnand %p1815_p0, %p192_p1 }
   0x5   : > { %v2358_v0 = vld [vmem:[%s2712_s1 + $0x20] sm:$0xff] (!%p193_p2)   ;;  %p226_p3 = scmp.lt.s32.totalorder (!%p193_p2), %s1811_s19, 1  ;;  %v2360_v2 = vld [vmem:[%s2712_s1 + $0x28] sm:$0xff] (!%p193_p2)   ;;  %v2362_v4 = vld [vmem:[%s2712_s1 + $0x30] sm:$0xff] (!%p193_p2)   ;;  %v2438_v6 = vmov (!%p193_p2), 0   ;;  %vm324_vm0 = vcmask (!%p193_p2), 523264  }
   0x6   : > { %196 = sbr.rel (%p193_p2) target bundleno = 334 (0x14e), region = 32  ;;  %v2359_v1 = vld [vmem:[%s2712_s1 + $0x80] sm:$0xff] (!%p193_p2)   ;;  %2131 = vmatprep.subr.bf16.mxu1 (!%p193_p2), %v2358_v0  ;;  %v2361_v3 = vld [vmem:[%s2712_s1 + $0x88] sm:$0xff] (!%p193_p2)   ;;  %v2363_v5 = vld [vmem:[%s2712_s1 + $0x90] sm:$0xff] (!%p193_p2)   ;;  %2356 = vset.pattern.permute.xlu0 (!%p193_p2), %v2438_v6  ;;  %vm556_vm1 = vsmask.f32 (!%p193_p2), 7424 }
   0x7   : > { %2195 = vmatprep.subr.bf16.mxu0 (!%p193_p2), %v2359_v1  ;;  %2132 = vmatpush3.bf16.msra.mxu1 (!%p193_p2), %v2358_v0  ;;  %v2364_v7 = vld [vmem:[%s2712_s1 + $0x38] sm:$0xff] (!%p193_p2)   ;;  %v2369_v12 = vld [vmem:[%s2712_s1] sm:$0xff] (!%p193_p2)   ;;  %v2372_v15 = vld [vmem:[%s2712_s1 + $0x8] sm:$0xff] (!%p193_p2)  }
   0x8   : > { %2196 = vmatpush3.bf16.msra.mxu0 (!%p193_p2), %v2359_v1  ;;  %2133 = vmatprep.subr.bf16.mxu1 (!%p193_p2), %v2360_v2  ;;  %v2365_v8 = vld [vmem:[%s2712_s1 + $0x98] sm:$0xff] (!%p193_p2)   ;;  %v2371_v13 = vld [vmem:[%s2712_s1 + $0xa0] sm:$0xff] (!%p193_p2)   ;;  %v2373_v16 = vld [vmem:[%s2712_s1 + $0xa8] sm:$0xff] (!%p193_p2)  }
   0x9   : > { %2197 = vmatprep.subr.bf16.mxu0 (!%p193_p2), %v2361_v3  ;;  %2357 = vset.pattern.permute.xlu1 (!%p193_p2), %v2438_v6  ;;  %v2377_v20 = vld [vmem:[%s2712_s1 + $0x10] sm:$0xff] (!%p193_p2)   ;;  %v2380_v23 = vld [vmem:[%s2712_s1 + $0x18] sm:$0xff] (!%p193_p2)   ;;  %v2386_v34 = vld [vmem:[%s2712_s1 + $0x40] sm:$0xff] (!%p193_p2)  }
   0xa   : > { %v2379_v22 = vld [vmem:[%s2712_s1 + $0xb0] sm:$0xff] (!%p193_p2)   ;;  %v2381_v24 = vld [vmem:[%s2712_s1 + $0xb8] sm:$0xff] (!%p193_p2)   ;;  %v2388_v38 = vld [vmem:[%s2712_s1 + $0xc0] sm:$0xff] (!%p193_p2)  }
   0xb   : > { %2134 = vmatpush3.bf16.msra.mxu1 (!%p193_p2), %v2360_v2  ;;  %v2389_v40 = vld [vmem:[%s2712_s1 + $0x48] sm:$0xff] (!%p193_p2)   ;;  %v2394_v52 = vld [vmem:[%s2712_s1 + $0x50] sm:$0xff] (!%p193_p2)   ;;  %v2396_v56 = vld [vmem:[%s2712_s1 + $0x58] sm:$0xff] (!%p193_p2)  }
   0xc   : > { %2198 = vmatpush3.bf16.msra.mxu0 (!%p193_p2), %v2361_v3  ;;  %2135 = vmatprep.subr.bf16.mxu1 (!%p193_p2), %v2362_v4  ;;  %v2390_v43 = vld [vmem:[%s2712_s1 + $0xc8] sm:$0xff] (!%p193_p2)   ;;  %v2395_v55 = vld [vmem:[%s2712_s1 + $0xd0] sm:$0xff] (!%p193_p2)  }
   0xd   : > { %s2718_s19 = smov (!%p226_p3, %s1811_s19), 1  ;;  %2199 = vmatprep.subr.bf16.mxu0 %v2363_v5 }
   0xe   : > { %s2345_s30 = smul.u32 144, %s2718_s19  ;;  %s238_s26 = scalar_lea.vmem %s2715_s4, %s2718_s19 }
   0xf   : > { %2136 = vmatpush3.bf16.msra.mxu1 %v2362_v4  ;;  %v2397_v4 = vld [vmem:[%s2712_s1 + $0xd8] sm:$0xff]   ;;  %s2346_s20 = smul.u32 28, %s2718_s19  ;;  %s241_s29 = scalar_lea.vmem %s2716_s5, %s2718_s19 }
  0x10   : > { %s2504_s12 = scalar_lea.vmem %s2711_s0, %s2345_s30  ;;  %2200 = vmatpush3.bf16.msra.mxu0 %v2363_v5  ;;  %2137 = vmatprep.subr.bf16.mxu1 %v2364_v7 }
  0x11   : > { %v2366_v9 = vld [vmem:[%s2504_s12 + $0x24] sm:$0xff]   ;;  %v2367_v10 = vld [vmem:[%s2504_s12 + $0x6c] sm:$0xff]   ;;  %2201 = vmatprep.subr.bf16.mxu0 %v2365_v8  ;;  %v2370_v14 = vld [vmem:[%s2504_s12 + $0x74] sm:$0xff]   ;;  %s235_s23 = scalar_lea.vmem %s2714_s3, %s2346_s20 }
  0x12   : > { %2139 = vmatprep.mubr.msk.bf16.mxu1 %vm324_vm0, %v2366_v9  ;;  %2203 = vmatprep.mubr.msk.bf16.mxu0 %vm324_vm0, %v2367_v10  ;;  %v2368_v11 = vld [vmem:[%s2504_s12 + $0x2c] sm:$0xff]   ;;  %v2374_v17 = vld [vmem:[%s2504_s12 + $0x34] sm:$0xff]   ;;  %v2375_v18 = vld [vmem:[%s2504_s12 + $0x7c] sm:$0xff]  }
  0x13   : > { %2138 = vmatpush3.bf16.msra.mxu1 %v2364_v7  ;;  %v2376_v19 = vld [vmem:[%s2504_s12 + $0x3c] ss:$0 sps:$4 sm:$0xff]   ;;  %v2378_v21 = vld [vmem:[%s2504_s12 + $0x84] ss:$0 sps:$4 sm:$0xff]   ;;  %v2383_v26 = vld [vmem:[%s2504_s12 + $0x48] sm:$0xff]  }
  0x14   : > { %2202 = vmatpush3.bf16.msra.mxu0 %v2365_v8  ;;  %2147 = vmatprep.subr.bf16.mxu1 %v2369_v12  ;;  %v2382_v25 = vld [vmem:[%s2504_s12] sm:$0xff]   ;;  %v2384_v27 = vld [vmem:[%s2504_s12 + $0x50] sm:$0xff]   ;;  %v1017_v28 = vshrl.u32 %v2383_v26, 16  ;;  %v1019_v29 = vshll.u32 %v2383_v26, 16  ;;  %v2385_v33 = vld [vmem:[%s2504_s12 + $0x8] sm:$0xff]  }
  0x15   : > { %2211 = vmatprep.subr.bf16.mxu0 %v2371_v13  ;;  %v1024_v31 = vshll.u32 %v2384_v27, 16  ;;  %v1028_v32 = vshrl.u32 %v2384_v27, 16  ;;  %v2387_v35 = vld [vmem:[%s2504_s12 + $0x58] sm:$0xff]   ;;  %v2391_v46 = vld [vmem:[%s2504_s12 + $0x10] sm:$0xff]   ;;  %v2392_v47 = vld [vmem:[%s2504_s12 + $0x60] sm:$0x1f]  }
  0x16   : > { %2140 = vmatmul.mubr.msk.bf16.vlgmr.msra.gmra.mrb[0].mxu1 %vm324_vm0, %v2368_v11  ;;  %v1021_v30 = vrot.slane %v1019_v29, 1  ;;  %v1032_v39 = vshll.u32 %v2387_v35, 16  ;;  %v1036_v44 = vshrl.u32 %v2387_v35, 16  ;;  %v1040_v50 = vshll.u32 %v2392_v47, 16  ;;  %v2393_v51 = vld [vmem:[%s2504_s12 + $0x18] ss:$0 sps:$4 sm:$0xff]  }
  0x17   : > { %2204 = vmatmul.mubr.msk.bf16.vlgmr.msra.gmra.mrb[0].mxu0 %vm324_vm0, %v2370_v14  ;;  %2148 = vmatpush3.bf16.msra.mxu1 %v2369_v12  ;;  %v1026_v37 = vrot.slane %v1024_v31, 1  ;;  %v1044_v53 = vshrl.u32 %v2392_v47, 16  ;;  %v519_v57 = vld [vmem:[%s2504_s12] sm:$0xf]  ;;  %v520_v58 = vld [vmem:[%s2504_s12 + $0x4] sm:$0xf] }
  0x18   : > { %2212 = vmatpush3.bf16.msra.mxu0 %v2371_v13  ;;  %2149 = vmatprep.subr.bf16.mxu1 %v2372_v15  ;;  %v1022_v36 = vor.u32 %v1021_v30, %v1017_v28  ;;  %v1034_v45 = vrot.slane %v1032_v39, 1  ;;  %v1042_v54 = vrot.slane %v1040_v50, 1  ;;  %v521_v61 = vld [vmem:[%s2504_s12 + $0x8] sm:$0xf]  ;;  %v522_v62 = vld [vmem:[%s2504_s12 + $0xc] sm:$0xf]  ;;  %v1865_v0 = vcombine.low %v519_v57, %v520_v58 }
  0x19   : > { %2213 = vmatprep.subr.bf16.mxu0 %v2373_v16  ;;  %2143 = vmatprep.mubr.msk.bf16.mxu1 %vm324_vm0, %v2374_v17  ;;  %v1030_v42 = vor.u32 %v1028_v32, %v1026_v37  ;;  %v523_v63 = vld [vmem:[%s2504_s12 + $0x10] sm:$0xf]  ;;  %v524_v1 = vld [vmem:[%s2504_s12 + $0x14] sm:$0xf]  ;;  %v1866_v2 = vcombine.low %v521_v61, %v522_v62  ;;  %v1967_v3 = vcombine.low %v520_v58, %v521_v61  ;;  %v2403_v12 = vld [vmem:[%s2712_s1 + $0x60] sm:$0xff]  }
  0x1a   : > { %2207 = vmatprep.mubr.msk.bf16.mxu0 %vm324_vm0, %v2375_v18  ;;  %v1027_v41 = vsel %vm556_vm1, %v1022_v36, %v1026_v37  ;;  %v1038_v49 = vor.u32 %v1036_v44, %v1034_v45  ;;  %v1046_v60 = vor.u32 %v1044_v53, %v1042_v54  ;;  %v1867_v5 = vcombine.low %v523_v63, %v524_v1  ;;  %v2404_v17 = vld [vmem:[%s2712_s1 + $0xe0] sm:$0xff]   ;;  %v525_v18 = vld [vmem:[%s2504_s12 + $0x18] sm:$0xf]  ;;  %v2406_v27 = vld [vmem:[%s2712_s1 + $0xe8] sm:$0xff]  }
  0x1b   : > { %2150 = vmatpush3.bf16.msra.mxu1 %v2372_v15  ;;  %v1035_v48 = vsel %vm556_vm1, %v1030_v42, %v1034_v45  ;;  %v558_v6 = vshrl.u32 %v1865_v0, 16  ;;  %v560_v7 = vshll.u32 %v1865_v0, 16  ;;  %v565_v8 = vshll.u32 %v1866_v2, 16  ;;  %v2409_v32 = vld [vmem:[%s2712_s1 + $0x70] sm:$0xff]   ;;  %v2410_v35 = vld [vmem:[%s2504_s12 + $0x1c] ss:$0 sps:$4 sm:$0xff]  }
  0x1c   : > { %2214 = vmatpush3.bf16.msra.mxu0 %v2373_v16  ;;  %2151 = vmatprep.subr.bf16.mxu1 %v2377_v20  ;;  %v1043_v59 = vsel %vm556_vm1, %v1038_v49, %v1042_v54  ;;  %v569_v9 = vshrl.u32 %v1866_v2, 16  ;;  %v573_v11 = vshll.u32 %v1867_v5, 16  ;;  %v577_v14 = vshrl.u32 %v1867_v5, 16  ;;  %v2411_v36 = vld [vmem:[%s2712_s1 + $0xf0] sm:$0xff]   ;;  %v2414_v37 = vld [vmem:[%s2504_s12 + $0x48] sm:$0xff]   ;;  %v2420_v45 = vld [vmem:[%s2504_s12 + $0x58] sm:$0xff]  }
  0x1d   : > { %2215 = vmatprep.subr.bf16.mxu0 %v2379_v22  ;;  %v562_v10 = vrot.slane %v560_v7, 1  ;;  %v567_v13 = vrot.slane %v565_v8, 1  ;;  %v2415_v39 = vld [vmem:[%s2504_s12 + $0x28] sm:$0xff]   ;;  %v2416_v42 = vld [vmem:[%s2504_s12 + $0x50] sm:$0xff]   ;;  %v2429_v53 = vld [vmem:[%s2504_s12 + $0x1c] sm:$0x1f]  }
  0x1e   : > { %2144 = vmatmul.mubr.msk.bf16.gmra.mrb[4].mxu1 %vm324_vm0, %v2376_v19  ;;  %v575_v16 = vrot.slane %v573_v11, 1  ;;  %v526_v19 = vld [vmem:[%s2504_s12 + $0x1c] sm:$0x1]  ;;  %v2419_v44 = vld [vmem:[%s2712_s1 + $0x108] sm:$0xff]   ;;  %v243_v54 = vld [vmem:[%s2713_s2] sm:$0xff]  ;;  %v1483_v8 = vshrl.u32 %v2429_v53, 16 }
  0x1f   : > { %2208 = vmatmul.mubr.msk.bf16.gmra.mrb[4].mxu0 %vm324_vm0, %v2378_v21  ;;  %2152 = vmatpush3.bf16.msra.mxu1 %v2377_v20  ;;  %v563_v15 = vor.u32 %v562_v10, %v558_v6  ;;  %v571_v20 = vor.u32 %v569_v9, %v567_v13  ;;  %v1868_v21 = vcombine.low %v525_v18, %v526_v19  ;;  %v2426_v47 = vld [vmem:[%s2504_s12 + $0x4] sm:$0xff]   ;;  %v2422_v61 = vld [vmem:[%s2504_s12 + $0x60] ss:$0 sps:$4 sm:$0xff]   ;;  %v246_v10 = vld [vmem:[%s2713_s2 + $0x18] sm:$0xff] }
  0x20   : > { %2216 = vmatpush3.bf16.msra.mxu0 %v2379_v22  ;;  %2153 = vmatprep.subr.bf16.mxu1 %v2380_v23  ;;  %v579_v28 = vor.u32 %v577_v14, %v575_v16  ;;  %v1456_v49 = vshrl.u32 %v2426_v47, 16  ;;  %v1458_v50 = vshll.u32 %v2426_v47, 16  ;;  %v2423_v2 = vld [vmem:[%s2504_s12 + $0x40] ss:$0 sps:$4 sm:$0xff]   ;;  %v244_v9 = vld [vmem:[%s2713_s2 + $0x8] sm:$0xff] }
  0x21   : > { %2217 = vmatprep.subr.bf16.mxu0 %v2381_v24  ;;  %2155 = vmatprep.mubr.msk.bf16.mxu1 %vm324_vm0, %v2382_v25  ;;  %v568_v22 = vsel %vm556_vm1, %v563_v15, %v567_v13  ;;  %v1969_v25 = vcombine.low %v524_v1, %v525_v18  ;;  %v576_v26 = vsel %vm556_vm1, %v571_v20, %v575_v16  ;;  %v581_v29 = vshll.u32 %v1868_v21, 16  ;;  %v247_v13 = vld [vmem:[%s2713_s2 + $0x20] sm:$0xff]  ;;  %v248_v14 = vld [vmem:[%s2713_s2 + $0x28] sm:$0xff]  ;;  %v249_v16 = vld [vmem:[%s2713_s2 + $0x30] sm:$0xff] }
  0x22   : > { %2219 = vmatprep.mubr.msk.bf16.mxu0 %vm324_vm0, %v1027_v41  ;;  %v585_v30 = vshrl.u32 %v1868_v21, 16  ;;  %v2418_v41 = vld [vmem:[%s2712_s1 + $0x100] sm:$0xff]   ;;  %1631 = vperm.xlu0 %2356, %v243_v54  }
  0x23   : > { %2154 = vmatpush3.bf16.msra.mxu1 %v2380_v23  ;;  %v1968_v23 = vcombine.low %v522_v62, %v523_v63  ;;  %v583_v31 = vrot.slane %v581_v29, 1 }
  0x24   : > { %2218 = vmatpush3.bf16.msra.mxu0 %v2381_v24  ;;  %2163 = vmatprep.subr.bf16.mxu1 %v2386_v34  ;;  %v2405_v24 = vld [vmem:[%s2712_s1 + $0x68] sm:$0xff]  }
  0x25   : > { %2227 = vmatprep.subr.bf16.mxu0 %v2388_v38 }
  0x26   : > { %2156 = vmatmul.mubr.msk.bf16.vlgmr.msra.gmra.mrb[0].mxu1 %vm324_vm0, %v2385_v33  ;;  %v584_v33 = vsel %vm556_vm1, %v579_v28, %v583_v31  ;;  %1636 = vperm.xlu0 %2356, %v244_v9  }
  0x27   : > { %2164 = vmatpush3.bf16.msra.mxu1 %v2386_v34  ;;  %2159 = vmatprep.mubr.msk.bf16.mxu1 %vm324_vm0, %v2391_v46  ;;  %v587_v34 = vor.u32 %v585_v30, %v583_v31  ;;  %v2421_v46 = vld [vmem:[%s2504_s12 + $0x38] sm:$0xff]  }
  0x28   : > { %2220 = vmatmul.mubr.msk.bf16.vlgmr.msra.gmra.mrb[0].mxu0 %vm324_vm0, %v1035_v48  ;;  %2165 = vmatprep.subr.bf16.mxu1 %v2389_v40  ;;  %v2427_v48 = vld [vmem:[%s2504_s12 + $0xc] sm:$0xff]  }
  0x29   : > { %2228 = vmatpush3.bf16.msra.mxu0 %v2388_v38  ;;  %2223 = vmatprep.mubr.msk.bf16.mxu0 %vm324_vm0, %v1043_v59  ;;  %v2412_v38 = vld [vmem:[%s2712_s1 + $0x78] sm:$0xff]   ;;  %v245_v59 = vld [vmem:[%s2713_s2 + $0x10] sm:$0xff]  ;;  %v1467_v5 = vshrl.u32 %v2427_v48, 16 }
  0x2a   : > { %2229 = vmatprep.subr.bf16.mxu0 %v2390_v43  ;;  %1641 = vperm.xlu1 %2357, %v245_v59  }
  0x2b   : > { %2166 = vmatpush3.bf16.msra.mxu1 %v2389_v40  ;;  %v2413_v40 = vld [vmem:[%s2712_s1 + $0xf8] sm:$0xff]   ;;  %1651 = vperm.xlu0 %2356, %v247_v13  }
  0x2c   : > { %2167 = vmatprep.subr.bf16.mxu1 %v2394_v52 }
  0x2d   : > { %2230 = vmatpush3.bf16.msra.mxu0 %v2390_v43  ;;  %v2417_v43 = vld [vmem:[%s2504_s12 + $0x30] sm:$0xff]  }
  0x2e   : > { %2160 = vmatmul.mubr.msk.bf16.gmra.mrb[4].mxu1 %vm324_vm0, %v2393_v51  ;;  %2231 = vmatprep.subr.bf16.mxu0 %v2395_v55  ;;  %v1463_v51 = vshll.u32 %v2427_v48, 16 }
  0x2f   : > { %2168 = vmatpush3.bf16.msra.mxu1 %v2394_v52  ;;  %2171 = vmatprep.mubr.msk.bf16.mxu1 %vm324_vm0, %v568_v22  ;;  %v2428_v52 = vld [vmem:[%s2504_s12 + $0x14] sm:$0xff]  }
  0x30   : > { %2224 = vmatmul.mubr.msk.bf16.gmra.mrb[4].mxu0 %vm324_vm0, %v1046_v60  ;;  %2169 = vmatprep.subr.bf16.mxu1 %v2396_v56  ;;  %v1471_v57 = vshll.u32 %v2428_v52, 16  ;;  %v1475_v58 = vshrl.u32 %v2428_v52, 16  ;;  %v1479_v60 = vshll.u32 %v2429_v53, 16  ;;  %v1465_v63 = vrot.slane %v1463_v51, 1 }
  0x31   : > { %2232 = vmatpush3.bf16.msra.mxu0 %v2395_v55  ;;  %2235 = vmatprep.mubr.msk.bf16.mxu0 %vm324_vm0, %v1967_v3  ;;  %v2424_v55 = vld [vmem:[%s2712_s1 + $0x110] sm:$0xff]   ;;  %v2425_v3 = vld [vmem:[%s2712_s1 + $0x118] sm:$0xff]  }
  0x32   : > { %2233 = vmatprep.subr.bf16.mxu0 %v2397_v4  ;;  %v1473_v0 = vrot.slane %v1471_v57, 1  ;;  %v1481_v1 = vrot.slane %v1479_v60, 1  ;;  %v1469_v11 = vor.u32 %v1467_v5, %v1465_v63  ;;  %1646 = vperm.xlu1 %2357, %v246_v10  }
  0x33   : > { %2170 = vmatpush3.bf16.msra.mxu1 %v2396_v56  ;;  %v1460_v56 = vrot.slane %v1458_v50, 1  ;;  %1661 = vperm.xlu0 %2356, %v249_v16  }
  0x34   : > { %2179 = vmatprep.subr.bf16.mxu1 %v2403_v12  ;;  %v1474_v15 = vsel %vm556_vm1, %v1469_v11, %v1473_v0 }
  0x35   : > { %2234 = vmatpush3.bf16.msra.mxu0 %v2397_v4  ;;  %v1461_v62 = vor.u32 %v1460_v56, %v1456_v49  ;;  %v1477_v4 = vor.u32 %v1475_v58, %v1473_v0 }
  0x36   : > { %2172 = vmatmul.mubr.msk.bf16.vlgmr.msra.gmra.mrb[0].mxu1 %vm324_vm0, %v576_v26  ;;  %2243 = vmatprep.subr.bf16.mxu0 %v2404_v17 }
  0x37   : > { %2180 = vmatpush3.bf16.msra.mxu1 %v2403_v12  ;;  %2175 = vmatprep.mubr.msk.bf16.mxu1 %vm324_vm0, %v584_v33  ;;  %v1466_v6 = vsel %vm556_vm1, %v1461_v62, %v1465_v63  ;;  %v1482_v7 = vsel %vm556_vm1, %v1477_v4, %v1481_v1  ;;  %v1485_v12 = vor.u32 %v1483_v8, %v1481_v1 }
  0x38   : > { %2236 = vmatmul.mubr.msk.bf16.vlgmr.msra.gmra.mrb[0].mxu0 %vm324_vm0, %v1968_v23  ;;  %2181 = vmatprep.subr.bf16.mxu1 %v2405_v24 }
  0x39   : > { %2244 = vmatpush3.bf16.msra.mxu0 %v2404_v17  ;;  %2239 = vmatprep.mubr.msk.bf16.mxu0 %vm324_vm0, %v1969_v25 }
  0x3a   : > { %2245 = vmatprep.subr.bf16.mxu0 %v2406_v27  ;;  %1656 = vperm.xlu1 %2357, %v248_v14  }
  0x3b   : > { %2182 = vmatpush3.bf16.msra.mxu1 %v2405_v24 }
  0x3c   : > { %2183 = vmatprep.subr.bf16.mxu1 %v2409_v32 }
  0x3d   : > { %2246 = vmatpush3.bf16.msra.mxu0 %v2406_v27 }
  0x3e   : > { %2176 = vmatmul.mubr.msk.bf16.gmra.mrb[4].mxu1 %vm324_vm0, %v587_v34  ;;  %2247 = vmatprep.subr.bf16.mxu0 %v2411_v36 }
  0x3f   : > { %2184 = vmatpush3.bf16.msra.mxu1 %v2409_v32  ;;  %2187 = vmatprep.mubr.msk.bf16.mxu1 %vm324_vm0, %v2414_v37 }
  0x40   : > { %2240 = vmatmul.mubr.msk.bf16.gmra.mrb[4].mxu0 %vm324_vm0, %v2410_v35  ;;  %2185 = vmatprep.subr.bf16.mxu1 %v2412_v38 }
  0x41   : > { %2248 = vmatpush3.bf16.msra.mxu0 %v2411_v36  ;;  %2251 = vmatprep.mubr.msk.bf16.mxu0 %vm324_vm0, %v2415_v39 }
  0x42   : > { %2249 = vmatprep.subr.bf16.mxu0 %v2413_v40 }
  0x43   : > { %2186 = vmatpush3.bf16.msra.mxu1 %v2412_v38 }
  0x44   : > { %2275 = vmatprep.subr.bf16.mxu1 %v2418_v41 }
  0x45   : > { %2250 = vmatpush3.bf16.msra.mxu0 %v2413_v40 }
  0x46   : > { %2188 = vmatmul.mubr.msk.bf16.vlgmr.msra.gmra.mrb[0].mxu1 %vm324_vm0, %v2416_v42  ;;  %2259 = vmatprep.subr.bf16.mxu0 %v2418_v41 }
  0x47   : > { %2279 = vmatpush3.bf16.msra.mxu1 %v2418_v41  ;;  %2191 = vmatprep.mubr.msk.bf16.mxu1 %vm324_vm0, %v2420_v45 }
  0x48   : > { %2252 = vmatmul.mubr.msk.bf16.vlgmr.msra.gmra.mrb[0].mxu0 %vm324_vm0, %v2417_v43  ;;  %2276 = vmatprep.subr.bf16.mxu1 %v2419_v44 }
  0x49   : > { %2260 = vmatpush3.bf16.msra.mxu0 %v2418_v41  ;;  %2255 = vmatprep.mubr.msk.bf16.mxu0 %vm324_vm0, %v2421_v46 }
  0x4a   : > { %2261 = vmatprep.subr.bf16.mxu0 %v2419_v44 }
  0x4b   : > { %2280 = vmatpush3.bf16.msra.mxu1 %v2419_v44 }
  0x4c   : > { %2277 = vmatprep.subr.bf16.mxu1 %v2424_v55 }
  0x4d   : > { %2262 = vmatpush3.bf16.msra.mxu0 %v2419_v44 }
  0x4e   : > { %2192 = vmatmul.mubr.msk.bf16.gmra.mrb[4].mxu1 %vm324_vm0, %v2422_v61  ;;  %2263 = vmatprep.subr.bf16.mxu0 %v2424_v55 }
  0x4f   : > { %2281 = vmatpush3.bf16.msra.mxu1 %v2424_v55  ;;  %2271 = vmatprep.mubr.msk.bf16.mxu1 %vm324_vm0, %v1482_v7 }
  0x50   : > { %2256 = vmatmul.mubr.msk.bf16.gmra.mrb[4].mxu0 %vm324_vm0, %v2423_v2  ;;  %2278 = vmatprep.subr.bf16.mxu1 %v2425_v3 }
  0x51   : > { %2264 = vmatpush3.bf16.msra.mxu0 %v2424_v55  ;;  %2267 = vmatprep.mubr.msk.bf16.mxu0 %vm324_vm0, %v1466_v6 }
  0x52   : > { %2265 = vmatprep.subr.bf16.mxu0 %v2425_v3 }
  0x53   : > { %2282 = vmatpush3.bf16.msra.mxu1 %v2425_v3 }
  0x55   : > { %2266 = vmatpush3.bf16.msra.mxu0 %v2425_v3 }
  0x56   : > { %2272 = vmatmul.mubr.msk.bf16.vlgmr.msra.gmra.mrb[8].mxu1 %vm324_vm0, %v1485_v12 }
  0x58   : > { %2268 = vmatmul.mubr.msk.bf16.vlgmr.msra.gmra.mrb[0].mxu0 %vm324_vm0, %v1474_v15 }
  0xa1   : > { %v1632_v22 = vpop.permute.xlu0 %1631 }
  0xa5   : > { %v1637_v35 = vpop.permute.xlu0 %1636 }
  0xa9   : > { %v1642_v33 = vpop.permute.xlu1 %1641 }
  0xaa   : > { %v1652_v54 = vpop.permute.xlu0 %1651 }
  0xb1   : > { %v1647_v48 = vpop.permute.xlu1 %1646 }
  0xb2   : > { %v1662_v4 = vpop.permute.xlu0 %1661 }
  0xb9   : > { %v1657_v63 = vpop.permute.xlu1 %1656 }
 0x119   : > { %v2189_v17 = vpop.f32.mrb[0].mxu1 }
 0x11a   : > { %v800_v18 = vpop.f32.mrb[1].mxu1 }
 0x11b   : > { %v2190_v19 = vpop.f32.mrb[2].mxu1 }
 0x11c   : > { %v803_v20 = vpop.f32.mrb[3].mxu1 }
 0x121   : > { %v2193_v21 = vpop.f32.mrb[4].mxu1 }
 0x122   : > { %v816_v23 = vpop.f32.mrb[5].mxu1 }
 0x123   : > { %v2257_v24 = vpop.f32.mrb[4].mxu0  ;;  %v2194_v25 = vpop.f32.mrb[6].mxu1 }
 0x124   : > { %v2287_v26 = vadd.f32 %v2257_v24, %v2193_v21  ;;  %v1397_v27 = vpop.f32.mrb[5].mxu0  ;;  %v819_v28 = vpop.f32.mrb[7].mxu1 }
 0x125   : > { %v2289_v29 = vadd.f32 %v1397_v27, %v816_v23  ;;  %v2258_v30 = vpop.f32.mrb[6].mxu0 }
 0x126   : > { %v1400_v31 = vpop.f32.mrb[7].mxu0 }
 0x127   : > { %v2291_v32 = vadd.f32 %v1400_v31, %v819_v28 }
 0x129   : > { %v2273_v34 = vpop.f32.mrb[8].mxu1 }
 0x12a   : > { %v2288_v36 = vadd.f32 %v2287_v26, %v2273_v34  ;;  %v1572_v37 = vpop.f32.mrb[9].mxu1 }
 0x12b   : > { %v2269_v38 = vpop.f32.mrb[0].mxu0  ;;  %v2290_v39 = vadd.f32 %v2289_v29, %v1572_v37  ;;  %v2274_v40 = vpop.f32.mrb[10].mxu1 }
 0x12c   : > { %v2283_v41 = vadd.f32 %v2269_v38, %v2189_v17  ;;  %v2041_v42 = vpack.c.bf16 %v2288_v36, %v2288_v36  ;;  %v1556_v43 = vpop.f32.mrb[1].mxu0  ;;  %v1575_v44 = vpop.f32.mrb[11].mxu1  ;;  %v1670_v10 = vmul.f32 %v2288_v36, %v1662_v4 }
 0x12d   : > { %v2284_v45 = vadd.f32 %v1556_v43, %v800_v18  ;;  %v2270_v46 = vpop.f32.mrb[2].mxu0  ;;  %v2292_v47 = vadd.f32 %v2291_v32, %v1575_v44  ;;  %v1668_v1 = vmul.f32 %v2290_v39, %v1652_v54 }
 0x12e   : > { %1628 = vst [vmem:[%s235_s23 + $0x18] sm:$0xf] %v2041_v42  ;;  %v2285_v49 = vadd.f32 %v2270_v46, %v2190_v19  ;;  %v1559_v50 = vpop.f32.mrb[3].mxu0  ;;  %v1666_v56 = vmul.f32 %v2283_v41, %v1642_v33  ;;  %v1690_v16 = vmul.f32 %v2288_v36, %v1670_v10 }
 0x12f   : > { %v1664_v51 = vmul.f32 %v2284_v45, %v1632_v22  ;;  %v2286_v52 = vadd.f32 %v1559_v50, %v803_v20  ;;  %v2055_v53 = vpack.c.bf16 %v2292_v47, %v2290_v39  ;;  %v1669_v7 = vmul.f32 %v2292_v47, %v1657_v63 }
 0x130   : > { %v2050_v55 = vpack.c.bf16 %v2285_v49, %v2283_v41  ;;  %v1667_v60 = vmul.f32 %v2285_v49, %v1647_v48  ;;  %v1686_v0 = vmul.f32 %v2283_v41, %v1666_v56  ;;  %v1688_v9 = vmul.f32 %v2290_v39, %v1668_v1 }
 0x131   : > { %v2045_v57 = vpack.c.bf16 %v2286_v52, %v2284_v45  ;;  %v1665_v58 = vmul.f32 %v2286_v52, %v1637_v35  ;;  %2058 = vst [vmem:[%s235_s23 + $0x10] sm:$0xff] %v2055_v53   ;;  %v1684_v59 = vmul.f32 %v2284_v45, %v1664_v51  ;;  %v1689_v14 = vmul.f32 %v2292_v47, %v1669_v7 }
 0x132   : > { %2057 = vst [vmem:[%s235_s23 + $0x8] sm:$0xff] %v2050_v55   ;;  %v1687_v5 = vmul.f32 %v2285_v49, %v1667_v60 }
 0x133   : > { %2046 = vst [vmem:[%s235_s23] sm:$0xff] %v2045_v57   ;;  %v1671_v61 = vadd.f32 %v1665_v58, %v1664_v51  ;;  %v1685_v62 = vmul.f32 %v2286_v52, %v1665_v58 }
 0x135   : > { %v1691_v2 = vadd.f32 %v1685_v62, %v1684_v59  ;;  %v1672_v3 = vadd.f32 %v1671_v61, %v1666_v56 }
 0x137   : > { %v1692_v6 = vadd.f32 %v1691_v2, %v1686_v0  ;;  %v1673_v8 = vadd.f32 %v1672_v3, %v1667_v60 }
 0x139   : > { %v1674_v11 = vadd.f32 %v1673_v8, %v1668_v1  ;;  %v1693_v12 = vadd.f32 %v1692_v6, %v1687_v5 }
 0x13b   : > { %v1675_v13 = vadd.f32 %v1674_v11, %v1669_v7  ;;  %v1694_v15 = vadd.f32 %v1693_v12, %v1688_v9 }
 0x13d   : > { %v1676_v17 = vadd.f32 %v1675_v13, %v1670_v10  ;;  %v1695_v18 = vadd.f32 %v1694_v15, %v1689_v14 }
 0x13f   : > { %v1677_v19 = vrot.slane %v1676_v17, 4  ;;  %v1696_v20 = vadd.f32 %v1695_v18, %v1690_v16 }
 0x141   : > { %v1678_v21 = vadd.f32 %v1677_v19, %v1676_v17  ;;  %v1697_v22 = vrot.slane %v1696_v20, 4 }
 0x143   : > { %v1679_v23 = vrot.slane %v1678_v21, 2  ;;  %v1698_v24 = vadd.f32 %v1697_v22, %v1696_v20 }
 0x145   : > { %v1680_v25 = vadd.f32 %v1679_v23, %v1678_v21  ;;  %v1699_v26 = vrot.slane %v1698_v24, 2 }
 0x147   : > { %v1681_v27 = vrot.slane %v1680_v25, 1  ;;  %v1700_v28 = vadd.f32 %v1699_v26, %v1698_v24 }
 0x149   : > { %v1682_v29 = vadd.f32 %v1681_v27, %v1680_v25  ;;  %v1701_v30 = vrot.slane %v1700_v28, 1 }
 0x14b   : > { %v1702_v31 = vadd.f32 %v1701_v30, %v1700_v28  ;;  %1704 = vst [vmem:[%s238_s26] sm:$0x1] %v1682_v29 }
 0x14d   : > { %1705 = vst [vmem:[%s241_s29] sm:$0x1] %v1702_v31 }
 0x14e PF: > { %s16_s18 = sadd.s32 1, %s2436_s18  }
 0x14f   : > { %p13_p4 = scmp.ge.s32.totalorder %s16_s18, 4  }
 0x151   :  { %15 = sbr.rel (!%p13_p4) target bundleno = 1 (0x1), region = 97 }

// kernel: discriminator_forward.4
= control target key start
LH: loop header
LB: loop body
LE: loop exit
PB: predicated region body
PF: predicated region fallthrough
CT: control target
= control target key end

     0   :  { %s4997_s18 = smov 0   ;;  %s5873_s0 = inlined_call_operand.vmem [shape: bf16[2,2,2,232,8], index: 0, kind: input, shape index: {}]   ;;  %s5874_s1 = inlined_call_operand.vmem [shape: bf16[9,8,64], index: 1, kind: input, shape index: {}]   ;;  %s5875_s2 = inlined_call_operand.vmem [shape: f32[210,1], index: 2, kind: input, shape index: {}]   ;;  %s5876_s3 = inlined_call_operand.vmem [shape: bf16[2,210,64], index: 3, kind: output, shape index: {0}]   ;;  %s5877_s4 = inlined_call_operand.vmem [shape: f32[2,1,64], index: 4, kind: output, shape index: {1}]   ;;  %s5878_s5 = inlined_call_operand.vmem [shape: f32[2,1,64], index: 5, kind: output, shape index: {2}]  }
   0x1 LB: > { %s3784_s19 = sadd.s32 4294967295, %s4964_s18   ;;  %p3788_p0 = scmp.ge.s32.totalorder %s4964_s18, 1  ;;  %s4964_s18 = sphi %s4997_s18, %s16_s18  }
   0x2   : > { %p192_p1 = scmp.lt.s32.totalorder %s4964_s18, 3 }
   0x4   : > { %p193_p2 = pnand %p3788_p0, %p192_p1 }
   0x5   : > { %vm439_vm0 = vcmask (!%p193_p2), 1043456   ;;  %v3974_v0 = vld [vmem:[%s5874_s1 + $0x10] sm:$0xf] (!%p193_p2)  ;;  %v3818_v1 = vld [vmem:[%s5874_s1 + $0x4] sm:$0xf] (!%p193_p2)  ;;  %p226_p3 = scmp.lt.s32.totalorder (!%p193_p2), %s3784_s19, 1 }
   0x6   : > { %196 = sbr.rel (%p193_p2) target bundleno = 508 (0x1fc), region = 32  ;;  %4825 = vmatprep.subr.msk.bf16.mxu0 (!%p193_p2), %vm439_vm0, %v3974_v0  ;;  %4821 = vmatprep.subr.msk.bf16.mxu1 (!%p193_p2), %vm439_vm0, %v3818_v1  ;;  %v5014_v2 = vsel (!%p193_p2), %vm439_vm0, %v3974_v0, 0  ;;  %v441_v3 = vsel (!%p193_p2), %vm439_vm0, %v3818_v1, 0  ;;  %v4004_v4 = vld [vmem:[%s5874_s1 + $0x14] sm:$0xf] (!%p193_p2)  ;;  %vm396_vm1 = vcmask (!%p193_p2), 64512  }
   0x7   : > { %4447 = vmatpush3.bf16.msra.mxu0 (!%p193_p2), %v5014_v2  ;;  %4327 = vmatpush3.bf16.msra.mxu1 (!%p193_p2), %v441_v3  ;;  %v297_v5 = vld [vmem:[%s5874_s1] sm:$0xf] (!%p193_p2)  ;;  %v5042_v10 = vld [vmem:[%s5874_s1 + $0x18] sm:$0xf] (!%p193_p2)  ;;  %v1940_v12 = vsel (!%p193_p2), %vm439_vm0, %v4004_v4, 0  ;;  %vm3337_vm4 = vcmask (!%p193_p2), 519168  }
   0x8   : > { %4827 = vmatprep.subr.msk.bf16.mxu0 (!%p193_p2), %vm439_vm0, %v4004_v4  ;;  %4822 = vmatprep.subr.msk.bf16.mxu1 (!%p193_p2), %vm439_vm0, %v297_v5  ;;  %v698_v9 = vsel (!%p193_p2), %vm439_vm0, %v297_v5, 0  ;;  %v5050_v13 = vld [vmem:[%s5874_s1 + $0x8] sm:$0xf] (!%p193_p2)  ;;  %vm850_vm2 = vsmask.f32 (!%p193_p2), 7424  ;;  %v2382_v52 = vsel (!%p193_p2), %vm439_vm0, %v5042_v10, 0 }
   0x9   : > { %v5102_v57 = vld [vmem:[%s5874_s1 + $0x1c] sm:$0xf] (!%p193_p2)  ;;  %vm2213_vm3 = vsmask.f32 (!%p193_p2), 4352  ;;  %vm3528_vm5 = vcmask (!%p193_p2), 523264   ;;  %vm3364_vm6 = vcmask (!%p193_p2), 516096  }
   0xa   : > { %vm3580_vm7 = vcmask (!%p193_p2), 517120  }
   0xd   : > { %s5890_s19 = smov (!%p226_p3, %s3784_s19), 1 }
   0xe   : > { %s4831_s28 = smul.u32 464, %s5890_s19  ;;  %s238_s12 = scalar_lea.vmem %s5877_s4, %s5890_s19 }
   0xf   : > { %s241_s15 = scalar_lea.vmem %s5878_s5, %s5890_s19 }
  0x10   : > { %s5032_s6 = scalar_lea.vmem %s5873_s0, %s4831_s28 }
  0x11   : > { %v4844_v6 = vld [vmem:[%s5032_s6 + $0x74] sm:$0xff]   ;;  %v4845_v7 = vld [vmem:[%s5032_s6 + $0x15c] sm:$0xff]   ;;  %v4847_v11 = vld [vmem:[%s5032_s6 + $0x164] sm:$0xff]  }
  0x12   : > { %4328 = vmatprep.mubr.msk.bf16.mxu1 %vm396_vm1, %v4844_v6  ;;  %v4846_v8 = vld [vmem:[%s5032_s6 + $0x7c] sm:$0xff]   ;;  %4448 = vmatprep.mubr.msk.bf16.mxu0 %vm396_vm1, %v4845_v7  ;;  %v4848_v14 = vld [vmem:[%s5032_s6 + $0x84] sm:$0xff]   ;;  %v4849_v15 = vld [vmem:[%s5032_s6 + $0x16c] sm:$0xff]  }
  0x13   : > { %4329 = vmatmul.mubr.msk.bf16.vlgmr.msra.gmra.mrb[0].mxu1 %vm396_vm1, %v4846_v8  ;;  %4449 = vmatmul.mubr.msk.bf16.vlgmr.msra.gmra.mrb[0].mxu0 %vm396_vm1, %v4847_v11  ;;  %v4850_v16 = vld [vmem:[%s5032_s6 + $0x8c] sm:$0xff]   ;;  %v4851_v17 = vld [vmem:[%s5032_s6 + $0x174] sm:$0xff]   ;;  %v4853_v19 = vld [vmem:[%s5032_s6 + $0x17c] sm:$0xff]  }
  0x14   : > { %4357 = vmatpush3.bf16.msra.mxu1 %v698_v9  ;;  %4477 = vmatpush3.bf16.msra.mxu0 %v1940_v12  ;;  %v4852_v18 = vld [vmem:[%s5032_s6 + $0x94] sm:$0xff]   ;;  %v4854_v20 = vld [vmem:[%s5032_s6 + $0x9c] sm:$0xff]   ;;  %v4855_v21 = vld [vmem:[%s5032_s6 + $0x184] sm:$0xff]  }
  0x15   : > { %4332 = vmatprep.mubr.msk.bf16.mxu1 %vm396_vm1, %v4848_v14  ;;  %4452 = vmatprep.mubr.msk.bf16.mxu0 %vm396_vm1, %v4849_v15  ;;  %v4856_v22 = vld [vmem:[%s5032_s6 + $0xa4] sm:$0xff]   ;;  %v4857_v23 = vld [vmem:[%s5032_s6 + $0x18c] sm:$0xff]   ;;  %v4864_v29 = vld [vmem:[%s5032_s6 + $0xf8] sm:$0xff]  }
  0x16   : > { %4828 = vmatprep.subr.msk.bf16.mxu0 %vm439_vm0, %v5042_v10  ;;  %4823 = vmatprep.subr.msk.bf16.mxu1 %vm439_vm0, %v5050_v13  ;;  %v4861_v24 = vld [vmem:[%s5032_s6 + $0xe8] sm:$0xff]   ;;  %v4862_v25 = vld [vmem:[%s5032_s6 + $0xf0] sm:$0xff]   ;;  %v4866_v31 = vld [vmem:[%s5032_s6 + $0x100] sm:$0xff]   ;;  %v1812_v37 = vshll.u32 %v4864_v29, 16  ;;  %v1816_v41 = vshrl.u32 %v4864_v29, 16 }
  0x17   : > { %v1799_v26 = vshrl.u32 %v4861_v24, 16  ;;  %v1801_v27 = vshll.u32 %v4861_v24, 16  ;;  %v1805_v28 = vshll.u32 %v4862_v25, 16  ;;  %v4858_v32 = vld [vmem:[%s5032_s6 + $0xac] sm:$0xff]   ;;  %v4859_v34 = vld [vmem:[%s5032_s6 + $0x194] sm:$0xff]   ;;  %v1809_v38 = vshrl.u32 %v4862_v25, 16 }
  0x18   : > { %v4860_v36 = vld [vmem:[%s5032_s6 + $0xb4] sm:$0xff]   ;;  %v1819_v39 = vshll.u32 %v4866_v31, 16  ;;  %v1814_v42 = vrot.slane %v1812_v37, 1  ;;  %v4868_v43 = vld [vmem:[%s5032_s6 + $0x108] sm:$0xff]   ;;  %v4863_v48 = vld [vmem:[%s5032_s6 + $0xbc] sm:$0xff]   ;;  %v1823_v53 = vshrl.u32 %v4866_v31, 16 }
  0x19   : > { %v1803_v30 = vrot.slane %v1801_v27, 1  ;;  %v1807_v33 = vrot.slane %v1805_v28, 1  ;;  %v4870_v46 = vld [vmem:[%s5032_s6 + $0x110] sm:$0xff]   ;;  %v4865_v49 = vld [vmem:[%s5032_s6 + $0xc4] sm:$0xff]   ;;  %v1826_v50 = vshll.u32 %v4868_v43, 16  ;;  %v1830_v55 = vshrl.u32 %v4868_v43, 16 }
  0x1a   : > { %v1821_v45 = vrot.slane %v1819_v39, 1  ;;  %v1818_v47 = vor.u32 %v1816_v41, %v1814_v42  ;;  %v1833_v56 = vshll.u32 %v4870_v46, 16  ;;  %v4872_v59 = vld [vmem:[%s5032_s6 + $0x118] sm:$0xff]   ;;  %v4874_v63 = vld [vmem:[%s5032_s6 + $0x120] sm:$0xff]   ;;  %v4867_v0 = vld [vmem:[%s5032_s6 + $0xcc] sm:$0xff]   ;;  %v1837_v5 = vshrl.u32 %v4870_v46, 16 }
  0x1b   : > { %4333 = vmatmul.mubr.msk.bf16.gmra.mrb[4].mxu1 %vm396_vm1, %v4850_v16  ;;  %4453 = vmatmul.mubr.msk.bf16.gmra.mrb[4].mxu0 %vm396_vm1, %v4851_v17  ;;  %v1804_v35 = vor.u32 %v1803_v30, %v1799_v26  ;;  %v1811_v44 = vor.u32 %v1809_v38, %v1807_v33  ;;  %v1828_v58 = vrot.slane %v1826_v50, 1  ;;  %v4869_v1 = vld [vmem:[%s5032_s6 + $0xd4] sm:$0xff]   ;;  %v1840_v3 = vshll.u32 %v4872_v59, 16  ;;  %v4876_v10 = vld [vmem:[%s5032_s6 + $0x128] sm:$0xff]   ;;  %v5123_v17 = vld [vmem:[%s5032_s6] sm:$0xff]  }
  0x1c   : > { %4336 = vmatprep.mubr.msk.bf16.mxu1 %vm396_vm1, %v4852_v18  ;;  %4456 = vmatprep.mubr.msk.bf16.mxu0 %vm396_vm1, %v4853_v19  ;;  %v1822_v54 = vsel %vm850_vm2, %v1818_v47, %v1821_v45  ;;  %v1825_v60 = vor.u32 %v1823_v53, %v1821_v45  ;;  %v1835_v62 = vrot.slane %v1833_v56, 1  ;;  %v1844_v7 = vshrl.u32 %v4872_v59, 16  ;;  %v4878_v12 = vld [vmem:[%s5032_s6 + $0x130] sm:$0xff]   ;;  %v4871_v16 = vld [vmem:[%s5032_s6 + $0xdc] ss:$0 sps:$4 sm:$0x11]  }
  0x1d   : > { %v1808_v40 = vsel %vm850_vm2, %v1804_v35, %v1807_v33  ;;  %v1815_v51 = vsel %vm850_vm2, %v1811_v44, %v1814_v42  ;;  %v1832_v61 = vor.u32 %v1830_v55, %v1828_v58  ;;  %v1847_v8 = vshll.u32 %v4874_v63, 16  ;;  %v5131_v25 = vld [vmem:[%s5032_s6 + $0x14] sm:$0xf]  ;;  %v4880_v28 = vld [vmem:[%s5032_s6 + $0x138] sm:$0xff]   ;;  %v5143_v33 = vld [vmem:[%s5032_s6 + $0x8] sm:$0xff]  }
  0x1e   : > { %v1829_v4 = vsel %vm850_vm2, %v1825_v60, %v1828_v58  ;;  %v1842_v9 = vrot.slane %v1840_v3, 1  ;;  %v1839_v11 = vor.u32 %v1837_v5, %v1835_v62  ;;  %v1851_v18 = vshrl.u32 %v4874_v63, 16  ;;  %v5157_v42 = vld [vmem:[%s5874_s1 + $0xc] sm:$0xf]  ;;  %v5174_v50 = vld [vmem:[%s5032_s6 + $0x18] sm:$0xff]  }
  0x1f   : > { %v1836_v6 = vsel %vm850_vm2, %v1832_v61, %v1835_v62  ;;  %v1849_v15 = vrot.slane %v1847_v8, 1  ;;  %v1854_v19 = vshll.u32 %v4876_v10, 16  ;;  %v1868_v35 = vshll.u32 %v4880_v28, 16  ;;  %v4884_v43 = vld [vmem:[%s5032_s6 + $0x148] sm:$0xff]   ;;  %v5195_v5 = vld [vmem:[%s5032_s6 + $0x18] sm:$0xf] }
  0x20   : > { %v1846_v14 = vor.u32 %v1844_v7, %v1842_v9  ;;  %v1865_v37 = vshrl.u32 %v4878_v12, 16  ;;  %v992_v39 = vsel %vm439_vm0, %v5050_v13, 0  ;;  %v5164_v44 = vld [vmem:[%s5032_s6 + $0x150] ss:$0 sps:$4 sm:$0x33]   ;;  %v1882_v53 = vshll.u32 %v4884_v43, 16 }
  0x21   : > { %v1856_v27 = vrot.slane %v1854_v19, 1  ;;  %v1853_v29 = vor.u32 %v1851_v18, %v1849_v15  ;;  %v1870_v13 = vrot.slane %v1868_v35, 1  ;;  %v1886_v60 = vshrl.u32 %v4884_v43, 16  ;;  %v5198_v8 = vld [vmem:[%s5032_s6 + $0x28] sm:$0xff]  }
  0x22   : > { %v1850_v24 = vsel %vm850_vm2, %v1846_v14, %v1849_v15  ;;  %v1884_v62 = vrot.slane %v1882_v53, 1  ;;  %v4023_v14 = vcombine.low %v5131_v25, %v5195_v5 }
  0x23   : > { %4337 = vmatmul.mubr.msk.bf16.gmra.mrb[8].mxu1 %vm396_vm1, %v4854_v20  ;;  %4457 = vmatmul.mubr.msk.bf16.gmra.mrb[8].mxu0 %vm396_vm1, %v4855_v21  ;;  %v1843_v20 = vsel %vm850_vm2, %v1839_v11, %v1842_v9  ;;  %v1858_v21 = vshrl.u32 %v4876_v10, 16  ;;  %v5201_v9 = vld [vmem:[%s5032_s6 + $0x1c] sm:$0xf]  ;;  %v5204_v10 = vld [vmem:[%s5032_s6 + $0x20] sm:$0xf]  ;;  %v5207_v11 = vld [vmem:[%s5032_s6 + $0x30] sm:$0xff]  }
  0x24   : > { %4340 = vmatprep.mubr.msk.bf16.mxu1 %vm396_vm1, %v4856_v22  ;;  %4460 = vmatprep.mubr.msk.bf16.mxu0 %vm396_vm1, %v4857_v23  ;;  %v1861_v22 = vshll.u32 %v4878_v12, 16  ;;  %v5127_v23 = vld [vmem:[%s5032_s6 + $0x10] sm:$0xf] }
  0x25   : > { %v4108_v26 = vcombine.low %v5127_v23, %v5131_v25  ;;  %v1860_v30 = vor.u32 %v1858_v21, %v1856_v27  ;;  %v4024_v21 = vcombine.low %v5201_v9, %v5204_v10 }
  0x26   : > { %v1863_v31 = vrot.slane %v1861_v22, 1  ;;  %v1894_v22 = vshrl.u32 %v5164_v44, 16 }
  0x27   : > { %v2241_v35 = vshrl.u32 %v4024_v21, 16 }
  0x28   : > { %v1864_v38 = vsel %vm850_vm2, %v1860_v30, %v1863_v31  ;;  %v1867_v45 = vor.u32 %v1865_v37, %v1863_v31  ;;  %v2235_v30 = vshll.u32 %v4023_v14, 16 }
  0x2a   : > { %v1871_v55 = vsel %vm850_vm2, %v1867_v45, %v1870_v13  ;;  %v2237_v43 = vrot.slane %v2235_v30, 4  ;;  %v2243_v45 = vrot.slane %v2241_v35, 3  ;;  %v5298_v30 = vld [vmem:[%s5032_s6 + $0x50] sm:$0xf] }
  0x2b   : > { %4341 = vmatmul.mubr.msk.bf16.gmra.mrb[12].mxu1 %vm396_vm1, %v4858_v32  ;;  %4461 = vmatmul.mubr.msk.bf16.gmra.mrb[12].mxu0 %vm396_vm1, %v4859_v34  ;;  %v4882_v32 = vld [vmem:[%s5032_s6 + $0x140] sm:$0xff]   ;;  %v5146_v34 = vld [vmem:[%s5032_s6 + $0x10] sm:$0xff]  }
  0x2c   : > { %4344 = vmatprep.mubr.msk.bf16.mxu1 %vm396_vm1, %v4860_v36  ;;  %4478 = vmatprep.mubr.msk.bf16.mxu0 %vm396_vm1, %v1808_v40  ;;  %v1857_v36 = vsel %vm850_vm2, %v1853_v29, %v1856_v27  ;;  %v1872_v40 = vshrl.u32 %v4880_v28, 16  ;;  %v1875_v41 = vshll.u32 %v4882_v32, 16  ;;  %v1879_v56 = vshrl.u32 %v4882_v32, 16  ;;  %v5225_v27 = vld [vmem:[%s5032_s6 + $0x28] sm:$0xf]  ;;  %v5229_v28 = vld [vmem:[%s5032_s6 + $0x38] sm:$0xff]  }
  0x2d   : > { %v2232_v29 = vshrl.u32 %v4023_v14, 16 }
  0x2e   : > { %v1874_v46 = vor.u32 %v1872_v40, %v1870_v13  ;;  %v1877_v47 = vrot.slane %v1875_v41, 1  ;;  %v5240_v41 = vld [vmem:[%s5032_s6 + $0x40] sm:$0xff]  }
  0x2f   : > { %v2234_v13 = vrot.slane %v2232_v29, 3  ;;  %v5295_v29 = vld [vmem:[%s5032_s6 + $0x4c] sm:$0xf] }
  0x30   : > { %v1878_v59 = vsel %vm850_vm2, %v1874_v46, %v1877_v47 }
  0x33   : > { %4345 = vmatmul.mubr.msk.bf16.gmra.mrb[16].mxu1 %vm396_vm1, %v4863_v48  ;;  %4479 = vmatmul.mubr.msk.bf16.vlgmr.msra.gmra.mrb[0].mxu0 %vm396_vm1, %v1815_v51  ;;  %v2113_v48 = vld [vmem:[%s5032_s6 + $0x4] sm:$0x8]  ;;  %v5177_v51 = vld [vmem:[%s5032_s6 + $0xc] sm:$0xf] }
  0x34   : > { %4348 = vmatprep.mubr.msk.bf16.mxu1 %vm396_vm1, %v4865_v49  ;;  %4507 = vmatpush3.bf16.msra.mxu0 %v2382_v52  ;;  %v5169_v49 = vld [vmem:[%s5032_s6 + $0x8] sm:$0xf]  ;;  %v5180_v52 = vld [vmem:[%s5032_s6 + $0x20] sm:$0xff]   ;;  %v4022_v61 = vcombine.low %v5177_v51, %v5127_v23 }
  0x35   : > { %4482 = vmatprep.mubr.msk.bf16.mxu0 %vm396_vm1, %v1822_v54  ;;  %4829 = vmatprep.subr.msk.bf16.mxu0 %vm439_vm0, %v5102_v57  ;;  %v1890_v54 = vshll.u32 %v5164_v44, 16  ;;  %v4021_v58 = vcombine.low %v2113_v48, %v5169_v49  ;;  %v5246_v48 = vld [vmem:[%s5032_s6 + $0x34] sm:$0xf]  ;;  %v4957_v23 = vld [vmem:[%s5032_s6 + $0x148] sm:$0xff]  }
  0x36   : > { %v2226_v7 = vshll.u32 %v4022_v61, 16 }
  0x37   : > { %v1892_v63 = vrot.slane %v1890_v54, 1  ;;  %v2218_v3 = vshll.u32 %v4021_v58, 16 }
  0x39   : > { %v1896_v40 = vor.u32 %v1894_v22, %v1892_v63  ;;  %v5289_v22 = vld [vmem:[%s5874_s1 + $0x20] sm:$0xf] }
  0x3b   : > { %4349 = vmatmul.mubr.msk.bf16.gmra.mrb[20].mxu1 %vm396_vm1, %v4867_v0  ;;  %4483 = vmatmul.mubr.msk.bf16.gmra.mrb[4].mxu0 %vm396_vm1, %v1829_v4  ;;  %v1881_v0 = vor.u32 %v1879_v56, %v1877_v47  ;;  %v1888_v4 = vor.u32 %v1886_v60, %v1884_v62  ;;  %v2238_v56 = vor.u32 %v2237_v43, %v2234_v13  ;;  %v5309_v13 = vld [vmem:[%s5032_s6 + $0x60] sm:$0xff]   ;;  %v851_v43 = vshrl.u32 %v5123_v17, 16 }
  0x3c   : > { %4352 = vmatprep.mubr.msk.bf16.mxu1 %vm396_vm1, %v4869_v1  ;;  %4486 = vmatprep.mubr.msk.bf16.mxu0 %vm396_vm1, %v1836_v6  ;;  %v2215_v1 = vshrl.u32 %v4021_v58, 16  ;;  %v2223_v6 = vshrl.u32 %v4022_v61, 16  ;;  %v5258_v58 = vld [vmem:[%s5032_s6 + $0x3c] sm:$0xf] }
  0x3d   : > { %v1885_v12 = vsel %vm850_vm2, %v1881_v0, %v1884_v62  ;;  %v1893_v18 = vsel %vm850_vm2, %v1888_v4, %v1892_v63  ;;  %v5264_v63 = vld [vmem:[%s5032_s6 + $0x48] sm:$0xff]   ;;  %v853_v4 = vshll.u32 %v5123_v17, 16 }
  0x3e   : > { %v2217_v15 = vrot.slane %v2215_v1, 3  ;;  %v2225_v19 = vrot.slane %v2223_v6, 3  ;;  %v2823_v1 = vsel %vm439_vm0, %v5102_v57, 0 }
  0x43   : > { %4353 = vmatmul.mubr.msk.bf16.gmra.mrb[24].mxu1 %vm396_vm1, %v4871_v16  ;;  %4487 = vmatmul.mubr.msk.bf16.gmra.mrb[8].mxu0 %vm396_vm1, %v1843_v20  ;;  %v2220_v16 = vrot.slane %v2218_v3, 4  ;;  %v2228_v20 = vrot.slane %v2226_v7, 4  ;;  %v5271_v3 = vld [vmem:[%s5032_s6 + $0x50] sm:$0xff]  }
  0x44   : > { %4358 = vmatprep.mubr.msk.bf16.mxu1 %vm396_vm1, %v5123_v17  ;;  %4490 = vmatprep.mubr.msk.bf16.mxu0 %vm396_vm1, %v1850_v24  ;;  %v5222_v24 = vld [vmem:[%s5032_s6 + $0x24] sm:$0xf]  ;;  %v864_v17 = vshll.u32 %v5146_v34, 16 }
  0x45   : > { %v2221_v31 = vor.u32 %v2220_v16, %v2217_v15  ;;  %v2229_v32 = vor.u32 %v2228_v20, %v2225_v19  ;;  %v4025_v37 = vcombine.low %v5222_v24, %v5225_v27  ;;  %v5278_v15 = vld [vmem:[%s5032_s6 + $0x44] sm:$0xf] }
  0x47   : > { %v2230_v44 = vsel %vm2213_vm3, %v2221_v31, %v2229_v32  ;;  %v2250_v53 = vshrl.u32 %v4025_v37, 16  ;;  %v2253_v54 = vshll.u32 %v4025_v37, 16  ;;  %v2239_v6 = vsel %vm2213_vm3, %v2229_v32, %v2238_v56 }
  0x49   : > { %v2252_v7 = vrot.slane %v2250_v53, 3 }
  0x4b   : > { %4359 = vmatmul.mubr.msk.bf16.vlgmr.msra.gmra.mrb[0].mxu1 %vm396_vm1, %v5143_v33  ;;  %4491 = vmatmul.mubr.msk.bf16.gmra.mrb[12].mxu0 %vm396_vm1, %v1857_v36  ;;  %v2244_v36 = vshll.u32 %v4024_v21, 16  ;;  %v5284_v21 = vld [vmem:[%s5032_s6 + $0x48] sm:$0xf] }
  0x4c   : > { %4362 = vmatprep.mubr.msk.bf16.mxu1 %vm396_vm1, %v5146_v34  ;;  %4494 = vmatprep.mubr.msk.bf16.mxu0 %vm396_vm1, %v1864_v38  ;;  %v5234_v38 = vld [vmem:[%s5032_s6 + $0x2c] sm:$0xf]  ;;  %v4029_v37 = vcombine.low %v5278_v15, %v5284_v21 }
  0x4d   : > { %4387 = vmatpush3.bf16.msra.mxu1 %v992_v39  ;;  %v5237_v39 = vld [vmem:[%s5032_s6 + $0x30] sm:$0xf]  ;;  %v2246_v46 = vrot.slane %v2244_v36, 4  ;;  %v5880_v25 = vcombine.low %v5225_v27, %v5234_v38 }
  0x4e   : > { %4824 = vmatprep.subr.msk.bf16.mxu1 %vm439_vm0, %v5157_v42  ;;  %v4026_v47 = vcombine.low %v5234_v38, %v5237_v39  ;;  %v4934_v27 = vld [vmem:[%s5032_s6 + $0x1ac] sm:$0xff]  }
  0x4f   : > { %v2247_v60 = vor.u32 %v2246_v46, %v2243_v45  ;;  %v855_v46 = vrot.slane %v853_v4, 1 }
  0x50   : > { %v2259_v61 = vshrl.u32 %v4026_v47, 16  ;;  %v2262_v62 = vshll.u32 %v4026_v47, 16  ;;  %v4030_v47 = vcombine.low %v5295_v29, %v5298_v30 }
  0x51   : > { %v2248_v16 = vsel %vm2213_vm3, %v2238_v56, %v2247_v60 }
  0x52   : > { %v2264_v19 = vrot.slane %v2262_v62, 4 }
  0x53   : > { %4363 = vmatmul.mubr.msk.bf16.gmra.mrb[4].mxu1 %vm396_vm1, %v5174_v50  ;;  %4495 = vmatmul.mubr.msk.bf16.gmra.mrb[16].mxu0 %vm396_vm1, %v1871_v55  ;;  %v5254_v55 = vld [vmem:[%s5032_s6 + $0x38] sm:$0xf] }
  0x54   : > { %4366 = vmatprep.mubr.msk.bf16.mxu1 %vm396_vm1, %v5180_v52  ;;  %4498 = vmatprep.mubr.msk.bf16.mxu0 %vm396_vm1, %v1878_v59  ;;  %v5261_v59 = vld [vmem:[%s5032_s6 + $0x40] sm:$0xf]  ;;  %v4027_v0 = vcombine.low %v5246_v48, %v5254_v55 }
  0x55   : > { %v4028_v14 = vcombine.low %v5258_v58, %v5261_v59  ;;  %v5883_v38 = vcombine.low %v5261_v59, %v5278_v15  ;;  %v4940_v15 = vld [vmem:[%s5032_s6 + $0x1c4] ss:$0 sps:$4 sm:$0x11]  }
  0x56   : > { %v2268_v57 = vshrl.u32 %v4027_v0, 16  ;;  %v2271_v20 = vshll.u32 %v4027_v0, 16  ;;  %v2286_v0 = vshrl.u32 %v4029_v37, 16 }
  0x57   : > { %v2277_v32 = vshrl.u32 %v4028_v14, 16  ;;  %v2280_v35 = vshll.u32 %v4028_v14, 16  ;;  %v5325_v14 = vld [vmem:[%s5032_s6 + $0x54] sm:$0xf] }
  0x58   : > { %v2270_v45 = vrot.slane %v2268_v57, 3 }
  0x59   : > { %v2279_v56 = vrot.slane %v2277_v32, 3  ;;  %v5334_v32 = vld [vmem:[%s5032_s6 + $0x5c] sm:$0xf] }
  0x5b   : > { %4367 = vmatmul.mubr.msk.bf16.gmra.mrb[8].mxu1 %vm396_vm1, %v5198_v8  ;;  %4499 = vmatmul.mubr.msk.bf16.gmra.mrb[20].mxu0 %vm396_vm1, %v1885_v12  ;;  %v2255_v12 = vrot.slane %v2253_v54, 4  ;;  %v2273_v54 = vrot.slane %v2271_v20, 4  ;;  %v2288_v20 = vrot.slane %v2286_v0, 3 }
  0x5c   : > { %4370 = vmatprep.mubr.msk.bf16.mxu1 %vm396_vm1, %v5207_v11  ;;  %4502 = vmatprep.mubr.msk.bf16.mxu0 %vm396_vm1, %v1893_v18  ;;  %v2261_v18 = vrot.slane %v2259_v61, 3  ;;  %v2282_v61 = vrot.slane %v2280_v35, 4  ;;  %v5337_v35 = vld [vmem:[%s5032_s6 + $0x60] sm:$0xf] }
  0x5d   : > { %v2256_v31 = vor.u32 %v2255_v12, %v2252_v7  ;;  %v2295_v7 = vshrl.u32 %v4030_v47, 16  ;;  %v2298_v12 = vshll.u32 %v4030_v47, 16 }
  0x5e   : > { %v2265_v36 = vor.u32 %v2264_v19, %v2261_v18  ;;  %v2274_v18 = vor.u32 %v2273_v54, %v2270_v45  ;;  %v868_v19 = vshrl.u32 %v5146_v34, 16  ;;  %v2283_v57 = vor.u32 %v2282_v61, %v2279_v56 }
  0x5f   : > { %v2257_v53 = vsel %vm2213_vm3, %v2247_v60, %v2256_v31  ;;  %v856_v60 = vor.u32 %v855_v46, %v851_v43  ;;  %v4900_v43 = vld [vmem:[%s5032_s6 + $0x68] ss:$0 sps:$4 sm:$0x11]   ;;  %v2297_v45 = vrot.slane %v2295_v7, 3  ;;  %v4032_v61 = vcombine.low %v5334_v32, %v5337_v35 }
  0x60   : > { %v2266_v62 = vsel %vm2213_vm3, %v2256_v31, %v2265_v36  ;;  %v2275_v34 = vsel %vm2213_vm3, %v2265_v36, %v2274_v18 }
  0x63   : > { %4371 = vmatmul.mubr.msk.bf16.gmra.mrb[12].mxu1 %vm396_vm1, %v5229_v28  ;;  %4503 = vmatmul.mubr.msk.bf16.gmra.mrb[24].mxu0 %vm396_vm1, %v1896_v40  ;;  %v5306_v40 = vld [vmem:[%s5032_s6 + $0x58] sm:$0xff]  }
  0x64   : > { %4374 = vmatprep.mubr.msk.bf16.mxu1 %vm396_vm1, %v5240_v41  ;;  %4508 = vmatprep.mubr.msk.bf16.mxu0 %vm396_vm1, %v2230_v44  ;;  %v857_v44 = vshll.u32 %v5143_v33, 16 }
  0x66   : > { %v859_v4 = vrot.slane %v857_v44, 1 }
  0x68   : > { %v860_v46 = vsel %vm850_vm2, %v856_v60, %v859_v4  ;;  %v1306_v60 = vsel %vm439_vm0, %v5157_v42, 0  ;;  %v5369_v42 = vld [vmem:[%s5032_s6 + $0x70] sm:$0x1] }
  0x6b   : > { %4375 = vmatmul.mubr.msk.bf16.gmra.mrb[16].mxu1 %vm396_vm1, %v5264_v63  ;;  %4509 = vmatmul.mubr.msk.bf16.vlgmr.msra.gmra.mrb[0].mxu0 %vm396_vm1, %v2239_v6  ;;  %v861_v6 = vshrl.u32 %v5143_v33, 16  ;;  %v871_v33 = vshll.u32 %v5174_v50, 16 }
  0x6c   : > { %4378 = vmatprep.mubr.msk.bf16.mxu1 %vm396_vm1, %v5271_v3  ;;  %4537 = vmatpush3.bf16.msra.mxu0 %v2823_v1  ;;  %v2289_v1 = vshll.u32 %v4029_v37, 16  ;;  %v866_v37 = vrot.slane %v864_v17, 1  ;;  %v878_v17 = vshll.u32 %v5180_v52, 16 }
  0x6d   : > { %4512 = vmatprep.mubr.msk.bf16.mxu0 %vm396_vm1, %v2248_v16  ;;  %4830 = vmatprep.subr.msk.bf16.mxu0 %vm439_vm0, %v5289_v22  ;;  %v5328_v16 = vld [vmem:[%s5032_s6 + $0x58] sm:$0xf]  ;;  %v863_v47 = vor.u32 %v861_v6, %v859_v4  ;;  %v873_v56 = vrot.slane %v871_v33, 1  ;;  %v5361_v33 = vld [vmem:[%s5032_s6 + $0x68] sm:$0xf] }
  0x6e   : > { %v2291_v31 = vrot.slane %v2289_v1, 4  ;;  %v4031_v44 = vcombine.low %v5325_v14, %v5328_v16  ;;  %v870_v54 = vor.u32 %v868_v19, %v866_v37  ;;  %v875_v1 = vshrl.u32 %v5174_v50, 16  ;;  %v5358_v19 = vld [vmem:[%s5032_s6 + $0x64] sm:$0xf] }
  0x6f   : > { %v867_v50 = vsel %vm850_vm2, %v863_v47, %v866_v37  ;;  %v885_v47 = vshll.u32 %v5198_v8, 16  ;;  %v5886_v59 = vcombine.low %v5328_v16, %v5334_v32 }
  0x70   : > { %v2292_v0 = vor.u32 %v2291_v31, %v2288_v20  ;;  %v2304_v4 = vshrl.u32 %v4031_v44, 16  ;;  %v2307_v6 = vshll.u32 %v4031_v44, 16  ;;  %v874_v7 = vsel %vm850_vm2, %v870_v54, %v873_v56 }
  0x71   : > { %v877_v31 = vor.u32 %v875_v1, %v873_v56  ;;  %v882_v44 = vshrl.u32 %v5180_v52, 16  ;;  %v4109_v54 = vcombine.low %v5195_v5, %v5201_v9  ;;  %v4910_v1 = vld [vmem:[%s5032_s6 + $0x80] sm:$0xff]   ;;  %v5881_v9 = vcombine.low %v5237_v39, %v5246_v48  ;;  %v4936_v48 = vld [vmem:[%s5032_s6 + $0x1b4] sm:$0xff]  }
  0x72   : > { %v2293_v20 = vsel %vm2213_vm3, %v2283_v57, %v2292_v0  ;;  %v2309_v37 = vrot.slane %v2307_v6, 4  ;;  %v896_v6 = vshrl.u32 %v5207_v11, 16  ;;  %v4930_v5 = vld [vmem:[%s5032_s6 + $0x19c] sm:$0xff]   ;;  %v5884_v39 = vcombine.low %v5284_v21, %v5295_v29 }
  0x73   : > { %4379 = vmatmul.mubr.msk.bf16.gmra.mrb[20].mxu1 %vm396_vm1, %v5306_v40  ;;  %4513 = vmatmul.mubr.msk.bf16.gmra.mrb[4].mxu0 %vm396_vm1, %v2257_v53  ;;  %v2300_v53 = vrot.slane %v2298_v12, 4  ;;  %v2313_v12 = vshrl.u32 %v4032_v61, 16  ;;  %v5887_v21 = vcombine.low %v5337_v35, %v5358_v19 }
  0x74   : > { %4382 = vmatprep.mubr.msk.bf16.mxu1 %vm396_vm1, %v5309_v13  ;;  %4516 = vmatprep.mubr.msk.bf16.mxu0 %vm396_vm1, %v2266_v62  ;;  %v2284_v62 = vsel %vm2213_vm3, %v2274_v18, %v2283_v57  ;;  %v2316_v18 = vshll.u32 %v4032_v61, 16  ;;  %v4033_v57 = vcombine.low %v5358_v19, %v5361_v33 }
  0x75   : > { %v2301_v36 = vor.u32 %v2300_v53, %v2297_v45  ;;  %v2306_v45 = vrot.slane %v2304_v4, 3  ;;  %v4107_v53 = vcombine.low %v5169_v49, %v5177_v51  ;;  %v2315_v56 = vrot.slane %v2313_v12, 3  ;;  %v4944_v4 = vld [vmem:[%s5874_s1 + $0x10] sm:$0xf]  ;;  %v4956_v49 = vld [vmem:[%s5032_s6 + $0x140] sm:$0xff]  }
  0x76   : > { %v2318_v61 = vrot.slane %v2316_v18, 4  ;;  %v5879_v51 = vcombine.low %v5204_v10, %v5222_v24  ;;  %v5882_v10 = vcombine.low %v5254_v55, %v5258_v58  ;;  %v4932_v24 = vld [vmem:[%s5032_s6 + $0x1a4] sm:$0xff]   ;;  %v4938_v55 = vld [vmem:[%s5032_s6 + $0x1bc] sm:$0xff]   ;;  %v5885_v58 = vcombine.low %v5298_v30, %v5325_v14 }
  0x77   : > { %v2310_v12 = vor.u32 %v2309_v37, %v2306_v45  ;;  %v2325_v45 = vshll.u32 %v4033_v57, 16  ;;  %v4120_v30 = vcombine.low %v5369_v42, %v5369_v42 }
  0x78   : > { %v2319_v37 = vor.u32 %v2318_v61, %v2315_v56  ;;  %v889_v61 = vshrl.u32 %v5198_v8, 16  ;;  %v246_v8 = vld [vmem:[%s5875_s2 + $0x18] sm:$0xff] }
  0x7b   : > { %4383 = vmatmul.mubr.msk.bf16.gmra.mrb[24].mxu1 %vm396_vm1, %v4900_v43  ;;  %4517 = vmatmul.mubr.msk.bf16.gmra.mrb[8].mxu0 %vm396_vm1, %v2275_v34  ;;  %v880_v43 = vrot.slane %v878_v17, 1  ;;  %v2302_v34 = vsel %vm2213_vm3, %v2292_v0, %v2301_v36  ;;  %v887_v0 = vrot.slane %v885_v47, 1  ;;  %v243_v17 = vld [vmem:[%s5875_s2] sm:$0xff] }
  0x7c   : > { %4388 = vmatprep.mubr.msk.bf16.mxu1 %vm396_vm1, %v860_v46  ;;  %4520 = vmatprep.mubr.msk.bf16.mxu0 %vm396_vm1, %v2284_v62  ;;  %v5366_v46 = vld [vmem:[%s5032_s6 + $0x6c] sm:$0xf] }
  0x7d   : > { %v4034_v62 = vcombine.low %v5366_v46, %v5369_v42  ;;  %v884_v18 = vor.u32 %v882_v44, %v880_v43  ;;  %v4966_v44 = vmov 0   ;;  %v5888_v29 = vcombine.low %v5361_v33, %v5366_v46 }
  0x7e   : > { %4842 = vset.pattern.permute.xlu0 %v4966_v44  ;;  %4843 = vset.pattern.permute.xlu1 %v4966_v44  ;;  %v4909_v44 = vld [vmem:[%s5032_s6 + $0x78] sm:$0xf8]  }
  0x7f   : > { %v2331_v47 = vshrl.u32 %v4034_v62, 16  ;;  %v2334_v52 = vshll.u32 %v4034_v62, 16  ;;  %3368 = vperm.xlu0 %4842, %v243_v17   ;;  %v888_v56 = vsel %vm850_vm2, %v884_v18, %v887_v0  ;;  %v244_v62 = vld [vmem:[%s5875_s2 + $0x8] sm:$0xff]  ;;  %v899_v17 = vshll.u32 %v5229_v28, 16 }
  0x83   : > { %4389 = vmatmul.mubr.msk.bf16.vlgmr.msra.gmra.mrb[0].mxu1 %vm396_vm1, %v867_v50  ;;  %4521 = vmatmul.mubr.msk.bf16.gmra.mrb[12].mxu0 %vm396_vm1, %v2293_v20  ;;  %v2322_v20 = vshrl.u32 %v4033_v57, 16  ;;  %v2311_v57 = vsel %vm2213_vm3, %v2301_v36, %v2310_v12  ;;  %v2327_v50 = vrot.slane %v2325_v45, 4  ;;  %v2336_v36 = vrot.slane %v2334_v52, 4 }
  0x84   : > { %4392 = vmatprep.mubr.msk.bf16.mxu1 %vm396_vm1, %v874_v7  ;;  %4524 = vmatprep.mubr.msk.bf16.mxu0 %vm396_vm1, %v2302_v34  ;;  %v245_v7 = vld [vmem:[%s5875_s2 + $0x10] sm:$0xff]  ;;  %v881_v34 = vsel %vm850_vm2, %v877_v31, %v880_v43  ;;  %v2320_v31 = vsel %vm2213_vm3, %v2310_v12, %v2319_v37  ;;  %v2333_v43 = vrot.slane %v2331_v47, 3  ;;  %v247_v12 = vld [vmem:[%s5875_s2 + $0x20] sm:$0xff]  ;;  %v901_v45 = vrot.slane %v899_v17, 1 }
  0x85   : > { %4417 = vmatpush3.bf16.msra.mxu1 %v1306_v60  ;;  %v892_v60 = vshll.u32 %v5207_v11, 16  ;;  %3378 = vperm.xlu1 %4843, %v245_v7   ;;  %v891_v11 = vor.u32 %v889_v61, %v887_v0  ;;  %v2656_v7 = vshrl.u32 %v4909_v44, 16  ;;  %v248_v0 = vld [vmem:[%s5875_s2 + $0x28] sm:$0xff] }
  0x86   : > { %4826 = vmatprep.subr.msk.bf16.mxu1 %vm439_vm0, %v4944_v4  ;;  %v2324_v4 = vrot.slane %v2322_v20, 3  ;;  %3373 = vperm.xlu0 %4842, %v244_v62   ;;  %v2337_v47 = vor.u32 %v2336_v36, %v2333_v43  ;;  %v2667_v62 = vshll.u32 %v4910_v1, 16  ;;  %v4911_v61 = vld [vmem:[%s5032_s6 + $0x88] sm:$0xff]  }
  0x87   : > { %v894_v18 = vrot.slane %v892_v60, 1  ;;  %v2659_v60 = vshll.u32 %v4909_v44, 16  ;;  %v913_v44 = vshll.u32 %v5264_v63, 16 }
  0x88   : > { %v2328_v52 = vor.u32 %v2327_v50, %v2324_v4  ;;  %v903_v50 = vshrl.u32 %v5229_v28, 16  ;;  %v249_v4 = vld [vmem:[%s5875_s2 + $0x30] sm:$0xff]  ;;  %v2669_v28 = vrot.slane %v2667_v62, 4 }
  0x89   : > { %v898_v20 = vor.u32 %v896_v6, %v894_v18  ;;  %3383 = vperm.xlu1 %4843, %v246_v8   ;;  %v910_v6 = vshrl.u32 %v5240_v41, 16  ;;  %v2661_v36 = vrot.slane %v2659_v60, 4  ;;  %v915_v60 = vrot.slane %v913_v44, 1 }
  0x8a   : > { %3388 = vperm.xlu0 %4842, %v247_v12   ;;  %v2338_v43 = vsel %vm2213_vm3, %v2328_v52, %v2337_v47  ;;  %v2673_v12 = vshrl.u32 %v4911_v61, 16  ;;  %v924_v44 = vshrl.u32 %v5271_v3, 16 }
  0x8b   : > { %4393 = vmatmul.mubr.msk.bf16.gmra.mrb[4].mxu1 %vm396_vm1, %v881_v34  ;;  %4525 = vmatmul.mubr.msk.bf16.gmra.mrb[16].mxu0 %vm396_vm1, %v2311_v57  ;;  %v2664_v34 = vshrl.u32 %v4910_v1, 16  ;;  %v906_v57 = vshll.u32 %v5240_v41, 16  ;;  %v2329_v1 = vsel %vm2213_vm3, %v2319_v37, %v2328_v52  ;;  %v902_v17 = vsel %vm850_vm2, %v898_v20, %v901_v45  ;;  %v250_v41 = vld [vmem:[%s5875_s2 + $0x38] sm:$0xff]  ;;  %v251_v52 = vld [vmem:[%s5875_s2 + $0x40] sm:$0xff] }
  0x8c   : > { %4396 = vmatprep.mubr.msk.bf16.mxu1 %vm396_vm1, %v888_v56  ;;  %4528 = vmatprep.mubr.msk.bf16.mxu0 %vm396_vm1, %v2320_v31  ;;  %v895_v56 = vsel %vm850_vm2, %v891_v11, %v894_v18  ;;  %v2658_v31 = vrot.slane %v2656_v7, 3  ;;  %v4912_v18 = vld [vmem:[%s5032_s6 + $0x90] sm:$0xff]   ;;  %v905_v37 = vor.u32 %v903_v50, %v901_v45  ;;  %v2676_v20 = vshll.u32 %v4911_v61, 16  ;;  %v252_v45 = vld [vmem:[%s5875_s2 + $0x48] sm:$0xff] }
  0x8d   : > { %3393 = vperm.xlu1 %4843, %v248_v0   ;;  %v2666_v8 = vrot.slane %v2664_v34, 3  ;;  %v908_v11 = vrot.slane %v906_v57, 1  ;;  %v2682_v0 = vshrl.u32 %v4912_v18, 16  ;;  %v2685_v57 = vshll.u32 %v4912_v18, 16  ;;  %v254_v18 = vld [vmem:[%s5875_s2 + $0x58] sm:$0xff] }
  0x8e   : > { %3398 = vperm.xlu0 %4842, %v249_v4   ;;  %v2662_v34 = vor.u32 %v2661_v36, %v2658_v31  ;;  %v917_v61 = vshrl.u32 %v5264_v63, 16  ;;  %v2678_v4 = vrot.slane %v2676_v20, 4  ;;  %v927_v31 = vshll.u32 %v5306_v40, 16  ;;  %v4915_v63 = vld [vmem:[%s5032_s6 + $0xa0] sm:$0xff]  }
  0x8f   : > { %v912_v7 = vor.u32 %v910_v6, %v908_v11  ;;  %v2670_v62 = vor.u32 %v2669_v28, %v2666_v8  ;;  %v909_v50 = vsel %vm850_vm2, %v905_v37, %v908_v11  ;;  %v2675_v6 = vrot.slane %v2673_v12, 3  ;;  %v255_v37 = vld [vmem:[%s5875_s2 + $0x60] sm:$0xff] }
  0x90   : > { %v2684_v8 = vrot.slane %v2682_v0, 3  ;;  %v2687_v28 = vrot.slane %v2685_v57, 4  ;;  %v929_v20 = vrot.slane %v927_v31, 1  ;;  %v2700_v57 = vshrl.u32 %v4915_v63, 16 }
  0x91   : > { %3403 = vperm.xlu1 %4843, %v250_v41   ;;  %v2671_v36 = vsel %vm2213_vm3, %v2662_v34, %v2670_v62  ;;  %v2679_v11 = vor.u32 %v2678_v4, %v2675_v6  ;;  %v5490_v34 = vld [vmem:[%s5032_s6 + $0x68] ss:$0 sps:$4 sm:$0x33]   ;;  %v931_v6 = vshrl.u32 %v5306_v40, 16  ;;  %v938_v4 = vshrl.u32 %v5309_v13, 16  ;;  %v4917_v40 = vld [vmem:[%s5032_s6 + $0xb0] sm:$0xff]  }
  0x92   : > { %3408 = vperm.xlu0 %4842, %v251_v52   ;;  %v2688_v0 = vor.u32 %v2687_v28, %v2684_v8 }
  0x93   : > { %4397 = vmatmul.mubr.msk.bf16.gmra.mrb[8].mxu1 %vm396_vm1, %v895_v56  ;;  %4529 = vmatmul.mubr.msk.bf16.gmra.mrb[20].mxu0 %vm396_vm1, %v2329_v1  ;;  %v920_v56 = vshll.u32 %v5271_v3, 16  ;;  %v253_v1 = vld [vmem:[%s5875_s2 + $0x50] sm:$0xff]  ;;  %v919_v3 = vor.u32 %v917_v61, %v915_v60  ;;  %v2680_v61 = vsel %vm2213_vm3, %v2670_v62, %v2679_v11  ;;  %v2702_v62 = vrot.slane %v2700_v57, 3 }
  0x94   : > { %4400 = vmatprep.mubr.msk.bf16.mxu1 %vm396_vm1, %v902_v17  ;;  %4532 = vmatprep.mubr.msk.bf16.mxu0 %vm396_vm1, %v2338_v43  ;;  %v916_v17 = vsel %vm850_vm2, %v912_v7, %v915_v60  ;;  %v4913_v43 = vld [vmem:[%s5032_s6 + $0x98] sm:$0xff]   ;;  %v2703_v60 = vshll.u32 %v4915_v63, 16  ;;  %v933_v63 = vor.u32 %v931_v6, %v929_v20 }
  0x95   : > { %3413 = vperm.xlu1 %4843, %v252_v45   ;;  %v922_v41 = vrot.slane %v920_v56, 1  ;;  %v2691_v52 = vshrl.u32 %v4913_v43, 16  ;;  %v2694_v7 = vshll.u32 %v4913_v43, 16  ;;  %v256_v45 = vld [vmem:[%s5875_s2 + $0x68] sm:$0xff]  ;;  %v3055_v56 = vsel %vm439_vm0, %v5289_v22, 0  ;;  %v4918_v6 = vld [vmem:[%s5032_s6 + $0xb8] sm:$0xff]  }
  0x96   : > { %3418 = vperm.xlu0 %4842, %v253_v1   ;;  %v257_v1 = vld [vmem:[%s5875_s2 + $0x70] sm:$0xff]  ;;  %v942_v22 = vshll.u32 %v5490_v34, 16  ;;  %v4916_v43 = vld [vmem:[%s5032_s6 + $0xa8] sm:$0xff]   ;;  %v2705_v28 = vrot.slane %v2703_v60, 4 }
  0x97   : > { %v926_v12 = vor.u32 %v924_v44, %v922_v41  ;;  %v2693_v44 = vrot.slane %v2691_v52, 3  ;;  %v2696_v31 = vrot.slane %v2694_v7, 4  ;;  %v2718_v7 = vshrl.u32 %v4917_v40, 16  ;;  %v261_v60 = vld [vmem:[%s5875_s2 + $0x90] sm:$0xff] }
  0x98   : > { %v2706_v52 = vor.u32 %v2705_v28, %v2702_v62 }
  0x99   : > { %3423 = vperm.xlu1 %4843, %v254_v18  }
  0x9a   : > { %3428 = vperm.xlu0 %4842, %v255_v37   ;;  %v2709_v37 = vshrl.u32 %v4916_v43, 16 }
  0x9b   : > { %4401 = vmatmul.mubr.msk.bf16.gmra.mrb[12].mxu1 %vm396_vm1, %v909_v50  ;;  %4533 = vmatmul.mubr.msk.bf16.gmra.mrb[24].mxu0 %vm396_vm1, %v2337_v47  ;;  %v934_v47 = vshll.u32 %v5309_v13, 16  ;;  %v923_v50 = vsel %vm850_vm2, %v919_v3, %v922_v41  ;;  %v258_v13 = vld [vmem:[%s5875_s2 + $0x78] sm:$0xff]  ;;  %v259_v41 = vld [vmem:[%s5875_s2 + $0x80] sm:$0xff]  ;;  %v2697_v3 = vor.u32 %v2696_v31, %v2693_v44  ;;  %v946_v31 = vshrl.u32 %v5490_v34, 16 }
  0x9c   : > { %4404 = vmatprep.mubr.msk.bf16.mxu1 %vm396_vm1, %v916_v17  ;;  %4538 = vmatprep.mubr.msk.bf16.mxu0 %vm396_vm1, %v2671_v36  ;;  %v930_v17 = vsel %vm850_vm2, %v926_v12, %v929_v20  ;;  %v2689_v36 = vsel %vm2213_vm3, %v2679_v11, %v2688_v0  ;;  %v944_v11 = vrot.slane %v942_v22, 1  ;;  %v2712_v12 = vshll.u32 %v4916_v43, 16  ;;  %v260_v20 = vld [vmem:[%s5875_s2 + $0x88] sm:$0xff]  ;;  %v4919_v44 = vld [vmem:[%s5032_s6 + $0xc0] sm:$0xff]  }
  0x9d   : > { %3433 = vperm.xlu1 %4843, %v256_v45   ;;  %v936_v8 = vrot.slane %v934_v47, 1  ;;  %v2721_v47 = vshll.u32 %v4917_v40, 16  ;;  %v2698_v45 = vsel %vm2213_vm3, %v2688_v0, %v2697_v3  ;;  %v262_v0 = vld [vmem:[%s5875_s2 + $0x98] sm:$0xff]  ;;  %v263_v22 = vld [vmem:[%s5875_s2 + $0xa0] sm:$0xff]  ;;  %v2736_v62 = vshrl.u32 %v4919_v44, 16 }
  0x9e   : > { %3438 = vperm.xlu0 %4842, %v257_v1   ;;  %v2720_v1 = vrot.slane %v2718_v7, 3  ;;  %v2739_v28 = vshll.u32 %v4919_v44, 16  ;;  %v948_v40 = vor.u32 %v946_v31, %v944_v11 }
  0x9f   : > { %v940_v18 = vor.u32 %v938_v4, %v936_v8  ;;  %v937_v57 = vsel %vm850_vm2, %v933_v63, %v936_v8  ;;  %v2707_v4 = vsel %vm2213_vm3, %v2697_v3, %v2706_v52  ;;  %v2730_v8 = vshll.u32 %v4918_v6, 16  ;;  %v265_v63 = vld [vmem:[%s5875_s2 + $0xb0] sm:$0xff] }
  0xa0   : > { %v2738_v7 = vrot.slane %v2736_v62, 3  ;;  %v4946_v62 = vld [vmem:[%s5032_s6 + $0xf0] sm:$0xff]  }
  0xa1   : > { %3443 = vperm.xlu1 %4843, %v258_v13   ;;  %v264_v13 = vld [vmem:[%s5875_s2 + $0xa8] sm:$0xff]  ;;  %v2732_v3 = vrot.slane %v2730_v8, 4  ;;  %v4923_v8 = vld [vmem:[%s5032_s6 + $0xe0] sm:$0x1f]  }
  0xa2   : > { %3448 = vperm.xlu0 %4842, %v259_v41  }
  0xa3   : > { %4405 = vmatmul.mubr.msk.bf16.gmra.mrb[16].mxu1 %vm396_vm1, %v923_v50  ;;  %4539 = vmatmul.mubr.msk.bf16.vlgmr.msra.gmra.mrb[0].mxu0 %vm396_vm1, %v2680_v61  ;;  %v2711_v50 = vrot.slane %v2709_v37, 3  ;;  %v2714_v61 = vrot.slane %v2712_v12, 4  ;;  %v4920_v37 = vld [vmem:[%s5032_s6 + $0xc8] sm:$0xff]  }
  0xa4   : > { %4408 = vmatprep.mubr.msk.bf16.mxu1 %vm396_vm1, %v930_v17  ;;  %4567 = vmatpush3.bf16.msra.mxu0 %v3055_v56  ;;  %v945_v56 = vsel %vm850_vm2, %v940_v18, %v944_v11  ;;  %v2723_v17 = vrot.slane %v2721_v47, 4  ;;  %v2741_v47 = vrot.slane %v2739_v28, 4  ;;  %v4921_v11 = vld [vmem:[%s5032_s6 + $0xd0] sm:$0xff]   ;;  %v4947_v28 = vld [vmem:[%s5032_s6 + $0xf8] sm:$0xff]  }
  0xa5   : > { %4542 = vmatprep.mubr.msk.bf16.mxu0 %vm396_vm1, %v2689_v36  ;;  %3453 = vperm.xlu1 %4843, %v260_v20   ;;  %v2715_v43 = vor.u32 %v2714_v61, %v2711_v50  ;;  %v2727_v36 = vshrl.u32 %v4918_v6, 16  ;;  %v266_v20 = vld [vmem:[%s5875_s2 + $0xb8] sm:$0xff]  ;;  %v2754_v61 = vshrl.u32 %v4921_v11, 16  ;;  %v2757_v6 = vshll.u32 %v4921_v11, 16 }
  0xa6   : > { %3458 = vperm.xlu0 %4842, %v261_v60   ;;  %v2724_v34 = vor.u32 %v2723_v17, %v2720_v1  ;;  %v2742_v50 = vor.u32 %v2741_v47, %v2738_v7  ;;  %v269_v1 = vld [vmem:[%s5875_s2 + $0xd0] sm:$0x3] }
  0xa7   : > { %v2716_v18 = vsel %vm2213_vm3, %v2706_v52, %v2715_v43  ;;  %v2729_v41 = vrot.slane %v2727_v36, 3  ;;  %v267_v52 = vld [vmem:[%s5875_s2 + $0xc0] sm:$0xff]  ;;  %v2759_v36 = vrot.slane %v2757_v6, 4  ;;  %v4953_v6 = vld [vmem:[%s5032_s6 + $0x128] sm:$0xff]  }
  0xa8   : > { %v2725_v12 = vsel %vm2213_vm3, %v2715_v43, %v2724_v34  ;;  %v2756_v43 = vrot.slane %v2754_v61, 3  ;;  %v4952_v61 = vld [vmem:[%s5032_s6 + $0x120] sm:$0xff]  }
  0xa9   : > { %3463 = vperm.xlu1 %4843, %v262_v0   ;;  %v2733_v60 = vor.u32 %v2732_v3, %v2729_v41  ;;  %v4922_v0 = vld [vmem:[%s5032_s6 + $0xd8] sm:$0xff]   ;;  %v2775_v41 = vshll.u32 %v4923_v8, 16 }
  0xaa   : > { %3468 = vperm.xlu0 %4842, %v263_v22  }
  0xab   : > { %4409 = vmatmul.mubr.msk.bf16.gmra.mrb[20].mxu1 %vm396_vm1, %v937_v57  ;;  %4543 = vmatmul.mubr.msk.bf16.gmra.mrb[4].mxu0 %vm396_vm1, %v2698_v45  ;;  %v4945_v57 = vld [vmem:[%s5032_s6 + $0xe8] sm:$0xff]   ;;  %v2745_v45 = vshrl.u32 %v4920_v37, 16  ;;  %v2734_v17 = vsel %vm2213_vm3, %v2724_v34, %v2733_v60  ;;  %v2743_v22 = vsel %vm2213_vm3, %v2733_v60, %v2742_v50  ;;  %v2777_v11 = vrot.slane %v2775_v41, 4 }
  0xac   : > { %4412 = vmatprep.mubr.msk.bf16.mxu1 %vm396_vm1, %v945_v56  ;;  %4546 = vmatprep.mubr.msk.bf16.mxu0 %vm396_vm1, %v2707_v4  ;;  %v2748_v56 = vshll.u32 %v4920_v37, 16  ;;  %v268_v4 = vld [vmem:[%s5875_s2 + $0xc8] sm:$0xff] }
  0xad   : > { %3473 = vperm.xlu1 %4843, %v264_v13   ;;  %v2747_v44 = vrot.slane %v2745_v45, 3  ;;  %v2766_v13 = vshll.u32 %v4922_v0, 16 }
  0xae   : > { %3478 = vperm.xlu0 %4842, %v265_v63   ;;  %v2750_v31 = vrot.slane %v2748_v56, 4  ;;  %v2760_v63 = vor.u32 %v2759_v36, %v2756_v43  ;;  %v4950_v56 = vld [vmem:[%s5032_s6 + $0x110] sm:$0xff]  }
  0xb0   : > { %v2751_v34 = vor.u32 %v2750_v31, %v2747_v44 }
  0xb1   : > { %3483 = vperm.xlu1 %4843, %v266_v20   ;;  %v4948_v20 = vld [vmem:[%s5032_s6 + $0x100] sm:$0xff]  }
  0xb2   : > { %3488 = vperm.xlu0 %4842, %v267_v52   ;;  %v2752_v3 = vsel %vm2213_vm3, %v2742_v50, %v2751_v34  ;;  %v2761_v7 = vsel %vm2213_vm3, %v2751_v34, %v2760_v63  ;;  %v4951_v50 = vld [vmem:[%s5032_s6 + $0x118] sm:$0xff]  }
  0xb3   : > { %4413 = vmatmul.mubr.msk.bf16.gmra.mrb[24].mxu1 %vm396_vm1, %v948_v40  ;;  %4547 = vmatmul.mubr.msk.bf16.gmra.mrb[8].mxu0 %vm396_vm1, %v2716_v18  ;;  %v2763_v40 = vshrl.u32 %v4922_v0, 16  ;;  %v2772_v18 = vshrl.u32 %v4923_v8, 16 }
  0xb4   : > { %4418 = vmatprep.mubr.msk.bf16.mxu1 %vm396_vm1, %v4945_v57  ;;  %4550 = vmatprep.mubr.msk.bf16.mxu0 %vm396_vm1, %v2725_v12  ;;  %v2768_v12 = vrot.slane %v2766_v13, 4 }
  0xb5   : > { %3493 = vperm.xlu1 %4843, %v268_v4   ;;  %v2765_v37 = vrot.slane %v2763_v40, 3  ;;  %v2774_v47 = vrot.slane %v2772_v18, 3  ;;  %v4954_v4 = vld [vmem:[%s5032_s6 + $0x130] sm:$0xff]  }
  0xb6   : > { %3498 = vperm.xlu0 %4842, %v269_v1   ;;  %v4955_v1 = vld [vmem:[%s5032_s6 + $0x138] sm:$0xff]  }
  0xb7   : > { %v2769_v57 = vor.u32 %v2768_v12, %v2765_v37  ;;  %v2778_v52 = vor.u32 %v2777_v11, %v2774_v47 }
  0xb9   : > { %v2770_v60 = vsel %vm2213_vm3, %v2760_v63, %v2769_v57  ;;  %v2779_v45 = vsel %vm2213_vm3, %v2769_v57, %v2778_v52 }
  0xbb   : > { %4419 = vmatmul.mubr.msk.bf16.vlgmr.msra.gmra.mrb[0].mxu1 %vm396_vm1, %v4946_v62  ;;  %4551 = vmatmul.mubr.msk.bf16.gmra.mrb[12].mxu0 %vm396_vm1, %v2734_v17 }
  0xbc   : > { %4422 = vmatprep.mubr.msk.bf16.mxu1 %vm396_vm1, %v4947_v28  ;;  %4554 = vmatprep.mubr.msk.bf16.mxu0 %vm396_vm1, %v2743_v22 }
  0xbd   : > { %4597 = vmatpush3.bf16.msra.mxu1 %v5014_v2  ;;  %v4949_v2 = vld [vmem:[%s5032_s6 + $0x108] sm:$0xff]  }
  0xc3   : > { %4423 = vmatmul.mubr.msk.bf16.gmra.mrb[4].mxu1 %vm396_vm1, %v4948_v20  ;;  %4555 = vmatmul.mubr.msk.bf16.gmra.mrb[16].mxu0 %vm396_vm1, %v2752_v3 }
  0xc4   : > { %4426 = vmatprep.mubr.msk.bf16.mxu1 %vm396_vm1, %v4949_v2  ;;  %4558 = vmatprep.mubr.msk.bf16.mxu0 %vm396_vm1, %v2761_v7 }
  0xcb   : > { %4427 = vmatmul.mubr.msk.bf16.gmra.mrb[8].mxu1 %vm396_vm1, %v4950_v56  ;;  %4559 = vmatmul.mubr.msk.bf16.gmra.mrb[20].mxu0 %vm396_vm1, %v2770_v60 }
  0xcc   : > { %4430 = vmatprep.mubr.msk.bf16.mxu1 %vm396_vm1, %v4951_v50  ;;  %4562 = vmatprep.mubr.msk.bf16.mxu0 %vm396_vm1, %v2779_v45 }
  0xd3   : > { %4431 = vmatmul.mubr.msk.bf16.gmra.mrb[12].mxu1 %vm396_vm1, %v4952_v61  ;;  %4563 = vmatmul.mubr.msk.bf16.gmra.mrb[24].mxu0 %vm396_vm1, %v2778_v52 }
  0xd4   : > { %4434 = vmatprep.mubr.msk.bf16.mxu1 %vm396_vm1, %v4953_v6  ;;  %4568 = vmatprep.mubr.msk.bf16.mxu0 %vm396_vm1, %v4107_v53 }
  0xdb   : > { %4435 = vmatmul.mubr.msk.bf16.gmra.mrb[16].mxu1 %vm396_vm1, %v4954_v4  ;;  %4569 = vmatmul.mubr.msk.bf16.vlgmr.msra.gmra.mrb[0].mxu0 %vm396_vm1, %v4108_v26  ;;  %v4928_v26 = vld [vmem:[%s5032_s6 + $0x150] ss:$0 sps:$4 sm:$0x11]   ;;  %s4832_s6 = smul.u32 108, %s5890_s19 }
  0xdc   : > { %4438 = vmatprep.mubr.msk.bf16.mxu1 %vm396_vm1, %v4955_v1  ;;  %4572 = vmatprep.mubr.msk.bf16.mxu0 %vm396_vm1, %v4109_v54 }
  0xdd   : > { %s5711_s9 = scalar_lea.vmem %s5876_s3, %s4832_s6 }
  0xe3   : > { %4439 = vmatmul.mubr.msk.bf16.gmra.mrb[20].mxu1 %vm396_vm1, %v4956_v49  ;;  %4573 = vmatmul.mubr.msk.bf16.gmra.mrb[4].mxu0 %vm396_vm1, %v5879_v51 }
  0xe4   : > { %4442 = vmatprep.mubr.msk.bf16.mxu1 %vm396_vm1, %v4957_v23  ;;  %4576 = vmatprep.mubr.msk.bf16.mxu0 %vm396_vm1, %v5880_v25 }
  0xeb   : > { %4443 = vmatmul.mubr.msk.bf16.gmra.mrb[24].mxu1 %vm396_vm1, %v4928_v26  ;;  %4577 = vmatmul.mubr.msk.bf16.gmra.mrb[8].mxu0 %vm396_vm1, %v5881_v9 }
  0xec   : > { %4464 = vmatprep.mubr.msk.bf16.mxu1 %vm396_vm1, %v4930_v5  ;;  %4580 = vmatprep.mubr.msk.bf16.mxu0 %vm396_vm1, %v5882_v10 }
  0xf3   : > { %4465 = vmatmul.mubr.msk.bf16.vlgmr.msra.gmra.mrb[16].mxu1 %vm396_vm1, %v4932_v24  ;;  %4581 = vmatmul.mubr.msk.bf16.gmra.mrb[12].mxu0 %vm396_vm1, %v5883_v38 }
  0xf4   : > { %4468 = vmatprep.mubr.msk.bf16.mxu1 %vm396_vm1, %v4934_v27  ;;  %4584 = vmatprep.mubr.msk.bf16.mxu0 %vm396_vm1, %v5884_v39 }
  0xfb   : > { %4469 = vmatmul.mubr.msk.bf16.gmra.mrb[20].mxu1 %vm396_vm1, %v4936_v48  ;;  %4585 = vmatmul.mubr.msk.bf16.gmra.mrb[16].mxu0 %vm396_vm1, %v5885_v58 }
  0xfc   : > { %4472 = vmatprep.mubr.msk.bf16.mxu1 %vm396_vm1, %v4938_v55  ;;  %4588 = vmatprep.mubr.msk.bf16.mxu0 %vm396_vm1, %v5886_v59 }
  0xfe   : > { %v3369_v54 = vpop.permute.xlu0 %3368 }
 0x103   : > { %4473 = vmatmul.mubr.msk.bf16.gmra.mrb[24].mxu1 %vm396_vm1, %v4940_v15  ;;  %4589 = vmatmul.mubr.msk.bf16.gmra.mrb[20].mxu0 %vm396_vm1, %v5887_v21 }
 0x104   : > { %4592 = vmatprep.mubr.msk.bf16.mxu0 %vm396_vm1, %v5888_v29  ;;  %v3379_v17 = vpop.permute.xlu1 %3378 }
 0x105   : > { %v3374_v33 = vpop.permute.xlu0 %3373 }
 0x108   : > { %v3384_v46 = vpop.permute.xlu1 %3383 }
 0x109   : > { %v3389_v43 = vpop.permute.xlu0 %3388 }
 0x10b   : > { %4593 = vmatmul.mubr.msk.bf16.gmra.mrb[24].mxu0 %vm396_vm1, %v4120_v30 }
 0x10c   : > { %v5691_v8 = vpop.permute.xlu1 %3393 }
 0x10d   : > { %v3399_v28 = vpop.permute.xlu0 %3398 }
 0x110   : > { %v5697_v40 = vpop.permute.xlu1 %3403 }
 0x111   : > { %v5703_v18 = vpop.permute.xlu0 %3408 }
 0x114   : > { %v5706_v41 = vpop.permute.xlu1 %3413 }
 0x115   : > { %v5713_v52 = vpop.permute.xlu0 %3418 }
 0x118   : > { %v5715_v50 = vpop.permute.xlu1 %3423 }
 0x119   : > { %v5729_v39 = vpop.permute.xlu0 %3428 }
 0x11c   : > { %v5733_v21 = vpop.permute.xlu1 %3433 }
 0x18e   : > { %v4420_v14 = vpop.f32.mrb[0].mxu1 }
 0x18f   : > { %v1342_v16 = vpop.f32.mrb[1].mxu1 }
 0x190   : > { %v4421_v32 = vpop.f32.mrb[2].mxu1 }
 0x191   : > { %v1345_v53 = vpop.f32.mrb[3].mxu1 }
 0x196   : > { %v4424_v44 = vpop.f32.mrb[4].mxu1 }
 0x197   : > { %v1358_v35 = vpop.f32.mrb[5].mxu1 }
 0x198   : > { %v5679_v19 = vpop.f32.mrb[6].mxu1 }
 0x199   : > { %v5681_v31 = vpop.f32.mrb[7].mxu1 }
 0x19e   : > { %v5683_v0 = vpop.f32.mrb[8].mxu1 }
 0x19f   : > { %v5685_v42 = vpop.f32.mrb[9].mxu1 }
 0x1a0   : > { %v5687_v22 = vpop.f32.mrb[10].mxu1 }
 0x1a1   : > { %v5689_v36 = vpop.f32.mrb[11].mxu1 }
 0x1a6   : > { %v5693_v62 = vpop.f32.mrb[12].mxu1 }
 0x1a7   : > { %v5695_v34 = vpop.f32.mrb[13].mxu1 }
 0x1a8   : > { %v5699_v13 = vpop.f32.mrb[14].mxu1 }
 0x1a9   : > { %v5701_v63 = vpop.f32.mrb[15].mxu1 }
 0x1ae   : > { %v4570_v3 = vpop.f32.mrb[0].mxu0 }
 0x1af   : > { %v4598_v37 = vadd.f32 %v4570_v3, %v4420_v14  ;;  %v3091_v12 = vpop.f32.mrb[1].mxu0 }
 0x1b0   : > { %v4599_v7 = vadd.f32 %v3091_v12, %v1342_v16  ;;  %v4571_v47 = vpop.f32.mrb[2].mxu0 }
 0x1b1   : > { %v4166_v11 = vpack.c.bf16 %v4598_v37, %v4598_v37  ;;  %v3503_v20 = vmul.f32 %v4598_v37, %v3379_v17  ;;  %v4600_v2 = vadd.f32 %v4571_v47, %v4421_v32  ;;  %v3094_v57 = vpop.f32.mrb[3].mxu0 }
 0x1b2   : > { %v4164_v60 = vpack.c.bf16 %v4599_v7, %v4599_v7  ;;  %v3501_v45 = vmul.f32 %v4599_v7, %v3369_v54  ;;  %v4601_v56 = vadd.f32 %v3094_v57, %v1345_v53  ;;  %v5751_v57 = vpop.permute.xlu1 %3443 }
 0x1b3   : > { %3340 = vst.msk [vmem:[%s5711_s9 + $0x8] sm:$0xf] %vm3337_vm4, %v4166_v11  ;;  %v3592_v61 = vmul.f32 %v4598_v37, %v3503_v20  ;;  %v4167_v6 = vpack.c.bf16 %v4600_v2, %v4600_v2  ;;  %v3504_v1 = vmul.f32 %v4600_v2, %v3384_v46  ;;  %v3532_v9 = vsel %vm3528_vm5, %v3503_v20, 0.0  ;;  %v5745_v11 = vpop.permute.xlu0 %3438 }
 0x1b4   : > { %3338 = vst.msk [vmem:[%s5711_s9] sm:$0xf] %vm3337_vm4, %v4164_v60  ;;  %v3590_v4 = vmul.f32 %v4599_v7, %v3501_v45  ;;  %v4165_v49 = vpack.c.bf16 %v4601_v56, %v4601_v56  ;;  %v3502_v51 = vmul.f32 %v4601_v56, %v3374_v33  ;;  %v3529_v23 = vsel %vm3528_vm5, %v3501_v45, 0.0 }
 0x1b5   : > { %3341 = vst.msk [vmem:[%s5711_s9 + $0xc] sm:$0xf] %vm3337_vm4, %v4167_v6  ;;  %v3620_v10 = vsel %vm3528_vm5, %v3592_v61, 0.0  ;;  %v3593_v55 = vmul.f32 %v4600_v2, %v3504_v1  ;;  %v3534_v29 = vsel %vm3528_vm5, %v3504_v1, 0.0 }
 0x1b6   : > { %3339 = vst.msk [vmem:[%s5711_s9 + $0x4] sm:$0xf] %vm3337_vm4, %v4165_v49  ;;  %v3530_v25 = vsel %vm3528_vm5, %v3502_v51, 0.0  ;;  %v3591_v26 = vmul.f32 %v4601_v56, %v3502_v51  ;;  %v4574_v5 = vpop.f32.mrb[4].mxu0  ;;  %v3617_v48 = vsel %vm3528_vm5, %v3590_v4, 0.0 }
 0x1b7   : > { %v3531_v24 = vadd.f32 %v3530_v25, %v3529_v23  ;;  %v4602_v27 = vadd.f32 %v4574_v5, %v4424_v44  ;;  %v3107_v38 = vpop.f32.mrb[5].mxu0  ;;  %v3622_v3 = vsel %vm3528_vm5, %v3593_v55, 0.0 }
 0x1b8   : > { %v3618_v58 = vsel %vm3528_vm5, %v3591_v26, 0.0  ;;  %v4603_v59 = vadd.f32 %v3107_v38, %v1358_v35  ;;  %v4575_v15 = vpop.f32.mrb[6].mxu0 }
 0x1b9   : > { %v3533_v30 = vadd.f32 %v3532_v9, %v3531_v24  ;;  %v3619_v14 = vadd.f32 %v3618_v58, %v3617_v48  ;;  %v4170_v16 = vpack.c.bf16 %v4602_v27, %v4602_v27  ;;  %v3110_v32 = vpop.f32.mrb[7].mxu0  ;;  %v4604_v17 = vadd.f32 %v4575_v15, %v5679_v19  ;;  %v5767_v48 = vpop.permute.xlu0 %3448 }
 0x1ba   : > { %v4168_v53 = vpack.c.bf16 %v4603_v59, %v4603_v59  ;;  %v3505_v54 = vmul.f32 %v4603_v59, %v3389_v43  ;;  %v4605_v44 = vadd.f32 %v3110_v32, %v5681_v31  ;;  %v3507_v35 = vmul.f32 %v4602_v27, %v3399_v28 }
 0x1bb   : > { %v3621_v33 = vadd.f32 %v3620_v10, %v3619_v14  ;;  %3344 = vst.msk [vmem:[%s5711_s9 + $0x18] sm:$0xf] %vm3337_vm4, %v4170_v16  ;;  %v3535_v46 = vadd.f32 %v3534_v29, %v3533_v30  ;;  %v4171_v7 = vpack.c.bf16 %v4604_v17, %v4604_v17  ;;  %v3508_v19 = vmul.f32 %v4604_v17, %v5697_v40 }
 0x1bc   : > { %3342 = vst.msk [vmem:[%s5711_s9 + $0x10] sm:$0xf] %vm3337_vm4, %v4168_v53  ;;  %v3536_v37 = vsel %vm3528_vm5, %v3505_v54, 0.0  ;;  %v3594_v12 = vmul.f32 %v4603_v59, %v3505_v54  ;;  %v4169_v31 = vpack.c.bf16 %v4605_v44, %v4605_v44  ;;  %v3506_v28 = vmul.f32 %v4605_v44, %v5691_v8 }
 0x1bd   : > { %v3537_v43 = vadd.f32 %v3536_v37, %v3535_v46  ;;  %v3623_v47 = vadd.f32 %v3622_v3, %v3621_v33  ;;  %3345 = vst.msk [vmem:[%s5711_s9 + $0x1c] sm:$0xf] %vm3337_vm4, %v4171_v7  ;;  %v3596_v60 = vmul.f32 %v4602_v27, %v3507_v35  ;;  %v3540_v40 = vsel %vm3528_vm5, %v3507_v35, 0.0 }
 0x1be   : > { %v3624_v20 = vsel %vm3528_vm5, %v3594_v12, 0.0  ;;  %v4578_v2 = vpop.f32.mrb[8].mxu0  ;;  %3343 = vst.msk [vmem:[%s5711_s9 + $0x14] sm:$0xf] %vm3337_vm4, %v4169_v31  ;;  %v3538_v6 = vsel %vm3528_vm5, %v3506_v28, 0.0  ;;  %v3595_v4 = vmul.f32 %v4605_v44, %v3506_v28  ;;  %v3597_v8 = vmul.f32 %v4604_v17, %v3508_v19 }
 0x1bf   : > { %v3625_v45 = vadd.f32 %v3624_v20, %v3623_v47  ;;  %v4606_v56 = vadd.f32 %v4578_v2, %v5683_v0  ;;  %v3123_v61 = vpop.f32.mrb[9].mxu0  ;;  %v3539_v51 = vadd.f32 %v3538_v6, %v3537_v43  ;;  %v3628_v24 = vsel %vm3528_vm5, %v3596_v60, 0.0  ;;  %v3459_v6 = vpop.permute.xlu0 %3458 }
 0x1c0   : > { %v4607_v1 = vadd.f32 %v3123_v61, %v5685_v42  ;;  %v4579_v49 = vpop.f32.mrb[10].mxu0  ;;  %v3626_v5 = vsel %vm3528_vm5, %v3595_v4, 0.0 }
 0x1c1   : > { %v4174_v23 = vpack.c.bf16 %v4606_v56, %v4606_v56  ;;  %v4608_v25 = vadd.f32 %v4579_v49, %v5687_v22  ;;  %v3126_v26 = vpop.f32.mrb[11].mxu0  ;;  %v3541_v27 = vadd.f32 %v3540_v40, %v3539_v51  ;;  %v3627_v38 = vadd.f32 %v3626_v5, %v3625_v45 }
 0x1c2   : > { %v4172_v0 = vpack.c.bf16 %v4607_v1, %v4607_v1  ;;  %v3509_v9 = vmul.f32 %v4607_v1, %v5703_v18  ;;  %v4609_v10 = vadd.f32 %v3126_v26, %v5689_v36  ;;  %v3511_v42 = vmul.f32 %v4606_v56, %v5713_v52  ;;  %v5773_v36 = vpop.permute.xlu1 %3453 }
 0x1c3   : > { %3348 = vst.msk [vmem:[%s5711_s9 + $0x28] sm:$0xf] %vm3337_vm4, %v4174_v23  ;;  %v3542_v22 = vsel %vm3528_vm5, %v3508_v19, 0.0  ;;  %v4175_v58 = vpack.c.bf16 %v4608_v25, %v4608_v25  ;;  %v3629_v59 = vadd.f32 %v3628_v24, %v3627_v38  ;;  %v3512_v29 = vmul.f32 %v4608_v25, %v5715_v50 }
 0x1c4   : > { %3346 = vst.msk [vmem:[%s5711_s9 + $0x20] sm:$0xf] %vm3337_vm4, %v4172_v0  ;;  %v3544_v55 = vsel %vm3528_vm5, %v3509_v9, 0.0  ;;  %v3598_v18 = vmul.f32 %v4607_v1, %v3509_v9  ;;  %v3543_v15 = vadd.f32 %v3542_v22, %v3541_v27  ;;  %v4173_v30 = vpack.c.bf16 %v4609_v10, %v4609_v10 }
 0x1c5   : > { %v3630_v52 = vsel %vm3528_vm5, %v3597_v8, 0.0  ;;  %3349 = vst.msk [vmem:[%s5711_s9 + $0x2c] sm:$0xf] %vm3337_vm4, %v4175_v58  ;;  %v3510_v32 = vmul.f32 %v4609_v10, %v5706_v41  ;;  %v3600_v17 = vmul.f32 %v4606_v56, %v3511_v42  ;;  %v3548_v3 = vsel %vm3528_vm5, %v3511_v42, 0.0 }
 0x1c6   : > { %v4466_v14 = vpop.f32.mrb[16].mxu1  ;;  %v3632_v16 = vsel %vm3528_vm5, %v3598_v18, 0.0  ;;  %v4582_v53 = vpop.f32.mrb[12].mxu0  ;;  %v3545_v44 = vadd.f32 %v3544_v55, %v3543_v15  ;;  %v3631_v33 = vadd.f32 %v3630_v52, %v3629_v59  ;;  %3347 = vst.msk [vmem:[%s5711_s9 + $0x24] sm:$0xf] %vm3337_vm4, %v4173_v30  ;;  %v3601_v19 = vmul.f32 %v4608_v25, %v3512_v29 }
 0x1c7   : > { %v1720_v54 = vpop.f32.mrb[17].mxu1  ;;  %v4610_v35 = vadd.f32 %v4582_v53, %v5693_v62  ;;  %v3139_v50 = vpop.f32.mrb[13].mxu0  ;;  %v3546_v37 = vsel %vm3528_vm5, %v3510_v32, 0.0  ;;  %v3599_v12 = vmul.f32 %v4609_v10, %v3510_v32  ;;  %v3636_v56 = vsel %vm3528_vm5, %v3600_v17, 0.0 }
 0x1c8   : > { %v4467_v46 = vpop.f32.mrb[18].mxu1  ;;  %v4611_v7 = vadd.f32 %v3139_v50, %v5695_v34  ;;  %v4583_v41 = vpop.f32.mrb[14].mxu0  ;;  %v3633_v47 = vadd.f32 %v3632_v16, %v3631_v33  ;;  %v3547_v31 = vadd.f32 %v3546_v37, %v3545_v44  ;;  %v3550_v34 = vsel %vm3528_vm5, %v3512_v29, 0.0 }
 0x1c9   : > { %v5787_v43 = vpop.f32.mrb[19].mxu1  ;;  %v4178_v20 = vpack.c.bf16 %v4610_v35, %v4610_v35  ;;  %v3142_v28 = vpop.f32.mrb[15].mxu0  ;;  %v3634_v62 = vsel %vm3528_vm5, %v3599_v12, 0.0  ;;  %v4612_v45 = vadd.f32 %v4583_v41, %v5699_v13  ;;  %v3515_v4 = vmul.f32 %v4610_v35, %v5745_v11 }
 0x1ca   : > { %v4176_v2 = vpack.c.bf16 %v4611_v7, %v4611_v7  ;;  %v3513_v60 = vmul.f32 %v4611_v7, %v5729_v39  ;;  %v3549_v61 = vadd.f32 %v3548_v3, %v3547_v31  ;;  %v3635_v40 = vadd.f32 %v3634_v62, %v3633_v47  ;;  %v3464_v8 = vpop.permute.xlu1 %3463 }
 0x1cb   : > { %3352 = vst.msk [vmem:[%s5711_s9 + $0x38] sm:$0xf] %vm3337_vm4, %v4178_v20  ;;  %v4179_v39 = vpack.c.bf16 %v4612_v45, %v4612_v45  ;;  %v4613_v23 = vadd.f32 %v3142_v28, %v5701_v63  ;;  %v3638_v26 = vsel %vm3528_vm5, %v3601_v19, 0.0  ;;  %v3516_v11 = vmul.f32 %v4612_v45, %v5751_v57 }
 0x1cc   : > { %3350 = vst.msk [vmem:[%s5711_s9 + $0x30] sm:$0xf] %vm3337_vm4, %v4176_v2  ;;  %v3552_v1 = vsel %vm3528_vm5, %v3513_v60, 0.0  ;;  %v3602_v49 = vmul.f32 %v4611_v7, %v3513_v60  ;;  %v3637_v13 = vadd.f32 %v3636_v56, %v3635_v40  ;;  %v3551_v51 = vadd.f32 %v3550_v34, %v3549_v61 }
 0x1cd   : > { %3353 = vst.msk [vmem:[%s5711_s9 + $0x3c] sm:$0xf] %vm3337_vm4, %v4179_v39  ;;  %v4177_v27 = vpack.c.bf16 %v4613_v23, %v4613_v23  ;;  %v3514_v38 = vmul.f32 %v4613_v23, %v5733_v21  ;;  %v3604_v63 = vmul.f32 %v4610_v35, %v3515_v4  ;;  %v3556_v16 = vsel %vm3528_vm5, %v3515_v4, 0.0 }
 0x1ce   : > { %v4470_v25 = vpop.f32.mrb[20].mxu1  ;;  %v3640_v5 = vsel %vm3528_vm5, %v3602_v49, 0.0  ;;  %v4586_v0 = vpop.f32.mrb[16].mxu0  ;;  %v3553_v10 = vadd.f32 %v3552_v1, %v3551_v51  ;;  %v3639_v24 = vadd.f32 %v3638_v26, %v3637_v13  ;;  %v3558_v37 = vsel %vm3528_vm5, %v3516_v11, 0.0 }
 0x1cf   : > { %v1736_v9 = vpop.f32.mrb[21].mxu1  ;;  %v3155_v42 = vpop.f32.mrb[17].mxu0  ;;  %v4614_v55 = vadd.f32 %v4586_v0, %v4466_v14  ;;  %3351 = vst.msk [vmem:[%s5711_s9 + $0x34] sm:$0xf] %vm3337_vm4, %v4177_v27  ;;  %v3554_v29 = vsel %vm3528_vm5, %v3514_v38, 0.0  ;;  %v3603_v57 = vmul.f32 %v4613_v23, %v3514_v38  ;;  %v3644_v35 = vsel %vm3528_vm5, %v3604_v63, 0.0 }
 0x1d0   : > { %v4471_v22 = vpop.f32.mrb[22].mxu1  ;;  %v4615_v18 = vadd.f32 %v3155_v42, %v1720_v54  ;;  %v4587_v58 = vpop.f32.mrb[18].mxu0  ;;  %v3641_v15 = vadd.f32 %v3640_v5, %v3639_v24  ;;  %v3555_v21 = vadd.f32 %v3554_v29, %v3553_v10  ;;  %v3605_v54 = vmul.f32 %v4612_v45, %v3516_v11 }
 0x1d1   : > { %v1739_v59 = vpop.f32.mrb[23].mxu1  ;;  %v4616_v30 = vadd.f32 %v4587_v58, %v4467_v46  ;;  %v3158_v52 = vpop.f32.mrb[19].mxu0  ;;  %v4182_v32 = vpack.c.bf16 %v4614_v55, %v4614_v55  ;;  %v3642_v17 = vsel %vm3528_vm5, %v3603_v57, 0.0  ;;  %v3519_v12 = vmul.f32 %v4614_v55, %v3459_v6 }
 0x1d2   : > { %v4180_v53 = vpack.c.bf16 %v4615_v18, %v4615_v18  ;;  %v3469_v14 = vpop.permute.xlu0 %3468  ;;  %v3517_v44 = vmul.f32 %v4615_v18, %v5767_v48  ;;  %v3557_v50 = vadd.f32 %v3556_v16, %v3555_v21  ;;  %v3643_v3 = vadd.f32 %v3642_v17, %v3641_v15  ;;  %v3474_v46 = vpop.permute.xlu1 %3473 }
 0x1d3   : > { %v4183_v33 = vpack.c.bf16 %v4616_v30, %v4616_v30  ;;  %3356 = vst.msk [vmem:[%s5711_s9 + $0x48] sm:$0xf] %vm3337_vm4, %v4182_v32  ;;  %v4617_v31 = vadd.f32 %v3158_v52, %v5787_v43  ;;  %v3646_v62 = vsel %vm3528_vm5, %v3605_v54, 0.0  ;;  %v3520_v60 = vmul.f32 %v4616_v30, %v3464_v8 }
 0x1d4   : > { %3354 = vst.msk [vmem:[%s5711_s9 + $0x40] sm:$0xf] %vm3337_vm4, %v4180_v53  ;;  %v3560_v7 = vsel %vm3528_vm5, %v3517_v44, 0.0  ;;  %v3606_v41 = vmul.f32 %v4615_v18, %v3517_v44  ;;  %v3645_v48 = vadd.f32 %v3644_v35, %v3643_v3  ;;  %v3559_v19 = vadd.f32 %v3558_v37, %v3557_v50 }
 0x1d5   : > { %3357 = vst.msk [vmem:[%s5711_s9 + $0x4c] sm:$0xf] %vm3337_vm4, %v4183_v33  ;;  %v4181_v6 = vpack.c.bf16 %v4617_v31, %v4617_v31  ;;  %v3518_v4 = vmul.f32 %v4617_v31, %v5773_v36  ;;  %v3608_v39 = vmul.f32 %v4614_v55, %v3519_v12  ;;  %v3564_v0 = vsel %vm3528_vm5, %v3519_v12, 0.0 }
 0x1d6   : > { %v4474_v47 = vpop.f32.mrb[24].mxu1  ;;  %v4590_v20 = vpop.f32.mrb[20].mxu0  ;;  %v3648_v2 = vsel %vm3528_vm5, %v3606_v41, 0.0  ;;  %v3561_v61 = vadd.f32 %v3560_v7, %v3559_v19  ;;  %v3647_v40 = vadd.f32 %v3646_v62, %v3645_v48  ;;  %v3609_v24 = vmul.f32 %v4616_v30, %v3520_v60 }
 0x1d7   : > { %v1752_v28 = vpop.f32.mrb[25].mxu1  ;;  %v4618_v45 = vadd.f32 %v4590_v20, %v4470_v25  ;;  %v3171_v56 = vpop.f32.mrb[21].mxu0  ;;  %3355 = vst.msk [vmem:[%s5711_s9 + $0x44] sm:$0xf] %vm3337_vm4, %v4181_v6  ;;  %v3562_v8 = vsel %vm3528_vm5, %v3518_v4, 0.0  ;;  %v3607_v25 = vmul.f32 %v4617_v31, %v3518_v4  ;;  %v3566_v42 = vsel %vm3528_vm5, %v3520_v60, 0.0 }
 0x1d8   : > { %v4475_v34 = vpop.f32.mrb[26].mxu1  ;;  %v4591_v1 = vpop.f32.mrb[22].mxu0  ;;  %v4619_v51 = vadd.f32 %v3171_v56, %v1736_v9  ;;  %v3649_v5 = vadd.f32 %v3648_v2, %v3647_v40  ;;  %v3563_v36 = vadd.f32 %v3562_v8, %v3561_v61  ;;  %v3652_v58 = vsel %vm3528_vm5, %v3608_v39, 0.0 }
 0x1d9   : > { %v1755_v49 = vpop.f32.mrb[27].mxu1  ;;  %v3479_v43 = vpop.permute.xlu0 %3478  ;;  %v4186_v13 = vpack.c.bf16 %v4618_v45, %v4618_v45  ;;  %v4620_v23 = vadd.f32 %v4591_v1, %v4471_v22  ;;  %v3650_v9 = vsel %vm3528_vm5, %v3607_v25, 0.0 }
 0x1da   : > { %v3174_v26 = vpop.f32.mrb[23].mxu0  ;;  %v4184_v10 = vpack.c.bf16 %v4619_v51, %v4619_v51  ;;  %v3521_v27 = vmul.f32 %v4619_v51, %v3469_v14  ;;  %v3565_v22 = vadd.f32 %v3564_v0, %v3563_v36  ;;  %v3651_v63 = vadd.f32 %v3650_v9, %v3649_v5  ;;  %v3484_v18 = vpop.permute.xlu1 %3483 }
 0x1db   : > { %v4621_v11 = vadd.f32 %v3174_v26, %v1739_v59  ;;  %3360 = vst.msk [vmem:[%s5711_s9 + $0x58] sm:$0xf] %vm3337_vm4, %v4186_v13  ;;  %v4187_v38 = vpack.c.bf16 %v4620_v23, %v4620_v23  ;;  %v3523_v59 = vmul.f32 %v4618_v45, %v3479_v43  ;;  %v3654_v14 = vsel %vm3528_vm5, %v3609_v24, 0.0 }
 0x1dc   : > { %3358 = vst.msk [vmem:[%s5711_s9 + $0x50] sm:$0xf] %vm3337_vm4, %v4184_v10  ;;  %v3568_v15 = vsel %vm3528_vm5, %v3521_v27, 0.0  ;;  %v3610_v29 = vmul.f32 %v4619_v51, %v3521_v27  ;;  %v3653_v52 = vadd.f32 %v3652_v58, %v3651_v63  ;;  %v3567_v16 = vadd.f32 %v3566_v42, %v3565_v22 }
 0x1dd   : > { %v4185_v55 = vpack.c.bf16 %v4621_v11, %v4621_v11  ;;  %3361 = vst.msk [vmem:[%s5711_s9 + $0x5c] sm:$0xf] %vm3337_vm4, %v4187_v38  ;;  %v3489_v30 = vpop.permute.xlu0 %3488  ;;  %v3522_v21 = vmul.f32 %v4621_v11, %v3474_v46  ;;  %v3524_v17 = vmul.f32 %v4620_v23, %v3484_v18  ;;  %v3612_v7 = vmul.f32 %v4618_v45, %v3523_v59 }
 0x1de   : > { %v4594_v57 = vpop.f32.mrb[24].mxu0  ;;  %v3656_v54 = vsel %vm3528_vm5, %v3610_v29, 0.0  ;;  %v3569_v35 = vadd.f32 %v3568_v15, %v3567_v16  ;;  %v3655_v50 = vadd.f32 %v3654_v14, %v3653_v52  ;;  %v3494_v62 = vpop.permute.xlu1 %3493 }
 0x1df   : > { %3359 = vst.msk [vmem:[%s5711_s9 + $0x54] sm:$0xf] %vm3337_vm4, %v4185_v55  ;;  %v4622_v32 = vadd.f32 %v4594_v57, %v4474_v47  ;;  %v3187_v53 = vpop.f32.mrb[25].mxu0  ;;  %v3570_v3 = vsel %vm3528_vm5, %v3522_v21, 0.0  ;;  %v3611_v37 = vmul.f32 %v4621_v11, %v3522_v21  ;;  %v3613_v2 = vmul.f32 %v4620_v23, %v3524_v17 }
 0x1e0   : > { %v4623_v44 = vadd.f32 %v3187_v53, %v1752_v28  ;;  %v4595_v33 = vpop.f32.mrb[26].mxu0  ;;  %v3657_v48 = vadd.f32 %v3656_v54, %v3655_v50  ;;  %v3571_v19 = vadd.f32 %v3570_v3, %v3569_v35  ;;  %v3572_v28 = vsel %vm3528_vm5, %v3523_v59, 0.0 }
 0x1e1   : > { %v3190_v12 = vpop.f32.mrb[27].mxu0  ;;  %v4190_v41 = vpack.c.bf16 %v4622_v32, %v4622_v32  ;;  %v3658_v31 = vsel %vm3528_vm5, %v3611_v37, 0.0  ;;  %v3499_v56 = vpop.permute.xlu0 %3498  ;;  %v3660_v6 = vsel %vm3528_vm5, %v3612_v7, 0.0  ;;  %v3574_v4 = vsel %vm3528_vm5, %v3524_v17, 0.0 }
 0x1e2   : > { %v4188_v46 = vpack.c.bf16 %v4623_v44, %v4623_v44  ;;  %v3525_v47 = vmul.f32 %v4623_v44, %v3489_v30  ;;  %v4624_v20 = vadd.f32 %v3190_v12, %v1755_v49  ;;  %v3573_v45 = vadd.f32 %v3572_v28, %v3571_v19 }
 0x1e3   : > { %3365 = vst.msk [vmem:[%s5711_s9 + $0x68] sm:$0x1] %vm3364_vm6, %v4190_v41  ;;  %v3659_v34 = vadd.f32 %v3658_v31, %v3657_v48  ;;  %v3527_v1 = vmul.f32 %v4622_v32, %v3499_v56  ;;  %v3662_v51 = vsel %vm3528_vm5, %v3613_v2, 0.0 }
 0x1e4   : > { %3362 = vst.msk [vmem:[%s5711_s9 + $0x60] sm:$0xf] %vm3337_vm4, %v4188_v46  ;;  %v3614_v60 = vmul.f32 %v4623_v44, %v3525_v47  ;;  %v4189_v61 = vpack.c.bf16 %v4624_v20, %v4624_v20  ;;  %v3526_v40 = vmul.f32 %v4624_v20, %v3494_v62  ;;  %v3576_v49 = vsel %vm3528_vm5, %v3525_v47, 0.0 }
 0x1e5   : > { %v3661_v43 = vadd.f32 %v3660_v6, %v3659_v34  ;;  %v3575_v39 = vadd.f32 %v3574_v4, %v3573_v45  ;;  %v3616_v25 = vmul.f32 %v4622_v32, %v3527_v1  ;;  %v3581_v10 = vsel %vm3580_vm7, %v3527_v1, 0.0 }
 0x1e6   : > { %3363 = vst.msk [vmem:[%s5711_s9 + $0x64] sm:$0xf] %vm3337_vm4, %v4189_v61  ;;  %v3615_v13 = vmul.f32 %v4624_v20, %v3526_v40  ;;  %v3664_v23 = vsel %vm3528_vm5, %v3614_v60, 0.0  ;;  %v3578_v26 = vsel %vm3528_vm5, %v3526_v40, 0.0 }
 0x1e7   : > { %v3577_v5 = vadd.f32 %v3576_v49, %v3575_v39  ;;  %v3663_v8 = vadd.f32 %v3662_v51, %v3661_v43  ;;  %v3668_v27 = vsel %vm3580_vm7, %v3616_v25, 0.0 }
 0x1e8   : > { %v3666_v11 = vsel %vm3528_vm5, %v3615_v13, 0.0 }
 0x1e9   : > { %v3665_v0 = vadd.f32 %v3664_v23, %v3663_v8  ;;  %v3579_v36 = vadd.f32 %v3578_v26, %v3577_v5 }
 0x1eb   : > { %v3582_v24 = vadd.f32 %v3581_v10, %v3579_v36  ;;  %v3667_v9 = vadd.f32 %v3666_v11, %v3665_v0 }
 0x1ed   : > { %v3583_v38 = vrot.slane %v3582_v24, 4  ;;  %v3669_v42 = vadd.f32 %v3668_v27, %v3667_v9 }
 0x1ef   : > { %v3584_v22 = vadd.f32 %v3583_v38, %v3582_v24  ;;  %v3670_v63 = vrot.slane %v3669_v42, 4 }
 0x1f1   : > { %v3585_v55 = vrot.slane %v3584_v22, 2  ;;  %v3671_v18 = vadd.f32 %v3670_v63, %v3669_v42 }
 0x1f3   : > { %v3586_v58 = vadd.f32 %v3585_v55, %v3584_v22  ;;  %v3672_v59 = vrot.slane %v3671_v18, 2 }
 0x1f5   : > { %v3587_v15 = vrot.slane %v3586_v58, 1  ;;  %v3673_v29 = vadd.f32 %v3672_v59, %v3671_v18 }
 0x1f7   : > { %v3588_v57 = vadd.f32 %v3587_v15, %v3586_v58  ;;  %v3674_v30 = vrot.slane %v3673_v29, 1 }
 0x1f9   : > { %v3675_v52 = vadd.f32 %v3674_v30, %v3673_v29  ;;  %3677 = vst.msk [vmem:[%s238_s12] sm:$0x1] %vm3364_vm6, %v3588_v57 }
 0x1fb   : > { %3678 = vst.msk [vmem:[%s241_s15] sm:$0x1] %vm3364_vm6, %v3675_v52 }
 0x1fc PF: > { %s16_s18 = sadd.s32 1, %s4964_s18  }
 0x1fd   : > { %p13_p4 = scmp.ge.s32.totalorder %s16_s18, 4  }
 0x1ff   :  { %15 = sbr.rel (!%p13_p4) target bundleno = 1 (0x1), region = 97 }

// kernel: discriminator_forward.7
= control target key start
LH: loop header
LB: loop body
LE: loop exit
PB: predicated region body
PF: predicated region fallthrough
CT: control target
= control target key end

     0   :  { %s388_s15 = smov 0   ;;  %s434_s0 = inlined_call_operand.vmem [shape: bf16[2,20,256], index: 0, kind: input, shape index: {}]   ;;  %s435_s1 = inlined_call_operand.vmem [shape: f32[1,256], index: 1, kind: input, shape index: {}]   ;;  %s436_s2 = inlined_call_operand.vmem [shape: f32[1,256], index: 2, kind: input, shape index: {}]   ;;  %s437_s3 = inlined_call_operand.vmem [shape: f32[20,256], index: 3, kind: input, shape index: {}]   ;;  %s438_s4 = inlined_call_operand.vmem [shape: f32[2,1,128], index: 4, kind: output, shape index: {}]  }
   0x1 LB: > { %s336_s16 = sadd.s32 4294967295, %s361_s15   ;;  %p340_p0 = scmp.ge.s32.totalorder %s361_s15, 1  ;;  %s361_s15 = sphi %s388_s15, %s14_s15  }
   0x2   : > { %p162_p1 = scmp.lt.s32.totalorder %s361_s15, 3 }
   0x4   : > { %p163_p2 = pnand %p340_p0, %p162_p1 }
   0x5   : > { %p186_p3 = scmp.lt.s32.totalorder (!%p163_p2), %s336_s16, 1  ;;  %v212_v0 = vlaneseq (!%p163_p2)  ;;  %v194_v2 = vld [vmem:[%s435_s1] sm:$0x3] (!%p163_p2)  ;;  %v197_v32 = vld [vmem:[%s437_s3 + $0x8] sm:$0xff] (!%p163_p2)  ;;  %v198_v33 = vld [vmem:[%s437_s3 + $0x10] sm:$0xff] (!%p163_p2)  ;;  %vm272_vm6 = vcmask (!%p163_p2), 1043456  }
   0x6   : > { %166 = sbr.rel (%p163_p2) target bundleno = 247 (0xf7), region = 36  ;;  %v195_v3 = vld [vmem:[%s436_s2] sm:$0x3] (!%p163_p2)  ;;  %v199_v43 = vld [vmem:[%s437_s3 + $0x18] sm:$0xff] (!%p163_p2)  ;;  %v201_v48 = vld [vmem:[%s437_s3 + $0x28] sm:$0xf] (!%p163_p2) }
   0x7   : > { %v213_v1 = vshrl.u32 (!%p163_p2), %v212_v0, 7  ;;  %v196_v29 = vld [vmem:[%s437_s3] sm:$0xff] (!%p163_p2) }
   0x8   : > { %v200_v39 = vld [vmem:[%s437_s3 + $0x20] sm:$0xf] (!%p163_p2) }
   0x9   : > { %v214_v4 = vsub.s32 (!%p163_p2), 0, %v213_v1  ;;  %v218_v5 = vsub.s32 (!%p163_p2), 1, %v213_v1 }
   0xb   : > { %v215_v6 = vrot.slane (!%p163_p2), %v194_v2, %v214_v4  ;;  %v219_v7 = vrot.slane (!%p163_p2), %v194_v2, %v218_v5  ;;  %v232_v11 = vrot.slane (!%p163_p2), %v195_v3, %v214_v4  ;;  %v236_v12 = vrot.slane (!%p163_p2), %v195_v3, %v218_v5 }
   0xd   : > { %s440_s16 = smov (!%p186_p3, %s336_s16), 1 }
   0xe   : > { %s344_s19 = smul.u32 24, %s440_s16  ;;  %s193_s13 = scalar_lea.vmem %s438_s4, %s440_s16 }
  0x10   : > { %s190_s24 = scalar_lea.vmem %s434_s0, %s344_s19 }
  0x11   : > { %v202_v8 = vld [vmem:[%s190_s24] sm:$0xff]  ;;  %v203_v9 = vld [vmem:[%s190_s24 + $0x8] sm:$0xff]  ;;  %v204_v10 = vld [vmem:[%s190_s24 + $0x10] sm:$0x33] }
  0x12   : > { %v205_v13 = vunpack.c.l.bf16 %v202_v8  ;;  %v206_v14 = vunpack.c.h.bf16 %v202_v8  ;;  %v207_v15 = vunpack.c.l.bf16 %v203_v9  ;;  %v208_v16 = vunpack.c.h.bf16 %v203_v9 }
  0x13   : > { %v209_v17 = vunpack.c.l.bf16 %v204_v10  ;;  %v210_v18 = vunpack.c.h.bf16 %v204_v10 }
  0x14   : > { %v222_v19 = vmul.f32 %v215_v6, %v205_v13  ;;  %v223_v20 = vmul.f32 %v219_v7, %v206_v14  ;;  %v224_v21 = vmul.f32 %v215_v6, %v207_v15  ;;  %v225_v22 = vmul.f32 %v219_v7, %v208_v16 }
  0x15   : > { %v226_v23 = vmul.f32 %v215_v6, %v209_v17  ;;  %v227_v24 = vmul.f32 %v219_v7, %v210_v18 }
  0x16   : > { %v239_v25 = vadd.f32 %v232_v11, %v222_v19  ;;  %v240_v26 = vadd.f32 %v236_v12, %v223_v20  ;;  %v241_v27 = vadd.f32 %v232_v11, %v224_v21  ;;  %v242_v28 = vadd.f32 %v236_v12, %v225_v22 }
  0x17   : > { %v243_v30 = vadd.f32 %v232_v11, %v226_v23  ;;  %v244_v31 = vadd.f32 %v236_v12, %v227_v24 }
  0x18   : > { %vm245_vm0 = vcmp.gt.f32.partialorder %v239_v25, 0.0  ;;  %vm246_vm1 = vcmp.gt.f32.partialorder %v240_v26, 0.0  ;;  %vm247_vm2 = vcmp.gt.f32.partialorder %v241_v27, 0.0  ;;  %vm248_vm3 = vcmp.gt.f32.partialorder %v242_v28, 0.0 }
  0x19   : > { %vm249_vm4 = vcmp.gt.f32.partialorder %v243_v30, 0.0  ;;  %vm250_vm5 = vcmp.gt.f32.partialorder %v244_v31, 0.0  ;;  %v251_v34 = vmul.f32 0.2, %v239_v25  ;;  %v252_v35 = vmul.f32 0.2, %v240_v26 }
  0x1a   : > { %v253_v36 = vmul.f32 0.2, %v241_v27  ;;  %v254_v37 = vmul.f32 0.2, %v242_v28  ;;  %v255_v38 = vmul.f32 0.2, %v243_v30 }
  0x1b   : > { %v256_v40 = vmul.f32 0.2, %v244_v31  ;;  %v257_v41 = vsel %vm245_vm0, %v239_v25, %v251_v34  ;;  %v258_v42 = vsel %vm246_vm1, %v240_v26, %v252_v35 }
  0x1c   : > { %v259_v44 = vsel %vm247_vm2, %v241_v27, %v253_v36  ;;  %v260_v45 = vsel %vm248_vm3, %v242_v28, %v254_v37  ;;  %v261_v46 = vsel %vm249_vm4, %v243_v30, %v255_v38  ;;  %v263_v47 = vmul.f32 %v257_v41, %v196_v29 }
  0x1d   : > { %v262_v49 = vsel %vm250_vm5, %v244_v31, %v256_v40  ;;  %v264_v50 = vmul.f32 %v258_v42, %v197_v32  ;;  %v265_v51 = vmul.f32 %v259_v44, %v198_v33  ;;  %v267_v52 = vmul.f32 %v261_v46, %v200_v39 }
  0x1e   : > { %v266_v53 = vmul.f32 %v260_v45, %v199_v43  ;;  %v268_v55 = vmul.f32 %v262_v49, %v201_v48 }
  0x1f   : > { %v269_v54 = vadd.f32 %v264_v50, %v263_v47  ;;  %v273_v57 = vsel %vm272_vm6, %v267_v52, 0.0 }
  0x20   : > { %v275_v59 = vsel %vm272_vm6, %v268_v55, 0.0 }
  0x21   : > { %v270_v56 = vadd.f32 %v269_v54, %v265_v51 }
  0x23   : > { %v271_v58 = vadd.f32 %v270_v56, %v266_v53 }
  0x25   : > { %v274_v60 = vadd.f32 %v273_v57, %v271_v58 }
  0x27   : > { %v276_v61 = vadd.f32 %v275_v59, %v274_v60 }
  0x29   : > { %277 = vadd.xlane.f32.xlu0 %v276_v61 }
  0xb6   : > { %v278_v62 = vpop.xlane.xlu0 %277 }
  0xb7   : > { %v279_v63 = vrot.slane %v278_v62, 4 }
  0xb9   : > { %v280_v0 = vadd.f32 %v279_v63, %v278_v62 }
  0xbb   : > { %v281_v1 = vrot.slane %v280_v0, 2 }
  0xbd   : > { %v282_v2 = vadd.f32 %v281_v1, %v280_v0 }
  0xbf   : > { %v283_v3 = vrot.slane %v282_v2, 1 }
  0xc1   : > { %v284_v4 = vadd.f32 %v283_v3, %v282_v2 }
  0xc3   : > { %345 = vpush %v284_v4 }
  0xf4   : > { %s346_s14 = spop %345 }
  0xf5   : > { %v286_v5 = vstv %s346_s14 }
  0xf6   : > { %288 = vst [vmem:[%s193_s13] sm:$0x1] %v286_v5 }
  0xf7 PF: > { %s14_s15 = sadd.s32 1, %s361_s15  }
  0xf8   : > { %p11_p4 = scmp.ge.s32.totalorder %s14_s15, 4  }
  0xfa   :  { %13 = sbr.rel (!%p11_p4) target bundleno = 1 (0x1), region = 66 }

// kernel: discriminator_forward.6
= control target key start
LH: loop header
LB: loop body
LE: loop exit
PB: predicated region body
PF: predicated region fallthrough
CT: control target
= control target key end

     0   :  { %s2728_s18 = smov 0   ;;  %s3277_s0 = inlined_call_operand.vmem [shape: bf16[2,2,2,32,128], index: 0, kind: input, shape index: {}]   ;;  %s3278_s1 = inlined_call_operand.vmem [shape: bf16[9,128,256], index: 1, kind: input, shape index: {}]   ;;  %s3279_s2 = inlined_call_operand.vmem [shape: f32[20,1], index: 2, kind: input, shape index: {}]   ;;  %s3280_s3 = inlined_call_operand.vmem [shape: bf16[2,20,256], index: 3, kind: output, shape index: {0}]   ;;  %s3281_s4 = inlined_call_operand.vmem [shape: f32[2,1,256], index: 4, kind: output, shape index: {1}]   ;;  %s3282_s5 = inlined_call_operand.vmem [shape: f32[2,1,256], index: 5, kind: output, shape index: {2}]  }
   0x1 LB: > { %s2048_s19 = sadd.s32 4294967295, %s2694_s18   ;;  %p2052_p0 = scmp.ge.s32.totalorder %s2694_s18, 1  ;;  %s2694_s18 = sphi %s2728_s18, %s16_s18  }
   0x2   : > { %p192_p1 = scmp.lt.s32.totalorder %s2694_s18, 3 }
   0x4   : > { %p193_p2 = pnand %p2052_p0, %p192_p1 }
   0x5   : > { %v2457_v0 = vld [vmem:[%s3278_s1 + $0x84] ss:$8 sps:$4 sm:$0xff] (!%p193_p2)   ;;  %v2696_v2 = vmov (!%p193_p2), 0   ;;  %v2461_v3 = vld [vmem:[%s3278_s1 + $0x80] ss:$8 sps:$4 sm:$0xff] (!%p193_p2)   ;;  %p228_p3 = scmp.lt.s32.totalorder (!%p193_p2), %s2048_s19, 1 }
   0x6   : > { %196 = sbr.rel (%p193_p2) target bundleno = 413 (0x19d), region = 32  ;;  %v2459_v1 = vld [vmem:[%s3278_s1 + $0x204] ss:$8 sps:$4 sm:$0xff] (!%p193_p2)   ;;  %412 = vmatprep.mubr.bf16.mxu1 (!%p193_p2), %v2696_v2  ;;  %1059 = vmatprep.mubr.bf16.mxu0 (!%p193_p2), %v2696_v2  ;;  %v2462_v4 = vld [vmem:[%s3278_s1 + $0x200] ss:$8 sps:$4 sm:$0xff] (!%p193_p2)   ;;  %vm1655_vm2 = vcmask (!%p193_p2), 1044480  }
   0x7   : > { %380 = vmatprep.subr.bf16.mxu1 (!%p193_p2), %v2457_v0  ;;  %2455 = vset.pattern.permute.xlu0 (!%p193_p2), %v2696_v2  ;;  %v2463_v5 = vld [vmem:[%s3278_s1 + $0x94] ss:$8 sps:$4 sm:$0xff] (!%p193_p2)   ;;  %v2467_v7 = vld [vmem:[%s3278_s1 + $0x90] ss:$8 sps:$4 sm:$0xff] (!%p193_p2)   ;;  %v2469_v9 = vld [vmem:[%s3278_s1 + $0xa4] ss:$8 sps:$4 sm:$0xff] (!%p193_p2)  }
   0x8   : > { %1027 = vmatprep.subr.bf16.mxu0 (!%p193_p2), %v2459_v1  ;;  %2456 = vset.pattern.permute.xlu1 (!%p193_p2), %v2696_v2  ;;  %v2465_v6 = vld [vmem:[%s3278_s1 + $0x214] ss:$8 sps:$4 sm:$0xff] (!%p193_p2)   ;;  %v2468_v8 = vld [vmem:[%s3278_s1 + $0x210] ss:$8 sps:$4 sm:$0xff] (!%p193_p2)   ;;  %v2471_v10 = vld [vmem:[%s3278_s1 + $0x224] ss:$8 sps:$4 sm:$0xff] (!%p193_p2)  }
   0x9   : > { %381 = vmatpush1.bf16.msra.mxu1 (!%p193_p2), %v2461_v3  ;;  %1028 = vmatpush1.bf16.msra.mxu0 (!%p193_p2), %v2462_v4  ;;  %v2473_v11 = vld [vmem:[%s3278_s1 + $0xa0] ss:$8 sps:$4 sm:$0xff] (!%p193_p2)   ;;  %v2475_v13 = vld [vmem:[%s3278_s1 + $0xb4] ss:$8 sps:$4 sm:$0xff] (!%p193_p2)   ;;  %v2479_v15 = vld [vmem:[%s3278_s1 + $0xb0] ss:$8 sps:$4 sm:$0xff] (!%p193_p2)  }
   0xa   : > { %382 = vmatprep.subr.bf16.mxu1 (!%p193_p2), %v2463_v5  ;;  %1029 = vmatprep.subr.bf16.mxu0 (!%p193_p2), %v2465_v6  ;;  %v2474_v12 = vld [vmem:[%s3278_s1 + $0x220] ss:$8 sps:$4 sm:$0xff] (!%p193_p2)   ;;  %v2477_v14 = vld [vmem:[%s3278_s1 + $0x234] ss:$8 sps:$4 sm:$0xff] (!%p193_p2)   ;;  %v2480_v16 = vld [vmem:[%s3278_s1 + $0x230] ss:$8 sps:$4 sm:$0xff] (!%p193_p2)  }
   0xb   : > { %v2481_v17 = vld [vmem:[%s3278_s1 + $0xc4] ss:$8 sps:$4 sm:$0xff] (!%p193_p2)   ;;  %v2485_v19 = vld [vmem:[%s3278_s1 + $0xc0] ss:$8 sps:$4 sm:$0xff] (!%p193_p2)   ;;  %v2487_v21 = vld [vmem:[%s3278_s1 + $0xd4] ss:$8 sps:$4 sm:$0xff] (!%p193_p2)  }
   0xc   : > { %v2483_v18 = vld [vmem:[%s3278_s1 + $0x244] ss:$8 sps:$4 sm:$0xff] (!%p193_p2)   ;;  %v2486_v20 = vld [vmem:[%s3278_s1 + $0x240] ss:$8 sps:$4 sm:$0xff] (!%p193_p2)   ;;  %v2489_v22 = vld [vmem:[%s3278_s1 + $0x254] ss:$8 sps:$4 sm:$0xff] (!%p193_p2)  }
   0xd   : > { %383 = vmatpush1.bf16.msra.mxu1 %v2467_v7  ;;  %1030 = vmatpush1.bf16.msra.mxu0 %v2468_v8  ;;  %s3284_s19 = smov (!%p228_p3, %s2048_s19), 1  ;;  %v2491_v23 = vld [vmem:[%s3278_s1 + $0xd0] ss:$8 sps:$4 sm:$0xff]   ;;  %v2493_v25 = vld [vmem:[%s3278_s1 + $0xe4] ss:$8 sps:$4 sm:$0xff]   ;;  %vm1843_vm3 = vcmask 1043456  }
   0xe   : > { %384 = vmatprep.subr.bf16.mxu1 %v2469_v9  ;;  %1031 = vmatprep.subr.bf16.mxu0 %v2471_v10  ;;  %v2492_v24 = vld [vmem:[%s3278_s1 + $0x250] ss:$8 sps:$4 sm:$0xff]   ;;  %s2364_s24 = sshll.u32 %s3284_s19, 6  ;;  %v2495_v26 = vld [vmem:[%s3278_s1 + $0x264] ss:$8 sps:$4 sm:$0xff]   ;;  %s2444_s28 = smul.u32 24, %s3284_s19 }
   0xf   : > { %v2497_v27 = vld [vmem:[%s3278_s1 + $0xe0] ss:$8 sps:$4 sm:$0xff]   ;;  %s2834_s8 = scalar_lea.vmem %s3277_s0, %s2364_s24  ;;  %v2499_v29 = vld [vmem:[%s3278_s1 + $0xf4] ss:$8 sps:$4 sm:$0xff]   ;;  %v2503_v31 = vld [vmem:[%s3278_s1 + $0xf0] ss:$8 sps:$4 sm:$0xff]  }
  0x10   : > { %v2498_v28 = vld [vmem:[%s3278_s1 + $0x260] ss:$8 sps:$4 sm:$0xff]   ;;  %v2501_v30 = vld [vmem:[%s3278_s1 + $0x274] ss:$8 sps:$4 sm:$0xff]   ;;  %v2504_v32 = vld [vmem:[%s3278_s1 + $0x270] ss:$8 sps:$4 sm:$0xff]   ;;  %s237_s6 = scalar_lea.vmem %s3280_s3, %s2444_s28 }
  0x11   : > { %385 = vmatpush1.bf16.msra.mxu1 %v2473_v11  ;;  %1032 = vmatpush1.bf16.msra.mxu0 %v2474_v12  ;;  %v2507_v33 = vld [vmem:[%s3278_s1 + $0x4] ss:$8 sps:$4 sm:$0xff]   ;;  %v2511_v35 = vld [vmem:[%s2834_s8 + $0x10] sm:$0xff]   ;;  %v2505_v37 = vld [vmem:[%s3278_s1] ss:$8 sps:$4 sm:$0xff]   ;;  %s2056_s7 = sshll.u32 %s3284_s19, 1 }
  0x12   : > { %386 = vmatprep.subr.bf16.mxu1 %v2475_v13  ;;  %1033 = vmatprep.subr.bf16.mxu0 %v2477_v14  ;;  %v2510_v34 = vld [vmem:[%s3278_s1 + $0x284] ss:$8 sps:$4 sm:$0xff]   ;;  %v2512_v36 = vld [vmem:[%s2834_s8 + $0x30] sm:$0xff]   ;;  %v2508_v38 = vld [vmem:[%s3278_s1 + $0x280] ss:$8 sps:$4 sm:$0xff]   ;;  %s245_s13 = scalar_lea.vmem %s3282_s5, %s2056_s7 }
  0x13   : > { %v2515_v39 = vld [vmem:[%s3278_s1 + $0x14] ss:$8 sps:$4 sm:$0xff]   ;;  %v2513_v41 = vld [vmem:[%s3278_s1 + $0x10] ss:$8 sps:$4 sm:$0xff]   ;;  %v2521_v43 = vld [vmem:[%s3278_s1 + $0x24] ss:$8 sps:$4 sm:$0xff]  }
  0x14   : > { %v2518_v40 = vld [vmem:[%s3278_s1 + $0x294] ss:$8 sps:$4 sm:$0xff]   ;;  %v2516_v42 = vld [vmem:[%s3278_s1 + $0x290] ss:$8 sps:$4 sm:$0xff]   ;;  %v2524_v44 = vld [vmem:[%s3278_s1 + $0x2a4] ss:$8 sps:$4 sm:$0xff]  }
  0x15   : > { %387 = vmatpush1.bf16.msra.mxu1 %v2479_v15  ;;  %1034 = vmatpush1.bf16.msra.mxu0 %v2480_v16  ;;  %v2519_v45 = vld [vmem:[%s3278_s1 + $0x20] ss:$8 sps:$4 sm:$0xff]   ;;  %v2527_v47 = vld [vmem:[%s3278_s1 + $0x34] ss:$8 sps:$4 sm:$0xff]   ;;  %v2525_v51 = vld [vmem:[%s3278_s1 + $0x30] ss:$8 sps:$4 sm:$0xff]  }
  0x16   : > { %388 = vmatprep.subr.bf16.mxu1 %v2481_v17  ;;  %1035 = vmatprep.subr.bf16.mxu0 %v2483_v18  ;;  %v2522_v46 = vld [vmem:[%s3278_s1 + $0x2a0] ss:$8 sps:$4 sm:$0xff]   ;;  %v2530_v48 = vld [vmem:[%s3278_s1 + $0x2b4] ss:$8 sps:$4 sm:$0xff]   ;;  %v2528_v52 = vld [vmem:[%s3278_s1 + $0x2b0] ss:$8 sps:$4 sm:$0xff]  }
  0x17   : > { %v2549_v49 = vld [vmem:[%s2834_s8 + $0x18] ss:$0 sps:$4 sm:$0x33]   ;;  %v2533_v53 = vld [vmem:[%s3278_s1 + $0x44] ss:$8 sps:$4 sm:$0xff]  }
  0x18   : > { %v2550_v50 = vld [vmem:[%s2834_s8 + $0x38] ss:$0 sps:$4 sm:$0x33]   ;;  %v2536_v54 = vld [vmem:[%s3278_s1 + $0x2c4] ss:$8 sps:$4 sm:$0xff]  }
  0x19   : > { %389 = vmatpush1.bf16.msra.mxu1 %v2485_v19  ;;  %1036 = vmatpush1.bf16.msra.mxu0 %v2486_v20  ;;  %v2531_v55 = vld [vmem:[%s3278_s1 + $0x40] ss:$8 sps:$4 sm:$0xff]   ;;  %v2539_v57 = vld [vmem:[%s3278_s1 + $0x54] ss:$8 sps:$4 sm:$0xff]   ;;  %v2537_v59 = vld [vmem:[%s3278_s1 + $0x50] ss:$8 sps:$4 sm:$0xff]  }
  0x1a   : > { %390 = vmatprep.subr.bf16.mxu1 %v2487_v21  ;;  %1037 = vmatprep.subr.bf16.mxu0 %v2489_v22  ;;  %v2534_v56 = vld [vmem:[%s3278_s1 + $0x2c0] ss:$8 sps:$4 sm:$0xff]   ;;  %v2542_v58 = vld [vmem:[%s3278_s1 + $0x2d4] ss:$8 sps:$4 sm:$0xff]   ;;  %v2540_v61 = vld [vmem:[%s3278_s1 + $0x2d0] ss:$8 sps:$4 sm:$0xff]  }
  0x1b   : > { %v2926_v60 = vld [vmem:[%s2834_s8 + $0x20] sm:$0xff]   ;;  %v2565_v63 = vld [vmem:[%s2834_s8 + $0x28] ss:$0 sps:$4 sm:$0x77]   ;;  %v2553_v5 = vld [vmem:[%s3278_s1 + $0x74] ss:$8 sps:$4 sm:$0xff]  }
  0x1c   : > { %v2545_v62 = vld [vmem:[%s3278_s1 + $0x64] ss:$8 sps:$4 sm:$0xff]   ;;  %v1108_v0 = vshll.u32 %v2926_v60, 16  ;;  %v2543_v3 = vld [vmem:[%s3278_s1 + $0x60] ss:$8 sps:$4 sm:$0xff]   ;;  %v1106_v6 = vshrl.u32 %v2926_v60, 16 }
  0x1d   : > { %391 = vmatpush1.bf16.msra.mxu1 %v2491_v23  ;;  %1038 = vmatpush1.bf16.msra.mxu0 %v2492_v24  ;;  %v2548_v1 = vld [vmem:[%s3278_s1 + $0x2e4] ss:$8 sps:$4 sm:$0xff]   ;;  %v2546_v4 = vld [vmem:[%s3278_s1 + $0x2e0] ss:$8 sps:$4 sm:$0xff]   ;;  %v1113_v8 = vshll.u32 %v2565_v63, 16  ;;  %v1117_v23 = vshrl.u32 %v2565_v63, 16 }
  0x1e   : > { %392 = vmatprep.subr.bf16.mxu1 %v2493_v25  ;;  %1039 = vmatprep.subr.bf16.mxu0 %v2495_v26  ;;  %v1110_v7 = vrot.slane %v1108_v0, 1  ;;  %v2556_v9 = vld [vmem:[%s3278_s1 + $0x2f4] ss:$8 sps:$4 sm:$0xff]   ;;  %v2551_v10 = vld [vmem:[%s3278_s1 + $0x70] ss:$8 sps:$4 sm:$0xff]   ;;  %v2968_v17 = vld [vmem:[%s2834_s8] sm:$0xff]  }
  0x1f   : > { %v2554_v11 = vld [vmem:[%s3278_s1 + $0x2f0] ss:$8 sps:$4 sm:$0xff]   ;;  %v2559_v12 = vld [vmem:[%s3278_s1 + $0x104] ss:$8 sps:$4 sm:$0xff]   ;;  %v1115_v14 = vrot.slane %v1113_v8, 1 }
  0x20   : > { %v1111_v13 = vor.u32 %v1110_v7, %v1106_v6  ;;  %v2562_v15 = vld [vmem:[%s3278_s1 + $0x304] ss:$8 sps:$4 sm:$0xff]   ;;  %vm593_vm0 = vsmask.f32 7424  ;;  %v2557_v16 = vld [vmem:[%s3278_s1 + $0x100] ss:$8 sps:$4 sm:$0xff]  }
  0x21   : > { %393 = vmatpush1.bf16.msra.mxu1 %v2497_v27  ;;  %1040 = vmatpush1.bf16.msra.mxu0 %v2498_v28  ;;  %v2560_v18 = vld [vmem:[%s3278_s1 + $0x300] ss:$8 sps:$4 sm:$0xff]   ;;  %v2568_v20 = vld [vmem:[%s3278_s1 + $0x114] ss:$8 sps:$4 sm:$0xff]   ;;  %v2566_v22 = vld [vmem:[%s3278_s1 + $0x110] ss:$8 sps:$4 sm:$0xff]  }
  0x22   : > { %394 = vmatprep.subr.bf16.mxu1 %v2499_v29  ;;  %1041 = vmatprep.subr.bf16.mxu0 %v2501_v30  ;;  %v1116_v19 = vsel %vm593_vm0, %v1111_v13, %v1115_v14  ;;  %v2571_v21 = vld [vmem:[%s3278_s1 + $0x314] ss:$8 sps:$4 sm:$0xff]   ;;  %v2569_v24 = vld [vmem:[%s3278_s1 + $0x310] ss:$8 sps:$4 sm:$0xff]   ;;  %v2574_v25 = vld [vmem:[%s3278_s1 + $0x124] ss:$8 sps:$4 sm:$0xff]   ;;  %v1119_v29 = vor.u32 %v1117_v23, %v1115_v14 }
  0x23   : > { %v2577_v26 = vld [vmem:[%s3278_s1 + $0x324] ss:$8 sps:$4 sm:$0xff]   ;;  %v2572_v27 = vld [vmem:[%s3278_s1 + $0x120] ss:$8 sps:$4 sm:$0xff]   ;;  %vm1290_vm1 = vsmask.f32 5376 }
  0x24   : > { %v2602_v28 = vld [vmem:[%s2834_s8 + $0x8] ss:$0 sps:$4 sm:$0x33]   ;;  %v2611_v6 = vld [vmem:[%s3278_s1 + $0x184] ss:$8 sps:$4 sm:$0xff]  }
  0x25   : > { %395 = vmatpush1.bf16.msra.mxu1 %v2503_v31  ;;  %1042 = vmatpush1.bf16.msra.mxu0 %v2504_v32  ;;  %v2575_v30 = vld [vmem:[%s3278_s1 + $0x320] ss:$8 sps:$4 sm:$0xff]   ;;  %v2580_v31 = vld [vmem:[%s3278_s1 + $0x134] ss:$8 sps:$4 sm:$0xff]  }
  0x26   : > { %521 = vmatprep.subr.bf16.mxu1 %v2507_v33  ;;  %1202 = vmatprep.subr.bf16.mxu0 %v2510_v34  ;;  %v2583_v32 = vld [vmem:[%s3278_s1 + $0x334] ss:$8 sps:$4 sm:$0xff]   ;;  %v2578_v33 = vld [vmem:[%s3278_s1 + $0x130] ss:$8 sps:$4 sm:$0xff]   ;;  %v2612_v13 = vld [vmem:[%s3278_s1 + $0x380] ss:$8 sps:$4 sm:$0xff]  }
  0x27   : > { %v2581_v34 = vld [vmem:[%s3278_s1 + $0x330] ss:$8 sps:$4 sm:$0xff]   ;;  %v2624_v23 = vld [vmem:[%s3278_s1 + $0x1a0] ss:$8 sps:$4 sm:$0xff]  }
  0x28   : > { %413 = vmatmul.mubr.bf16.vlgmr.msra.gmra.mrb[0].mxu1 %v2511_v35  ;;  %1060 = vmatmul.mubr.bf16.vlgmr.msra.gmra.mrb[0].mxu0 %v2512_v36  ;;  %v2586_v35 = vld [vmem:[%s3278_s1 + $0x144] ss:$8 sps:$4 sm:$0xff]  }
  0x29   : > { %522 = vmatpush1.bf16.msra.mxu1 %v2505_v37  ;;  %1203 = vmatpush1.bf16.msra.mxu0 %v2508_v38  ;;  %v2589_v36 = vld [vmem:[%s3278_s1 + $0x344] ss:$8 sps:$4 sm:$0xff]   ;;  %v1259_v37 = vld [vmem:[%s2834_s8] sm:$0xc] }
  0x2a   : > { %523 = vmatprep.subr.bf16.mxu1 %v2515_v39  ;;  %1204 = vmatprep.subr.bf16.mxu0 %v2518_v40  ;;  %v3022_v38 = vld [vmem:[%s2834_s8 + $0x4] sm:$0xf]  ;;  %v2584_v39 = vld [vmem:[%s3278_s1 + $0x140] ss:$8 sps:$4 sm:$0xff]  }
  0x2b   : > { %422 = vmatprep.mubr.bf16.mxu1 %v2696_v2  ;;  %1069 = vmatprep.mubr.bf16.mxu0 %v2696_v2  ;;  %v2587_v40 = vld [vmem:[%s3278_s1 + $0x340] ss:$8 sps:$4 sm:$0xff]  }
  0x2d   : > { %524 = vmatpush1.bf16.msra.mxu1 %v2513_v41  ;;  %1205 = vmatpush1.bf16.msra.mxu0 %v2516_v42  ;;  %v2270_v41 = vcombine.low %v1259_v37, %v3022_v38  ;;  %v3034_v42 = vld [vmem:[%s2834_s8 + $0x8] sm:$0x1f]  }
  0x2e   : > { %525 = vmatprep.subr.bf16.mxu1 %v2521_v43  ;;  %1206 = vmatprep.subr.bf16.mxu0 %v2524_v44  ;;  %v2592_v43 = vld [vmem:[%s3278_s1 + $0x154] ss:$8 sps:$4 sm:$0xff]   ;;  %v2636_v37 = vld [vmem:[%s3278_s1 + $0x1c0] ss:$8 sps:$4 sm:$0xff]  }
  0x2f   : > { %v2595_v44 = vld [vmem:[%s3278_s1 + $0x354] ss:$8 sps:$4 sm:$0xff]  }
  0x30   : > { %423 = vmatmul.mubr.bf16.gmra.mrb[4].mxu1 %v2549_v49  ;;  %1070 = vmatmul.mubr.bf16.gmra.mrb[4].mxu0 %v2550_v50  ;;  %v3053_v49 = vld [vmem:[%s2834_s8 + $0x8] ss:$0 sps:$4 sm:$0x77]   ;;  %v1292_v50 = vshrl.u32 %v2270_v41, 16 }
  0x31   : > { %526 = vmatpush1.bf16.msra.mxu1 %v2519_v45  ;;  %1207 = vmatpush1.bf16.msra.mxu0 %v2522_v46  ;;  %v2590_v45 = vld [vmem:[%s3278_s1 + $0x150] ss:$8 sps:$4 sm:$0xff]  }
  0x32   : > { %527 = vmatprep.subr.bf16.mxu1 %v2527_v47  ;;  %1208 = vmatprep.subr.bf16.mxu0 %v2530_v48  ;;  %v2593_v46 = vld [vmem:[%s3278_s1 + $0x350] ss:$8 sps:$4 sm:$0xff]   ;;  %v597_v47 = vshll.u32 %v2968_v17, 16  ;;  %v2598_v48 = vld [vmem:[%s3278_s1 + $0x164] ss:$8 sps:$4 sm:$0xff]  }
  0x33   : > { %553 = vmatprep.mubr.bf16.mxu1 %v2696_v2  ;;  %1234 = vmatprep.mubr.bf16.mxu0 %v2696_v2 }
  0x35   : > { %528 = vmatpush1.bf16.msra.mxu1 %v2525_v51  ;;  %1209 = vmatpush1.bf16.msra.mxu0 %v2528_v52  ;;  %v1295_v51 = vshll.u32 %v2270_v41, 16  ;;  %v1300_v52 = vshrl.u32 %v3034_v42, 16 }
  0x36   : > { %529 = vmatprep.subr.bf16.mxu1 %v2533_v53  ;;  %1210 = vmatprep.subr.bf16.mxu0 %v2536_v54  ;;  %v1303_v53 = vshll.u32 %v3034_v42, 16  ;;  %v2601_v54 = vld [vmem:[%s3278_s1 + $0x364] ss:$8 sps:$4 sm:$0xff]  }
  0x37   : > { %v1297_v63 = vrot.slane %v1295_v51, 3  ;;  %v1302_v0 = vrot.slane %v1300_v52, 2 }
  0x39   : > { %530 = vmatpush1.bf16.msra.mxu1 %v2531_v55  ;;  %1211 = vmatpush1.bf16.msra.mxu0 %v2534_v56  ;;  %v2596_v55 = vld [vmem:[%s3278_s1 + $0x160] ss:$8 sps:$4 sm:$0xff]   ;;  %v595_v56 = vshrl.u32 %v2968_v17, 16 }
  0x3a   : > { %531 = vmatprep.subr.bf16.mxu1 %v2539_v57  ;;  %1212 = vmatprep.subr.bf16.mxu0 %v2542_v58  ;;  %v599_v57 = vrot.slane %v597_v47, 1  ;;  %v2599_v58 = vld [vmem:[%s3278_s1 + $0x360] ss:$8 sps:$4 sm:$0xff]   ;;  %v2642_v47 = vld [vmem:[%s3278_s1 + $0x1d0] ss:$8 sps:$4 sm:$0xff]  }
  0x3c   : > { %v600_v7 = vor.u32 %v599_v57, %v595_v56  ;;  %v2651_v56 = vld [vmem:[%s3278_s1 + $0x3e0] ss:$8 sps:$4 sm:$0xff]  }
  0x3d   : > { %532 = vmatpush1.bf16.msra.mxu1 %v2537_v59  ;;  %1213 = vmatpush1.bf16.msra.mxu0 %v2540_v61  ;;  %v2605_v59 = vld [vmem:[%s3278_s1 + $0x174] ss:$8 sps:$4 sm:$0xff]   ;;  %v602_v61 = vshll.u32 %v3053_v49, 16 }
  0x3e   : > { %533 = vmatprep.subr.bf16.mxu1 %v2545_v62  ;;  %1214 = vmatprep.subr.bf16.mxu0 %v2548_v1  ;;  %v1294_v62 = vrot.slane %v1292_v50, 2  ;;  %v1305_v1 = vrot.slane %v1303_v53, 3  ;;  %v2650_v53 = vld [vmem:[%s3278_s1 + $0x1e4] ss:$8 sps:$4 sm:$0xff]  }
  0x3f   : > { %v604_v8 = vrot.slane %v602_v61, 1 }
  0x41   : > { %534 = vmatpush1.bf16.msra.mxu1 %v2543_v3  ;;  %1215 = vmatpush1.bf16.msra.mxu0 %v2546_v4  ;;  %v2608_v3 = vld [vmem:[%s3278_s1 + $0x374] ss:$8 sps:$4 sm:$0xff]   ;;  %v2603_v4 = vld [vmem:[%s3278_s1 + $0x170] ss:$8 sps:$4 sm:$0xff]   ;;  %v605_v14 = vsel %vm593_vm0, %v600_v7, %v604_v8  ;;  %v2662_v7 = vld [vmem:[%s3278_s1 + $0x400] ss:$8 sps:$4 sm:$0xff]  }
  0x42   : > { %535 = vmatprep.subr.bf16.mxu1 %v2553_v5  ;;  %1216 = vmatprep.subr.bf16.mxu0 %v2556_v9  ;;  %v2606_v5 = vld [vmem:[%s3278_s1 + $0x370] ss:$8 sps:$4 sm:$0xff]   ;;  %v1298_v9 = vor.u32 %v1297_v63, %v1294_v62  ;;  %v2656_v62 = vld [vmem:[%s3278_s1 + $0x1f4] ss:$8 sps:$4 sm:$0xff]  }
  0x43   : > { %v2659_v63 = vld [vmem:[%s3278_s1 + $0x3f4] ss:$8 sps:$4 sm:$0xff]  }
  0x45   : > { %536 = vmatpush1.bf16.msra.mxu1 %v2551_v10  ;;  %1217 = vmatpush1.bf16.msra.mxu0 %v2554_v11  ;;  %v1306_v10 = vor.u32 %v1305_v1, %v1302_v0  ;;  %v2614_v11 = vld [vmem:[%s3278_s1 + $0x384] ss:$8 sps:$4 sm:$0xff]   ;;  %v2654_v0 = vld [vmem:[%s3278_s1 + $0x1f0] ss:$8 sps:$4 sm:$0xff]  }
  0x46   : > { %691 = vmatprep.subr.bf16.mxu1 %v2559_v12  ;;  %1390 = vmatprep.subr.bf16.mxu0 %v2562_v15  ;;  %v2609_v12 = vld [vmem:[%s3278_s1 + $0x180] ss:$8 sps:$4 sm:$0xff]   ;;  %v2657_v1 = vld [vmem:[%s3278_s1 + $0x3f0] ss:$8 sps:$4 sm:$0xff]  }
  0x47   : > { %v1307_v15 = vsel %vm1290_vm1, %v1298_v9, %v1306_v10  ;;  %v2665_v9 = vld [vmem:[%s3278_s1 + $0x410] ss:$8 sps:$4 sm:$0xff]  }
  0x48   : > { %554 = vmatmul.mubr.bf16.vlgmr.msra.gmra.mrb[0].mxu1 %v2968_v17  ;;  %1235 = vmatmul.mubr.bf16.vlgmr.msra.gmra.mrb[0].mxu0 %v1116_v19  ;;  %v2623_v17 = vld [vmem:[%s3278_s1 + $0x394] ss:$8 sps:$4 sm:$0xff]   ;;  %v606_v19 = vshrl.u32 %v3053_v49, 16 }
  0x49   : > { %692 = vmatpush1.bf16.msra.mxu1 %v2557_v16  ;;  %1391 = vmatpush1.bf16.msra.mxu0 %v2560_v18  ;;  %v2620_v16 = vld [vmem:[%s3278_s1 + $0x194] ss:$8 sps:$4 sm:$0xff]   ;;  %v2618_v18 = vld [vmem:[%s3278_s1 + $0x190] ss:$8 sps:$4 sm:$0xff]  }
  0x4a   : > { %693 = vmatprep.subr.bf16.mxu1 %v2568_v20  ;;  %1392 = vmatprep.subr.bf16.mxu0 %v2571_v21  ;;  %v2621_v20 = vld [vmem:[%s3278_s1 + $0x390] ss:$8 sps:$4 sm:$0xff]   ;;  %v2626_v21 = vld [vmem:[%s3278_s1 + $0x1a4] ss:$8 sps:$4 sm:$0xff]  }
  0x4b   : > { %563 = vmatprep.mubr.bf16.mxu1 %v2696_v2  ;;  %1244 = vmatprep.mubr.bf16.mxu0 %v2696_v2 }
  0x4d   : > { %694 = vmatpush1.bf16.msra.mxu1 %v2566_v22  ;;  %1393 = vmatpush1.bf16.msra.mxu0 %v2569_v24  ;;  %v2629_v22 = vld [vmem:[%s3278_s1 + $0x3a4] ss:$8 sps:$4 sm:$0xff]   ;;  %v608_v24 = vor.u32 %v606_v19, %v604_v8  ;;  %v2667_v8 = vld [vmem:[%s3278_s1 + $0x414] ss:$8 sps:$4 sm:$0xff]  }
  0x4e   : > { %695 = vmatprep.subr.bf16.mxu1 %v2574_v25  ;;  %1394 = vmatprep.subr.bf16.mxu0 %v2577_v26  ;;  %v2627_v25 = vld [vmem:[%s3278_s1 + $0x3a0] ss:$8 sps:$4 sm:$0xff]   ;;  %v2632_v26 = vld [vmem:[%s3278_s1 + $0x1b4] ss:$8 sps:$4 sm:$0xff]  }
  0x4f   : > { %v2686_v19 = vld [vmem:[%s3278_s1 + $0x474] ss:$8 sps:$4 sm:$0xff]  }
  0x50   : > { %564 = vmatmul.mubr.bf16.gmra.mrb[4].mxu1 %v2602_v28  ;;  %1245 = vmatmul.mubr.bf16.gmra.mrb[4].mxu0 %v1119_v29  ;;  %v2630_v28 = vld [vmem:[%s3278_s1 + $0x1b0] ss:$8 sps:$4 sm:$0xff]  }
  0x51   : > { %696 = vmatpush1.bf16.msra.mxu1 %v2572_v27  ;;  %1395 = vmatpush1.bf16.msra.mxu0 %v2575_v30  ;;  %v2635_v27 = vld [vmem:[%s3278_s1 + $0x3b4] ss:$8 sps:$4 sm:$0xff]   ;;  %v2633_v29 = vld [vmem:[%s3278_s1 + $0x3b0] ss:$8 sps:$4 sm:$0xff]   ;;  %v2638_v30 = vld [vmem:[%s3278_s1 + $0x1c4] ss:$8 sps:$4 sm:$0xff]  }
  0x52   : > { %697 = vmatprep.subr.bf16.mxu1 %v2580_v31  ;;  %1396 = vmatprep.subr.bf16.mxu0 %v2583_v32  ;;  %v2641_v31 = vld [vmem:[%s3278_s1 + $0x3c4] ss:$8 sps:$4 sm:$0xff]   ;;  %v1634_v32 = vld [vmem:[%s2834_s8] sm:$0x8] }
  0x53   : > { %723 = vmatprep.mubr.bf16.mxu1 %v2696_v2  ;;  %1422 = vmatprep.mubr.bf16.mxu0 %v2696_v2 }
  0x55   : > { %698 = vmatpush1.bf16.msra.mxu1 %v2578_v33  ;;  %1397 = vmatpush1.bf16.msra.mxu0 %v2581_v34  ;;  %v2342_v33 = vcombine.low %v1634_v32, %v3022_v38  ;;  %v1657_v34 = vrot.slane %v3034_v42, 3  ;;  %v2660_v38 = vld [vmem:[%s2834_s8 + $0x10] sm:$0xfc]  }
  0x56   : > { %699 = vmatprep.subr.bf16.mxu1 %v2586_v35  ;;  %1398 = vmatprep.subr.bf16.mxu0 %v2589_v36  ;;  %v247_v35 = vld [vmem:[%s3279_s2] sm:$0xff]  ;;  %v249_v36 = vld [vmem:[%s3279_s2 + $0x10] sm:$0xf]  ;;  %v1479_v49 = vshrl.u32 %v2660_v38, 16  ;;  %v1482_v50 = vshll.u32 %v2660_v38, 16 }
  0x57   : > { %1823 = vperm.xlu0 %2455, %v247_v35   ;;  %1833 = vperm.xlu1 %2456, %v249_v36   ;;  %v1656_v41 = vrot.slane %v2342_v33, 3 }
  0x58   : > { %v1481_v57 = vrot.slane %v1479_v49, 2 }
  0x59   : > { %700 = vmatpush1.bf16.msra.mxu1 %v2584_v39  ;;  %1399 = vmatpush1.bf16.msra.mxu0 %v2587_v40  ;;  %v2639_v39 = vld [vmem:[%s3278_s1 + $0x3c0] ss:$8 sps:$4 sm:$0xff]   ;;  %v2661_v40 = vld [vmem:[%s2834_s8 + $0x18] sm:$0x1f]  }
  0x5a   : > { %701 = vmatprep.subr.bf16.mxu1 %v2592_v43  ;;  %1400 = vmatprep.subr.bf16.mxu0 %v2595_v44  ;;  %v248_v43 = vld [vmem:[%s3279_s2 + $0x8] sm:$0xff]  ;;  %v2644_v44 = vld [vmem:[%s3278_s1 + $0x1d4] ss:$8 sps:$4 sm:$0xff]   ;;  %v1487_v51 = vshrl.u32 %v2661_v40, 16  ;;  %v1490_v52 = vshll.u32 %v2661_v40, 16 }
  0x5b   : > { %1828 = vperm.xlu0 %2455, %v248_v43  }
  0x5c   : > { %v1492_v61 = vrot.slane %v1490_v52, 3 }
  0x5d   : > { %702 = vmatpush1.bf16.msra.mxu1 %v2590_v45  ;;  %1401 = vmatpush1.bf16.msra.mxu0 %v2593_v46  ;;  %v2647_v45 = vld [vmem:[%s3278_s1 + $0x3d4] ss:$8 sps:$4 sm:$0xff]   ;;  %v3169_v46 = vsel %vm1655_vm2, %v1656_v41, %v1657_v34 }
  0x5e   : > { %703 = vmatprep.subr.bf16.mxu1 %v2598_v48  ;;  %1402 = vmatprep.subr.bf16.mxu0 %v2601_v54  ;;  %v2645_v48 = vld [vmem:[%s3278_s1 + $0x3d0] ss:$8 sps:$4 sm:$0xff]   ;;  %v2653_v54 = vld [vmem:[%s3278_s1 + $0x3e4] ss:$8 sps:$4 sm:$0xff]  }
  0x61   : > { %704 = vmatpush1.bf16.msra.mxu1 %v2596_v55  ;;  %1403 = vmatpush1.bf16.msra.mxu0 %v2599_v58  ;;  %v2648_v55 = vld [vmem:[%s3278_s1 + $0x1e0] ss:$8 sps:$4 sm:$0xff]   ;;  %v1484_v58 = vrot.slane %v1482_v50, 3 }
  0x62   : > { %705 = vmatprep.subr.bf16.mxu1 %v2605_v59  ;;  %1404 = vmatprep.subr.bf16.mxu0 %v2608_v3  ;;  %v1489_v59 = vrot.slane %v1487_v51, 2 }
  0x63   : > { %v1485_v3 = vor.u32 %v1484_v58, %v1481_v57 }
  0x65   : > { %706 = vmatpush1.bf16.msra.mxu1 %v2603_v4  ;;  %1405 = vmatpush1.bf16.msra.mxu0 %v2606_v5  ;;  %v1493_v4 = vor.u32 %v1492_v61, %v1489_v59  ;;  %v2664_v5 = vld [vmem:[%s3278_s1 + $0x404] ss:$8 sps:$4 sm:$0xff]  }
  0x66   : > { %859 = vmatprep.subr.bf16.mxu1 %v2611_v6  ;;  %1577 = vmatprep.subr.bf16.mxu0 %v2614_v11  ;;  %v2668_v11 = vld [vmem:[%s2834_s8 + $0x28] ss:$0 sps:$4 sm:$0x33]   ;;  %s241_s8 = scalar_lea.vmem %s3281_s4, %s2056_s7 }
  0x67   : > { %v1494_v6 = vsel %vm1290_vm1, %v1485_v3, %v1493_v4 }
  0x68   : > { %724 = vmatmul.mubr.bf16.vlgmr.msra.gmra.mrb[0].mxu1 %v605_v14  ;;  %1423 = vmatmul.mubr.bf16.vlgmr.msra.gmra.mrb[0].mxu0 %v1307_v15  ;;  %v2677_v14 = vld [vmem:[%s3278_s1 + $0x444] ss:$8 sps:$4 sm:$0xff]   ;;  %v2675_v15 = vld [vmem:[%s3278_s1 + $0x440] ss:$8 sps:$4 sm:$0xff]  }
  0x69   : > { %860 = vmatpush1.bf16.msra.mxu1 %v2609_v12  ;;  %1578 = vmatpush1.bf16.msra.mxu0 %v2612_v13  ;;  %v2674_v12 = vld [vmem:[%s3278_s1 + $0x434] ss:$8 sps:$4 sm:$0xff]   ;;  %v2672_v13 = vld [vmem:[%s3278_s1 + $0x430] ss:$8 sps:$4 sm:$0xff]  }
  0x6a   : > { %861 = vmatprep.subr.bf16.mxu1 %v2620_v16  ;;  %1579 = vmatprep.subr.bf16.mxu0 %v2623_v17  ;;  %v2680_v16 = vld [vmem:[%s3278_s1 + $0x454] ss:$8 sps:$4 sm:$0xff]   ;;  %v2678_v17 = vld [vmem:[%s3278_s1 + $0x450] ss:$8 sps:$4 sm:$0xff]  }
  0x6b   : > { %733 = vmatprep.mubr.bf16.mxu1 %v2696_v2  ;;  %1432 = vmatprep.mubr.bf16.mxu0 %v2696_v2 }
  0x6d   : > { %862 = vmatpush1.bf16.msra.mxu1 %v2618_v18  ;;  %1580 = vmatpush1.bf16.msra.mxu0 %v2621_v20  ;;  %v2681_v18 = vld [vmem:[%s3278_s1 + $0x460] ss:$8 sps:$4 sm:$0xff]   ;;  %v2684_v20 = vld [vmem:[%s3278_s1 + $0x470] ss:$8 sps:$4 sm:$0xff]  }
  0x6e   : > { %863 = vmatprep.subr.bf16.mxu1 %v2626_v21  ;;  %1581 = vmatprep.subr.bf16.mxu0 %v2629_v22 }
  0x70   : > { %734 = vmatmul.mubr.bf16.gmra.mrb[4].mxu1 %v608_v24  ;;  %1433 = vmatmul.mubr.bf16.gmra.mrb[4].mxu0 %v1306_v10  ;;  %v2671_v10 = vld [vmem:[%s3278_s1 + $0x424] ss:$8 sps:$4 sm:$0xff]  }
  0x71   : > { %864 = vmatpush1.bf16.msra.mxu1 %v2624_v23  ;;  %1582 = vmatpush1.bf16.msra.mxu0 %v2627_v25 }
  0x72   : > { %865 = vmatprep.subr.bf16.mxu1 %v2632_v26  ;;  %1583 = vmatprep.subr.bf16.mxu0 %v2635_v27 }
  0x73   : > { %891 = vmatprep.mubr.bf16.mxu1 %v2696_v2  ;;  %1609 = vmatprep.mubr.bf16.mxu0 %v2696_v2 }
  0x75   : > { %866 = vmatpush1.bf16.msra.mxu1 %v2630_v28  ;;  %1584 = vmatpush1.bf16.msra.mxu0 %v2633_v29 }
  0x76   : > { %867 = vmatprep.subr.bf16.mxu1 %v2638_v30  ;;  %1585 = vmatprep.subr.bf16.mxu0 %v2641_v31 }
  0x79   : > { %868 = vmatpush1.bf16.msra.mxu1 %v2636_v37  ;;  %1586 = vmatpush1.bf16.msra.mxu0 %v2639_v39 }
  0x7a   : > { %869 = vmatprep.subr.bf16.mxu1 %v2644_v44  ;;  %1587 = vmatprep.subr.bf16.mxu0 %v2647_v45 }
  0x7d   : > { %870 = vmatpush1.bf16.msra.mxu1 %v2642_v47  ;;  %1588 = vmatpush1.bf16.msra.mxu0 %v2645_v48 }
  0x7e   : > { %871 = vmatprep.subr.bf16.mxu1 %v2650_v53  ;;  %1589 = vmatprep.subr.bf16.mxu0 %v2653_v54 }
  0x81   : > { %872 = vmatpush1.bf16.msra.mxu1 %v2648_v55  ;;  %1590 = vmatpush1.bf16.msra.mxu0 %v2651_v56 }
  0x82   : > { %873 = vmatprep.subr.bf16.mxu1 %v2656_v62  ;;  %1591 = vmatprep.subr.bf16.mxu0 %v2659_v63 }
  0x85   : > { %874 = vmatpush1.bf16.msra.mxu1 %v2654_v0  ;;  %1592 = vmatpush1.bf16.msra.mxu0 %v2657_v1 }
  0x86   : > { %1741 = vmatprep.subr.bf16.mxu0 %v2664_v5  ;;  %2368 = vmatprep.subr.bf16.mxu1 %v2664_v5 }
  0x88   : > { %892 = vmatmul.mubr.bf16.vlgmr.msra.gmra.mrb[0].mxu1 %v2926_v60  ;;  %1610 = vmatmul.mubr.bf16.vlgmr.msra.gmra.mrb[0].mxu0 %v1494_v6  ;;  %v2669_v60 = vld [vmem:[%s3278_s1 + $0x420] ss:$8 sps:$4 sm:$0xff]  }
  0x89   : > { %1742 = vmatpush1.bf16.msra.mxu0 %v2662_v7  ;;  %2376 = vmatpush1.bf16.msra.mxu1 %v2662_v7 }
  0x8a   : > { %1743 = vmatprep.subr.bf16.mxu0 %v2667_v8  ;;  %2369 = vmatprep.subr.bf16.mxu1 %v2667_v8 }
  0x8b   : > { %901 = vmatprep.mubr.bf16.mxu1 %v2696_v2  ;;  %1619 = vmatprep.mubr.bf16.mxu0 %v2696_v2 }
  0x8d   : > { %1744 = vmatpush1.bf16.msra.mxu0 %v2665_v9  ;;  %2377 = vmatpush1.bf16.msra.mxu1 %v2665_v9 }
  0x8e   : > { %1745 = vmatprep.subr.bf16.mxu0 %v2671_v10  ;;  %2370 = vmatprep.subr.bf16.mxu1 %v2671_v10 }
  0x90   : > { %902 = vmatmul.mubr.bf16.gmra.mrb[4].mxu1 %v2668_v11  ;;  %1620 = vmatmul.mubr.bf16.gmra.mrb[4].mxu0 %v1493_v4 }
  0x91   : > { %1746 = vmatpush1.bf16.msra.mxu0 %v2669_v60  ;;  %2378 = vmatpush1.bf16.msra.mxu1 %v2669_v60 }
  0x92   : > { %1747 = vmatprep.subr.bf16.mxu0 %v2674_v12  ;;  %2371 = vmatprep.subr.bf16.mxu1 %v2674_v12 }
  0x93   : > { %1773 = vmatprep.mubr.bf16.mxu0 %v2696_v2  ;;  %1783 = vmatprep.mubr.bf16.mxu1 %v2696_v2  ;;  %v2683_v2 = vld [vmem:[%s3278_s1 + $0x464] ss:$8 sps:$4 sm:$0xff]  }
  0x95   : > { %1748 = vmatpush1.bf16.msra.mxu0 %v2672_v13  ;;  %2379 = vmatpush1.bf16.msra.mxu1 %v2672_v13 }
  0x96   : > { %1749 = vmatprep.subr.bf16.mxu0 %v2677_v14  ;;  %2372 = vmatprep.subr.bf16.mxu1 %v2677_v14 }
  0x99   : > { %1750 = vmatpush1.bf16.msra.mxu0 %v2675_v15  ;;  %2380 = vmatpush1.bf16.msra.mxu1 %v2675_v15 }
  0x9a   : > { %1751 = vmatprep.subr.bf16.mxu0 %v2680_v16  ;;  %2373 = vmatprep.subr.bf16.mxu1 %v2680_v16 }
  0x9d   : > { %1752 = vmatpush1.bf16.msra.mxu0 %v2678_v17  ;;  %2381 = vmatpush1.bf16.msra.mxu1 %v2678_v17 }
  0x9e   : > { %1753 = vmatprep.subr.bf16.mxu0 %v2683_v2  ;;  %2374 = vmatprep.subr.bf16.mxu1 %v2683_v2 }
  0xa1   : > { %1754 = vmatpush1.bf16.msra.mxu0 %v2681_v18  ;;  %2382 = vmatpush1.bf16.msra.mxu1 %v2681_v18 }
  0xa2   : > { %1755 = vmatprep.subr.bf16.mxu0 %v2686_v19  ;;  %2375 = vmatprep.subr.bf16.mxu1 %v2686_v19 }
  0xa5   : > { %1756 = vmatpush1.bf16.msra.mxu0 %v2684_v20  ;;  %2383 = vmatpush1.bf16.msra.mxu1 %v2684_v20 }
  0xa8   : > { %1774 = vmatmul.mubr.bf16.vlgmr.msra.gmra.mrb[0].mxu0 %v3169_v46  ;;  %1784 = vmatmul.mubr.bf16.vlgmr.msra.gmra.mrb[8].mxu1 %v1657_v34 }
  0xd6   : > { %v1824_v36 = vpop.permute.xlu0 %1823  ;;  %v1834_v37 = vpop.permute.xlu1 %1833 }
  0xda   : > { %v1829_v52 = vpop.permute.xlu0 %1828 }
 0x15b   : > { %v893_v21 = vpop.f32.mrb[0].mxu1 }
 0x15c   : > { %v895_v22 = vpop.f32.mrb[1].mxu1 }
 0x15d   : > { %v897_v23 = vpop.f32.mrb[2].mxu1 }
 0x15e   : > { %v899_v24 = vpop.f32.mrb[3].mxu1 }
 0x163   : > { %v903_v25 = vpop.f32.mrb[4].mxu1  ;;  %v1621_v26 = vpop.f32.mrb[4].mxu0 }
 0x164   : > { %v2388_v27 = vadd.f32 %v1621_v26, %v903_v25  ;;  %v905_v28 = vpop.f32.mrb[5].mxu1  ;;  %v1623_v29 = vpop.f32.mrb[5].mxu0  ;;  %v1895_v25 = vlaneseq }
 0x165   : > { %v2390_v30 = vadd.f32 %v1623_v29, %v905_v28  ;;  %v907_v31 = vpop.f32.mrb[6].mxu1  ;;  %v1625_v32 = vpop.f32.mrb[6].mxu0 }
 0x166   : > { %v908_v33 = vpop.f32.mrb[7].mxu1  ;;  %v1626_v35 = vpop.f32.mrb[7].mxu0  ;;  %vm1909_vm4 = vcmp.lt.s32.totalorder %v1895_v25, 256 }
 0x17b   : > { %v1775_v42 = vpop.f32.mrb[0].mxu0  ;;  %v1785_v34 = vpop.f32.mrb[8].mxu1 }
 0x17c   : > { %v2384_v39 = vadd.f32 %v1775_v42, %v893_v21  ;;  %v2389_v38 = vadd.f32 %v2388_v27, %v1785_v34  ;;  %v1777_v40 = vpop.f32.mrb[1].mxu0  ;;  %v1787_v41 = vpop.f32.mrb[9].mxu1 }
 0x17d   : > { %v2385_v43 = vadd.f32 %v1777_v40, %v895_v22  ;;  %v2391_v44 = vadd.f32 %v2390_v30, %v1787_v41  ;;  %v1779_v45 = vpop.f32.mrb[2].mxu0  ;;  %v1789_v46 = vpop.f32.mrb[10].mxu1 }
 0x17e   : > { %v1836_v47 = vmul.f32 %v2384_v39, %v1824_v36  ;;  %v1840_v48 = vmul.f32 %v2389_v38, %v1834_v37  ;;  %v2386_v49 = vadd.f32 %v1779_v45, %v897_v23  ;;  %v1781_v50 = vpop.f32.mrb[3].mxu0  ;;  %v1790_v51 = vpop.f32.mrb[11].mxu1  ;;  %v2697_v23 = vmov 1966171168  }
 0x17f   : > { %v2365_v53 = vpack.c.bf16 %v2385_v43, %v2384_v39  ;;  %v2367_v54 = vpack.c.bf16 %v2391_v44, %v2389_v38  ;;  %v1841_v55 = vmul.f32 %v2391_v44, %v1834_v37  ;;  %v1837_v57 = vmul.f32 %v2385_v43, %v1824_v36 }
 0x180   : > { %v1838_v56 = vmul.f32 %v2386_v49, %v1829_v52  ;;  %v1867_v58 = vmul.f32 %v2389_v38, %v1840_v48  ;;  %v2387_v59 = vadd.f32 %v1781_v50, %v899_v24  ;;  %v1863_v61 = vmul.f32 %v2384_v39, %v1836_v47 }
 0x181   : > { %1818 = vst [vmem:[%s237_s6] sm:$0xff] %v2365_v53  ;;  %1820 = vst [vmem:[%s237_s6 + $0x10] sm:$0x33] %v2367_v54  ;;  %v1844_v0 = vsel %vm1843_vm3, %v1840_v48, 0.0  ;;  %v1868_v4 = vmul.f32 %v2391_v44, %v1841_v55  ;;  %v1864_v7 = vmul.f32 %v2385_v43, %v1837_v57  ;;  %v1853_v11 = vsel %vm1843_vm3, %v1841_v55, 0.0 }
 0x182   : > { %v1842_v62 = vadd.f32 %v1838_v56, %v1836_v47  ;;  %v1865_v63 = vmul.f32 %v2386_v49, %v1838_v56  ;;  %v2366_v1 = vpack.c.bf16 %v2387_v59, %v2386_v49  ;;  %v1839_v3 = vmul.f32 %v2387_v59, %v1829_v52 }
 0x183   : > { %v1870_v8 = vsel %vm1843_vm3, %v1867_v58, 0.0  ;;  %v1879_v15 = vsel %vm1843_vm3, %v1868_v4, 0.0  ;;  %v1893_v24 = vunpack.c.l.s4 %v2697_v23  ;;  %v1896_v36 = vshrl.u32 %v1895_v25, 7 }
 0x184   : > { %v1845_v5 = vadd.f32 %v1844_v0, %v1842_v62  ;;  %v1869_v6 = vadd.f32 %v1865_v63, %v1863_v61  ;;  %1819 = vst [vmem:[%s237_s6 + $0x8] sm:$0xff] %v2366_v1  ;;  %v1852_v9 = vadd.f32 %v1839_v3, %v1837_v57  ;;  %v1866_v10 = vmul.f32 %v2387_v59, %v1839_v3 }
 0x185   : > { %v1894_v35 = vunpack.c.0.s8 %v1893_v24 }
 0x186   : > { %v1846_v60 = vrot.slane %v1845_v5, 4  ;;  %v1871_v12 = vadd.f32 %v1870_v8, %v1869_v6  ;;  %v1854_v13 = vadd.f32 %v1853_v11, %v1852_v9  ;;  %v1878_v14 = vadd.f32 %v1866_v10, %v1864_v7 }
 0x187   : > { %v1897_v43 = vsub.s32 %v1894_v35, %v1896_v36 }
 0x188   : > { %v1847_v16 = vadd.f32 %v1846_v60, %v1845_v5  ;;  %v1872_v17 = vrot.slane %v1871_v12, 4  ;;  %v1855_v2 = vrot.slane %v1854_v13, 4  ;;  %v1880_v18 = vadd.f32 %v1879_v15, %v1878_v14 }
 0x18a   : > { %v1848_v19 = vrot.slane %v1847_v16, 2  ;;  %v1873_v20 = vadd.f32 %v1872_v17, %v1871_v12  ;;  %v1856_v21 = vadd.f32 %v1855_v2, %v1854_v13  ;;  %v1881_v22 = vrot.slane %v1880_v18, 4 }
 0x18c   : > { %v1849_v26 = vadd.f32 %v1848_v19, %v1847_v16  ;;  %v1874_v27 = vrot.slane %v1873_v20, 2  ;;  %v1857_v28 = vrot.slane %v1856_v21, 2  ;;  %v1882_v29 = vadd.f32 %v1881_v22, %v1880_v18 }
 0x18e   : > { %v1850_v30 = vrot.slane %v1849_v26, 1  ;;  %v1875_v31 = vadd.f32 %v1874_v27, %v1873_v20  ;;  %v1858_v32 = vadd.f32 %v1857_v28, %v1856_v21  ;;  %v1883_v33 = vrot.slane %v1882_v29, 2 }
 0x190   : > { %v1876_v37 = vrot.slane %v1875_v31, 1  ;;  %v1851_v42 = vadd.f32 %v1850_v30, %v1849_v26  ;;  %v1859_v34 = vrot.slane %v1858_v32, 1  ;;  %v1884_v39 = vadd.f32 %v1883_v33, %v1882_v29 }
 0x192   : > { %v1877_v38 = vadd.f32 %v1876_v37, %v1875_v31  ;;  %v1860_v40 = vadd.f32 %v1859_v34, %v1858_v32  ;;  %v1885_v41 = vrot.slane %v1884_v39, 1 }
 0x194   : > { %v1886_v44 = vadd.f32 %v1885_v41, %v1884_v39  ;;  %v1891_v45 = vcombine.low %v1851_v42, %v1860_v40 }
 0x196   : > { %v1898_v46 = vrot.slane %v1891_v45, %v1897_v43  ;;  %v1914_v47 = vcombine.low %v1877_v38, %v1886_v44 }
 0x198   : > { %v1905_v48 = vrot.slane %v1898_v46, %v1897_v43  ;;  %v1921_v49 = vrot.slane %v1914_v47, %v1897_v43 }
 0x19a   : > { %1911 = vst.msk [vmem:[%s241_s8] sm:$0x3] %vm1909_vm4, %v1905_v48  ;;  %v1928_v50 = vrot.slane %v1921_v49, %v1897_v43 }
 0x19c   : > { %1930 = vst.msk [vmem:[%s245_s13] sm:$0x3] %vm1909_vm4, %v1928_v50 }
 0x19d PF: > { %s16_s18 = sadd.s32 1, %s2694_s18  }
 0x19e   : > { %p13_p4 = scmp.ge.s32.totalorder %s16_s18, 4  }
 0x1a0   :  { %15 = sbr.rel (!%p13_p4) target bundleno = 1 (0x1), region = 97 }

</bundles_post_ra>
